<compile_context>
chip_gen: v7x
topology: tpu7x:2x2x1
jax: 0.10.0
libtpu: 0.0.40
codegen_flags: <defaults>
</compile_context>

<pallas_src>
import jax
import jax.numpy as jnp
from jax.experimental import pallas as pl
from jax.experimental.pallas import tpu as pltpu


def _ceil_to(x, m):
    return ((x + m - 1) // m) * m


# ------------------------------- kernel --------------------------------------
def _molgan_disc_kernel(node_ref, adj_ref, sel_ref,
                        wnode_ref, bnode_ref, wfh_ref,
                        wl_ref, bl_ref, wot_ref, bo_ref,
                        out_ref):
    f32 = jnp.float32
    node = node_ref[...]                   # (R, F)   flat node features, R = bb*Np
    adj = adj_ref[0].astype(f32)           # (R, R)   block-diagonal 0/1 adjacency

    # One wide node-side projection (tiny K=F amortized over 640 lanes):
    #   [:,   0:128] = node @ W1        + b1        (lin1)
    #   [:, 128:384] = node @ (W2b@Wgh) + b2@Wgh    (node part of lin2@Wgh)
    #   [:, 384:640] = node @ Wgn       + bg        (node part of the gates)
    nodeproj = (jnp.dot(node, wnode_ref[...], preferred_element_type=f32)
                + bnode_ref[...])                                     # (R, 640)

    lin1 = nodeproj[:, :128]
    h1 = jnp.dot(adj, lin1, preferred_element_type=f32) + lin1        # (R, 128)

    # lin2 folded away: t = lin2 @ [Wsa|Wta] = h1 @ (W2a@Wgh) + node @ (W2b@Wgh) + b2@Wgh
    t = (jnp.dot(h1, wfh_ref[...], preferred_element_type=f32)
         + nodeproj[:, 128:384])                                      # (R, 256)

    # gates = h2 @ [Wsa|Wta] + node @ [Wsb|Wtb] + [bs|bt], with h2 = adj@lin2 + lin2
    gates = (jnp.dot(adj, t, preferred_element_type=f32) + t
             + nodeproj[:, 384:])                                     # (R, 256)

    prod = jax.nn.sigmoid(gates[:, :128]) * jnp.tanh(gates[:, 128:])  # (R, 128)

    # Per-graph sum over valid nodes as a 0/1 selector matmul (also masks padding).
    g = jnp.tanh(jnp.dot(sel_ref[...], prod, preferred_element_type=f32))  # (bb, 128)

    l1 = jnp.tanh(jnp.dot(g, wl_ref[...], preferred_element_type=f32)
                  + bl_ref[...])                                      # (bb, 64)
    out = (jnp.dot(wot_ref[...], l1.T, preferred_element_type=f32)
           + bo_ref[...])                                             # (1, bb) lane-dense
    out_ref[0] = out


# ------------------------------- wrapper --------------------------------------
def molgan_discriminator(node, adj, params, *, block_graphs=None):
    B, N, F = node.shape
    assert adj.shape == (B, N, N)
    f32 = jnp.float32
    hi = jax.lax.Precision.HIGHEST

    n_pad = max(8, _ceil_to(N, 8))

    # ---- generation-aware VMEM budget & TensorCore count ----------------------
    try:
        info = pltpu.get_tpu_info()
        vmem_bytes = int(getattr(info, "vmem_capacity_bytes", 64 << 20))
    except Exception:
        vmem_bytes = 64 << 20
    if vmem_bytes <= 0:
        vmem_bytes = 64 << 20
    # v7x: 64 MiB VMEM per core, 2 TensorCores.  v5e/v6e: 128 MiB, 1 core.
    num_cores = 2 if vmem_bytes <= (64 << 20) else 1
    budget = int(vmem_bytes * 0.45)

    def vmem_estimate(bb):
        # Lane-padded, double-buffered inputs + straight-line f32 intermediates.
        rows = bb * n_pad
        lanes_adj = max(rows, 128)
        est = 2 * 4 * rows * 128                             # node tile (F pads to 128 lanes)
        est += 2 * 2 * rows * lanes_adj                      # bf16 block-diag adjacency (x2 buf)
        est += 4 * rows * lanes_adj                          # in-kernel f32 copy of adjacency
        est += 2 * 4 * max(bb, 8) * lanes_adj                # selector matrix
        est += 4 * rows * (640 + 128 + 128 + 256 + 256 + 128)  # nodeproj/lin1/h1/t/gates/prod
        est += 1 << 20                                       # weights + tail + slack
        return est

    b_ceil = max(8, _ceil_to(B, 8))
    if block_graphs is None:
        bb_max, cand = 8, 8
        while cand <= b_ceil and vmem_estimate(cand) <= budget:
            bb_max = cand
            cand += 8
        nb = -(-B // bb_max)                  # minimum steps forced by VMEM
        if num_cores > 1:                     # balance the v7x megacore
            nb = _ceil_to(max(nb, num_cores), num_cores)
        bb = max(8, _ceil_to(-(-B // nb), 8))
    else:
        bb = max(8, _ceil_to(int(block_graphs), 8))
        nb = -(-B // bb)
    b_pad = nb * bb
    R = bb * n_pad

    # ---- weight folding (exact reassociation, done once in f32) ---------------
    W1, b1 = params["W1"].astype(f32), params["b1"].astype(f32)
    W2a, W2b = params["W2a"].astype(f32), params["W2b"].astype(f32)
    b2 = params["b2"].astype(f32)
    Wgh = jnp.concatenate([params["Wsa"], params["Wta"]], axis=1).astype(f32)  # (64, 256)
    Wgn = jnp.concatenate([params["Wsb"], params["Wtb"]], axis=1).astype(f32)  # (F, 256)
    bg = jnp.concatenate([params["bs"], params["bt"]], axis=1).astype(f32)     # (1, 256)

    Wfh = jnp.dot(W2a, Wgh, precision=hi)     # (128, 256)
    Wfn = jnp.dot(W2b, Wgh, precision=hi)     # (F, 256)
    bf = jnp.dot(b2, Wgh, precision=hi)       # (1, 256)

    Wnode = jnp.concatenate([W1, Wfn, Wgn], axis=1)    # (F, 640)
    bnode = jnp.concatenate([b1, bf, bg], axis=1)      # (1, 640)
    Wl, bl = params["Wl"].astype(f32), params["bl"].astype(f32)
    wot = params["Wo"].T.astype(f32)                   # (1, 64)
    bo = params["bo"].astype(f32)                      # (1, 1)

    # ---- data layout: flat nodes, block-diagonal bf16 adjacency, selector -----
    node_p = jnp.pad(node.astype(f32), ((0, b_pad - B), (0, n_pad - N), (0, 0)))
    node_flat = node_p.reshape(b_pad * n_pad, F)

    adj_p = jnp.pad(adj.astype(jnp.bfloat16),
                    ((0, b_pad - B), (0, n_pad - N), (0, n_pad - N)))
    adj_blocks = adj_p.reshape(nb, bb, n_pad, n_pad)
    eye_bb = jnp.eye(bb, dtype=jnp.bfloat16)
    adj_bd = jnp.einsum('gipq,ij->gipjq', adj_blocks, eye_bb).reshape(nb, R, R)

    valid = (jnp.arange(n_pad) < N).astype(f32)
    sel = (jnp.eye(bb, dtype=f32)[:, :, None] * valid[None, None, :]).reshape(bb, R)

    weights = [Wnode, bnode, Wfh, Wl, bl, wot, bo]

    def const_spec(shape):
        nd = len(shape)
        return pl.BlockSpec(shape, lambda b, _nd=nd: (0,) * _nd)

    in_specs = [
        pl.BlockSpec((R, F), lambda b: (b, 0)),           # flat node features
        pl.BlockSpec((1, R, R), lambda b: (b, 0, 0)),     # block-diag adjacency
        const_spec(sel.shape),                            # per-graph selector
    ] + [const_spec(w.shape) for w in weights]

    # ---- advisory cost estimate ------------------------------------------------
    rows_total = b_pad * n_pad
    flops = (2 * rows_total * F * 640
             + 2 * nb * R * R * (128 + 256)
             + 2 * rows_total * 128 * 256
             + 2 * nb * bb * R * 128
             + 2 * b_pad * (128 * 64 + 64))
    transcendentals = rows_total * 256 + b_pad * (128 + 64)
    bytes_accessed = (4 * rows_total * F + 2 * nb * R * R + 4 * bb * R
                      + 4 * sum(int(w.size) for w in weights) + 4 * b_pad)

    vmem_limit = min(int(vmem_bytes * 3 // 4), 100 * 1024 * 1024)

    out = pl.pallas_call(
        _molgan_disc_kernel,
        out_shape=jax.ShapeDtypeStruct((nb, 1, bb), jnp.float32),
        grid_spec=pltpu.PrefetchScalarGridSpec(
            num_scalar_prefetch=0,
            grid=(nb,),
            in_specs=in_specs,
            out_specs=pl.BlockSpec((1, 1, bb), lambda b: (b, 0, 0)),
        ),
        compiler_params=pltpu.CompilerParams(
            dimension_semantics=("parallel",),
            vmem_limit_bytes=vmem_limit,
        ),
        cost_estimate=pl.CostEstimate(
            flops=int(flops),
            transcendentals=int(transcendentals),
            bytes_accessed=int(bytes_accessed),
        ),
    )(node_flat, adj_bd, sel, *weights)

    return out.reshape(b_pad, 1)[:B]


# -------------------------- deterministic params ------------------------------
def init_params(key, node_feature_dim):
    F = node_feature_dim

    def linear(k, fan_in, fan_out):
        kw, kb = jax.random.split(k)
        bound = 1.0 / jnp.sqrt(jnp.float32(fan_in))
        W = jax.random.uniform(kw, (fan_in, fan_out), jnp.float32, -bound, bound)
        b = jax.random.uniform(kb, (1, fan_out), jnp.float32, -bound, bound)
        return W, b

    ks = jax.random.split(key, 6)
    W1, b1 = linear(ks[0], F, 128)                 # GCN layer 1
    W2, b2 = linear(ks[1], 128 + F, 64)            # GCN layer 2 (cat(h, node))
    Ws, bs = linear(ks[2], 64 + F, 128)            # agg sigmoid branch
    Wt, bt = linear(ks[3], 64 + F, 128)            # agg tanh branch
    Wl, bl = linear(ks[4], 128, 64)                # linear_layer
    Wo, bo = linear(ks[5], 64, 1)                  # output_layer
    return dict(
        W1=W1, b1=b1,
        W2a=W2[:128], W2b=W2[128:], b2=b2,
        Wsa=Ws[:64], Wsb=Ws[64:], bs=bs,
        Wta=Wt[:64], Wtb=Wt[64:], bt=bt,
        Wl=Wl, bl=bl,
        Wo=Wo, bo=bo,
    )


# --------------------------- pure-JAX reference -------------------------------
def reference_forward(node, adj, p):
    lin1 = node @ p["W1"] + p["b1"]
    h1 = jnp.matmul(adj, lin1) + lin1
    ann2 = jnp.concatenate([h1, node], axis=-1)
    W2 = jnp.concatenate([p["W2a"], p["W2b"]], axis=0)
    lin2 = ann2 @ W2 + p["b2"]
    h2 = jnp.matmul(adj, lin2) + lin2
    ann3 = jnp.concatenate([h2, node], axis=-1)
    Ws = jnp.concatenate([p["Wsa"], p["Wsb"]], axis=0)
    Wt = jnp.concatenate([p["Wta"], p["Wtb"]], axis=0)
    i = jax.nn.sigmoid(ann3 @ Ws + p["bs"])
    j = jnp.tanh(ann3 @ Wt + p["bt"])
    g = jnp.tanh(jnp.sum(i * j, axis=1))
    l1 = jnp.tanh(g @ p["Wl"] + p["bl"][0])
    return l1 @ p["Wo"] + p["bo"][0]


# ----------------------------------- main -------------------------------------
if __name__ == "__main__":
    B, N, F = 48, 16, 8  # batch, nodes per graph, node_feature_dim

    key = jax.random.PRNGKey(0)
    k_node, k_adj, k_params = jax.random.split(key, 3)

    node = jax.random.normal(k_node, (B, N, F), dtype=jnp.float32)
    adj_raw = jax.random.uniform(k_adj, (B, N, N), dtype=jnp.float32)
    adj = ((adj_raw + jnp.swapaxes(adj_raw, -1, -2)) > 1.0).astype(jnp.float32)

    params = init_params(k_params, F)

    # Auto block-size / grid-length selection (nb=1 on v5e/v6e, nb=2 on v7x).
    out = molgan_discriminator(node, adj, params)
    out = jax.block_until_ready(out)

    ref = reference_forward(node, adj, params)
    assert out.shape == (B, 1)
    assert jnp.allclose(out, ref, atol=2e-4, rtol=2e-4), (out, ref)

    print("KERNEL_OK")
</pallas_src>

<mosaic_0001>
module attributes {stable_mosaic.version = 11 : i64} {
  func.func @_molgan_disc_kernel(%arg0: i32, %arg1: memref<384x8xf32, #tpu.memory_space<vmem>>, %arg2: memref<1x384x384xbf16, #tpu.memory_space<vmem>>, %arg3: memref<24x384xf32, #tpu.memory_space<vmem>>, %arg4: memref<8x640xf32, #tpu.memory_space<vmem>>, %arg5: memref<1x640xf32, #tpu.memory_space<vmem>>, %arg6: memref<128x256xf32, #tpu.memory_space<vmem>>, %arg7: memref<128x64xf32, #tpu.memory_space<vmem>>, %arg8: memref<1x64xf32, #tpu.memory_space<vmem>>, %arg9: memref<1x64xf32, #tpu.memory_space<vmem>>, %arg10: memref<1x1xf32, #tpu.memory_space<vmem>>, %arg11: memref<1x1x24xf32, #tpu.memory_space<vmem>>) attributes {dimension_semantics = [#tpu.dimension_semantics<parallel>], iteration_bounds = array<i64: 2>, scalar_prefetch = 0 : i64, scratch_operands = 0 : i64, tpu.core_type = #tpu.core_type<tc>, window_params = [{transform_indices = @transform_0, window_bounds = array<i64: 384, 8>}, {transform_indices = @transform_1, window_bounds = array<i64: 1, 384, 384>}, {pipeline_mode = #tpu.pipeline_mode<synchronous>, transform_indices = @transform_2, window_bounds = array<i64: 24, 384>}, {pipeline_mode = #tpu.pipeline_mode<synchronous>, transform_indices = @transform_3, window_bounds = array<i64: 8, 640>}, {pipeline_mode = #tpu.pipeline_mode<synchronous>, transform_indices = @transform_4, window_bounds = array<i64: 1, 640>}, {pipeline_mode = #tpu.pipeline_mode<synchronous>, transform_indices = @transform_5, window_bounds = array<i64: 128, 256>}, {pipeline_mode = #tpu.pipeline_mode<synchronous>, transform_indices = @transform_6, window_bounds = array<i64: 128, 64>}, {pipeline_mode = #tpu.pipeline_mode<synchronous>, transform_indices = @transform_7, window_bounds = array<i64: 1, 64>}, {pipeline_mode = #tpu.pipeline_mode<synchronous>, transform_indices = @transform_8, window_bounds = array<i64: 1, 64>}, {pipeline_mode = #tpu.pipeline_mode<synchronous>, transform_indices = @transform_9, window_bounds = array<i64: 1, 1>}, {transform_indices = @transform_10, window_bounds = array<i64: 1, 1, 24>}]} {
    %c0 = arith.constant 0 : index
    %c0_0 = arith.constant 0 : index
    %0 = vector.load %arg1[%c0, %c0_0] : memref<384x8xf32, #tpu.memory_space<vmem>>, vector<384x8xf32>
    %c0_1 = arith.constant 0 : index
    %c0_2 = arith.constant 0 : index
    %c0_3 = arith.constant 0 : index
    %1 = vector.load %arg2[%c0_1, %c0_2, %c0_3] : memref<1x384x384xbf16, #tpu.memory_space<vmem>>, vector<1x384x384xbf16>
    %2 = vector.shape_cast %1 : vector<1x384x384xbf16> to vector<384x384xbf16>
    %3 = arith.extf %2 : vector<384x384xbf16> to vector<384x384xf32>
    %c0_4 = arith.constant 0 : index
    %c0_5 = arith.constant 0 : index
    %4 = vector.load %arg4[%c0_4, %c0_5] : memref<8x640xf32, #tpu.memory_space<vmem>>, vector<8x640xf32>
    %cst = arith.constant dense<0.000000e+00> : vector<384x640xf32>
    %5 = tpu.matmul %0, %4, %cst {dimension_numbers = #tpu.dot_dimension_numbers<[1], [0], [0], [1], [0, 0, 1, 1], [], []>} : vector<384x8xf32>, vector<8x640xf32>, vector<384x640xf32> -> vector<384x640xf32>
    %c0_6 = arith.constant 0 : index
    %c0_7 = arith.constant 0 : index
    %6 = vector.load %arg5[%c0_6, %c0_7] : memref<1x640xf32, #tpu.memory_space<vmem>>, vector<1x640xf32>
    %7 = vector.broadcast %6 : vector<1x640xf32> to vector<384x640xf32>
    %8 = arith.addf %5, %7 : vector<384x640xf32>
    %9 = vector.extract_strided_slice %8 {offsets = [0, 0], sizes = [384, 128], strides = [1, 1]} : vector<384x640xf32> to vector<384x128xf32>
    %cst_8 = arith.constant dense<0.000000e+00> : vector<384x128xf32>
    %10 = tpu.matmul %3, %9, %cst_8 {dimension_numbers = #tpu.dot_dimension_numbers<[1], [0], [0], [1], [0, 0, 1, 1], [], []>} : vector<384x384xf32>, vector<384x128xf32>, vector<384x128xf32> -> vector<384x128xf32>
    %11 = arith.addf %10, %9 : vector<384x128xf32>
    %c0_9 = arith.constant 0 : index
    %c0_10 = arith.constant 0 : index
    %12 = vector.load %arg6[%c0_9, %c0_10] : memref<128x256xf32, #tpu.memory_space<vmem>>, vector<128x256xf32>
    %cst_11 = arith.constant dense<0.000000e+00> : vector<384x256xf32>
    %13 = tpu.matmul %11, %12, %cst_11 {dimension_numbers = #tpu.dot_dimension_numbers<[1], [0], [0], [1], [0, 0, 1, 1], [], []>} : vector<384x128xf32>, vector<128x256xf32>, vector<384x256xf32> -> vector<384x256xf32>
    %14 = vector.extract_strided_slice %8 {offsets = [0, 128], sizes = [384, 256], strides = [1, 1]} : vector<384x640xf32> to vector<384x256xf32>
    %15 = arith.addf %13, %14 : vector<384x256xf32>
    %cst_12 = arith.constant dense<0.000000e+00> : vector<384x256xf32>
    %16 = tpu.matmul %3, %15, %cst_12 {dimension_numbers = #tpu.dot_dimension_numbers<[1], [0], [0], [1], [0, 0, 1, 1], [], []>} : vector<384x384xf32>, vector<384x256xf32>, vector<384x256xf32> -> vector<384x256xf32>
    %17 = arith.addf %16, %15 : vector<384x256xf32>
    %18 = vector.extract_strided_slice %8 {offsets = [0, 384], sizes = [384, 256], strides = [1, 1]} : vector<384x640xf32> to vector<384x256xf32>
    %19 = arith.addf %17, %18 : vector<384x256xf32>
    %20 = vector.extract_strided_slice %19 {offsets = [0, 0], sizes = [384, 128], strides = [1, 1]} : vector<384x256xf32> to vector<384x128xf32>
    %21 = arith.negf %20 : vector<384x128xf32>
    %22 = math.exp %21 : vector<384x128xf32>
    %cst_13 = arith.constant 1.000000e+00 : f32
    %23 = vector.broadcast %cst_13 : f32 to vector<384x128xf32>
    %24 = arith.addf %23, %22 : vector<384x128xf32>
    %25 = arith.divf %23, %24 : vector<384x128xf32>
    %26 = vector.extract_strided_slice %19 {offsets = [0, 128], sizes = [384, 128], strides = [1, 1]} : vector<384x256xf32> to vector<384x128xf32>
    %27 = math.tanh %26 : vector<384x128xf32>
    %28 = arith.mulf %25, %27 : vector<384x128xf32>
    %c0_14 = arith.constant 0 : index
    %c0_15 = arith.constant 0 : index
    %29 = vector.load %arg3[%c0_14, %c0_15] : memref<24x384xf32, #tpu.memory_space<vmem>>, vector<24x384xf32>
    %cst_16 = arith.constant dense<0.000000e+00> : vector<24x128xf32>
    %30 = tpu.matmul %29, %28, %cst_16 {dimension_numbers = #tpu.dot_dimension_numbers<[1], [0], [0], [1], [0, 0, 1, 1], [], []>} : vector<24x384xf32>, vector<384x128xf32>, vector<24x128xf32> -> vector<24x128xf32>
    %31 = math.tanh %30 : vector<24x128xf32>
    %c0_17 = arith.constant 0 : index
    %c0_18 = arith.constant 0 : index
    %32 = vector.load %arg7[%c0_17, %c0_18] : memref<128x64xf32, #tpu.memory_space<vmem>>, vector<128x64xf32>
    %cst_19 = arith.constant dense<0.000000e+00> : vector<24x64xf32>
    %33 = tpu.matmul %31, %32, %cst_19 {dimension_numbers = #tpu.dot_dimension_numbers<[1], [0], [0], [1], [0, 0, 1, 1], [], []>} : vector<24x128xf32>, vector<128x64xf32>, vector<24x64xf32> -> vector<24x64xf32>
    %c0_20 = arith.constant 0 : index
    %c0_21 = arith.constant 0 : index
    %34 = vector.load %arg8[%c0_20, %c0_21] : memref<1x64xf32, #tpu.memory_space<vmem>>, vector<1x64xf32>
    %35 = vector.broadcast %34 : vector<1x64xf32> to vector<24x64xf32>
    %36 = arith.addf %33, %35 : vector<24x64xf32>
    %37 = math.tanh %36 : vector<24x64xf32>
    %c0_22 = arith.constant 0 : index
    %c0_23 = arith.constant 0 : index
    %38 = vector.load %arg9[%c0_22, %c0_23] : memref<1x64xf32, #tpu.memory_space<vmem>>, vector<1x64xf32>
    %39 = tpu.transpose %37, [1, 0] : vector<24x64xf32> -> vector<64x24xf32>
    %cst_24 = arith.constant dense<0.000000e+00> : vector<1x24xf32>
    %40 = tpu.matmul %38, %39, %cst_24 {dimension_numbers = #tpu.dot_dimension_numbers<[1], [0], [0], [1], [0, 0, 1, 1], [], []>} : vector<1x64xf32>, vector<64x24xf32>, vector<1x24xf32> -> vector<1x24xf32>
    %c0_25 = arith.constant 0 : index
    %c0_26 = arith.constant 0 : index
    %41 = vector.load %arg10[%c0_25, %c0_26] : memref<1x1xf32, #tpu.memory_space<vmem>>, vector<1x1xf32>
    %42 = vector.broadcast %41 : vector<1x1xf32> to vector<1x24xf32>
    %43 = arith.addf %40, %42 : vector<1x24xf32>
    %c0_27 = arith.constant 0 : index
    %c0_28 = arith.constant 0 : index
    %c0_29 = arith.constant 0 : index
    %44 = vector.load %arg11[%c0_27, %c0_28, %c0_29] : memref<1x1x24xf32, #tpu.memory_space<vmem>>, vector<1x1x24xf32>
    %45 = vector.shape_cast %44 : vector<1x1x24xf32> to vector<1x24xf32>
    %46 = vector.shape_cast %43 : vector<1x24xf32> to vector<1x1x24xf32>
    tpu.vector_store %arg11[%c0_27, %c0_28, %c0_29], %46 {strides = array<i32>} : memref<1x1x24xf32, #tpu.memory_space<vmem>>, vector<1x1x24xf32>,
    return
  }
  func.func @transform_0(%arg0: i32) -> (i32, i32) {
    %c0_i32 = arith.constant 0 : i32
    %c0_i32_0 = arith.constant 0 : i32
    return %arg0, %c0_i32 : i32, i32
  }
  func.func @transform_1(%arg0: i32) -> (i32, i32, i32) {
    %c0_i32 = arith.constant 0 : i32
    %c0_i32_0 = arith.constant 0 : i32
    %c0_i32_1 = arith.constant 0 : i32
    return %arg0, %c0_i32, %c0_i32_0 : i32, i32, i32
  }
  func.func @transform_2(%arg0: i32) -> (i32, i32) {
    %c0_i32 = arith.constant 0 : i32
    %c0_i32_0 = arith.constant 0 : i32
    %c0_i32_1 = arith.constant 0 : i32
    return %c0_i32, %c0_i32_0 : i32, i32
  }
  func.func @transform_3(%arg0: i32) -> (i32, i32) {
    %c0_i32 = arith.constant 0 : i32
    %c0_i32_0 = arith.constant 0 : i32
    %c0_i32_1 = arith.constant 0 : i32
    return %c0_i32, %c0_i32_0 : i32, i32
  }
  func.func @transform_4(%arg0: i32) -> (i32, i32) {
    %c0_i32 = arith.constant 0 : i32
    %c0_i32_0 = arith.constant 0 : i32
    %c0_i32_1 = arith.constant 0 : i32
    return %c0_i32, %c0_i32_0 : i32, i32
  }
  func.func @transform_5(%arg0: i32) -> (i32, i32) {
    %c0_i32 = arith.constant 0 : i32
    %c0_i32_0 = arith.constant 0 : i32
    %c0_i32_1 = arith.constant 0 : i32
    return %c0_i32, %c0_i32_0 : i32, i32
  }
  func.func @transform_6(%arg0: i32) -> (i32, i32) {
    %c0_i32 = arith.constant 0 : i32
    %c0_i32_0 = arith.constant 0 : i32
    %c0_i32_1 = arith.constant 0 : i32
    return %c0_i32, %c0_i32_0 : i32, i32
  }
  func.func @transform_7(%arg0: i32) -> (i32, i32) {
    %c0_i32 = arith.constant 0 : i32
    %c0_i32_0 = arith.constant 0 : i32
    %c0_i32_1 = arith.constant 0 : i32
    return %c0_i32, %c0_i32_0 : i32, i32
  }
  func.func @transform_8(%arg0: i32) -> (i32, i32) {
    %c0_i32 = arith.constant 0 : i32
    %c0_i32_0 = arith.constant 0 : i32
    %c0_i32_1 = arith.constant 0 : i32
    return %c0_i32, %c0_i32_0 : i32, i32
  }
  func.func @transform_9(%arg0: i32) -> (i32, i32) {
    %c0_i32 = arith.constant 0 : i32
    %c0_i32_0 = arith.constant 0 : i32
    %c0_i32_1 = arith.constant 0 : i32
    return %c0_i32, %c0_i32_0 : i32, i32
  }
  func.func @transform_10(%arg0: i32) -> (i32, i32, i32) {
    %c0_i32 = arith.constant 0 : i32
    %c0_i32_0 = arith.constant 0 : i32
    %c0_i32_1 = arith.constant 0 : i32
    return %arg0, %c0_i32, %c0_i32_0 : i32, i32, i32
  }
}

</mosaic_0001>

<bundles_post_ra>
// kernel: tpu_custom_call.1
= control target key start
LH: loop header
LB: loop body
LE: loop exit
PB: predicated region body
PF: predicated region fallthrough
CT: control target
= control target key end

     0   :  { %s9842_s0 = inlined_call_operand.vmem [shape: f32[768,8], index: 0, kind: input, shape index: {}]   ;;  %s9843_s1 = inlined_call_operand.hbm [shape: bf16[2,384,384], index: 1, kind: input, shape index: {}]   ;;  %s9844_s2 = inlined_call_operand.vmem [shape: f32[24,384], index: 2, kind: input, shape index: {}]   ;;  %s9845_s3 = inlined_call_operand.vmem [shape: f32[8,640], index: 3, kind: input, shape index: {}]   ;;  %s9846_s4 = inlined_call_operand.vmem [shape: f32[1,640], index: 4, kind: input, shape index: {}]   ;;  %s9847_s5 = inlined_call_operand.vmem [shape: f32[128,256], index: 5, kind: input, shape index: {}]   ;;  %s9848_s6 = inlined_call_operand.vmem [shape: f32[128,64], index: 6, kind: input, shape index: {}]   ;;  %s9849_s7 = inlined_call_operand.vmem [shape: f32[1,64], index: 7, kind: input, shape index: {}]   ;;  %s9850_s8 = inlined_call_operand.vmem [shape: f32[1,64], index: 8, kind: input, shape index: {}]   ;;  %s9851_s9 = inlined_call_operand.<no memory space> [shape: f32[1,1], index: 9, kind: input, shape index: {}]   ;;  %s9852_s10 = inlined_call_operand.hbm [shape: f32[2,1,24], index: 10, kind: output, shape index: {}]  }
   0x1   :  { %v15_v0 = vstv %s9851_s9 }
   0x2   :  { %16 = vst [vmem:[#allocation2] sm:$0x1] %v15_v0 }
   0x3   :  { %17 = vsyncpa [#allocation4], 0 }
   0x4   :  { %19 = vsyncpa [#allocation4 + $0x1], 0 }
   0x5   :  { %20 = vsyncpa [#allocation5], 0 }
   0x6   :  { %22 = vsyncpa [#allocation5 + $0x1], 0  ;;  %s6202_s15 = smov 0   ;;  %s6204_s16 = smov 0  }
   0x7   :  { %s6206_s17 = smov 0   ;;  %s6208_s18 = smov 0  }
   0x8 LB: > { %10104 = sst [smem:[#allocation9_spill]] %s6130_s17  ;;  %s6223_s9 = sadd.s32 4294967295, %s6134_s18   ;;  %s6134_s18 = sphi %s6208_s18, %s11050_s18   ;;  %s6130_s17 = sphi %s6206_s17, %s11047_s17   ;;  %s6126_s16 = sphi %s6204_s16, %s11049_s16   ;;  %s6122_s15 = sphi %s6202_s15, %s11048_s15  }
   0x9   : > { %s4523_s19 = sadd.s32 4294967294, %s6134_s18   ;;  %s6227_s20 = sadd.s32 1, %s6134_s18  }
   0xa   : > { %s61_s21 = sadd.s32 1, %s6130_s17  ;;  %s58_s22 = ssub.s32 %s6134_s18, %s6227_s20 }
   0xb   : > { %p68_p0 = scmp.ne.s32.totalorder %s6130_s17, %s6126_s16  ;;  %p59_p1 = scmp.eq.s32.totalorder %s58_s22, 0 }
   0xc   : > { %p69_p2 = scmp.eq.s32.totalorder %s6134_s18, 0  ;;  %p74_p3 = scmp.ne.s32.totalorder %s6126_s16, %s6122_s15 }
   0xd   : > { %p75_p4 = scmp.eq.s32.totalorder %s6223_s9, 0  ;;  %p266_p7 = scmp.eq.s32.totalorder %s6223_s9, 1 }
   0xe   : > { %s6239_s23 = scalar_select %p59_p1, %s6130_s17, %s61_s21  }
   0xf   : > { %p70_p5 = por %p69_p2, %p68_p0  ;;  %p6241_p6 = por %p75_p4, %p74_p3 }
  0x10   : > { %10105 = sst [smem:[#allocation10_spill]] %s6239_s23  ;;  %p272_p8 = scmp.eq.s32.totalorder %s4523_s19, 1 }
  0x11   : > { %p5695_p10 = scmp.lt.s32.totalorder %s6134_s18, 2  ;;  %p6248_p11 = por %p266_p7, %p68_p0 }
  0x12   : > { %p6252_p12 = por %p272_p8, %p74_p3  ;;  %s325_s27 = sand.u32 1, %s6130_s17  }
  0x13   : > { %s10107_s25 = scalar_select %p6248_p11, 1, 0 }
  0x14   : > { %s10108_s26 = scalar_select %p6252_p12, 1, 0 }
  0x15   : > { %s5681_s28 = smul.u32 9216, %s6134_s18  ;;  %p6263_p13 = pnand %p5695_p10, %p70_p5 }
  0x16   : > { %s5680_s29 = smul.u32 576, %s325_s27  ;;  %s6269_s21 = scalar_lea.sflag [#allocation4], %s325_s27 }
  0x17   : > { %s6261_s12 = scalar_lea.hbm %s9843_s1, %s5681_s28  ;;  %p6040_p1 = pneg %p6263_p13 }
  0x18   : > { %s329_s14 = scalar_lea.vmem [#allocation3], %s5680_s29  ;;  %s6038_s22 = scalar_lea.hbm %s6261_s12, 9216 }
  0x19   : > { %s336_s19 = sshll.u32 %s329_s14, 4  ;;  %p6039_p0 = scmp.ne.s32.totalorder %s6261_s12, %s6038_s22  ;;  %s6267_s19 = int_to_ptr.vmem [resolvable:$true] %s336_s19 }
  0x1a   : > { %s6043_s11 = scalar_lea.hbm %s9843_s1, 18432  ;;  %p6044_p4 = scmp.lt.u32.totalorder %s6261_s12, %s9843_s1 }
  0x1b   : > { %p6041_p2 = pnand %p6040_p1, %p6039_p0  ;;  %p6045_p5 = scmp.lt.u32.totalorder %s6043_s11, %s6038_s22 }
  0x1c   : > { %p6047_p8 = scmp.lt.u32.totalorder %s6038_s22, %s6261_s12 }
  0x1d   : > { %p6042_p3 = pneg %p6041_p2  ;;  %p6046_p7 = por %p6045_p5, %p6044_p4 }
  0x1f   : > { %p6048_p10 = por %p6047_p8, %p6046_p7 }
  0x21   : > { %p6049_p9 = pnand %p6048_p10, %p6042_p3 }
  0x23   : > { %6052 = shalt.err (!%p6049_p9)
}
  0x24   : > { %s6053_s27 = scalar_lea.vmem %s6267_s19, 9216  ;;  %s6136_s29 = smov [#allocation3]  }
  0x25   : > { %p6054_p0 = scmp.ne.s32.totalorder %s6267_s19, %s6053_s27  ;;  %s6058_s14 = sshll.u32 %s6136_s29, 4  ;;  %s6059_s14 = int_to_ptr.vmem [resolvable:$false] %s6058_s14 }
  0x26   : > { %s6060_s17 = scalar_lea.vmem %s6059_s14, 18432  ;;  %p6061_p11 = scmp.lt.s32.totalorder %s6267_s19, %s6059_s14 }
  0x27   : > { %p6056_p2 = pnand %p6054_p0, %p6040_p1  ;;  %p6062_p4 = scmp.lt.s32.totalorder %s6060_s17, %s6053_s27 }
  0x29   : > { %p6057_p12 = pneg %p6056_p2  ;;  %p6063_p5 = por %p6062_p4, %p6061_p11 }
  0x2b   : > { %p6064_p7 = pnand %p6063_p5, %p6057_p12 }
  0x2d   : > { %6067 = shalt.err (!%p6064_p7)
}
  0x2e   : > { %s6137_s23 = smov 192   ;;  %s6138_s22 = smov 12  }
  0x2f   : > { %5690 = dma.hbm_to_vmem [thread:$0]  (!%p6263_p13), %s6261_s12, 9216, %s6267_s19, %s6269_s21, %s6137_s23, %s6137_s23, %s6138_s22  }
  0x30   : > { %p4527_p9 = scmp.ge.s32.totalorder %s6134_s18, 1  ;;  %p344_p1 = scmp.lt.s32.totalorder %s6134_s18, 3 }
  0x32   : > { %p345_p3 = pnand %p4527_p9, %p344_p1 }
  0x34   : > { %348 = sbr.rel (%p345_p3) target bundleno = 2364 (0x93c), region = 60 }
  0x3b   : > { %s6300_s28 = sand.u32 1, %s6126_s16  }
  0x3c   : > { %s5682_s30 = smul.u32 576, %s6300_s28  ;;  %s351_s11 = scalar_lea.sflag [#allocation4], %s6300_s28 }
  0x3e   : > { %s6304_s27 = scalar_lea.vmem [#allocation3], %s5682_s30 }
  0x3f   : > { %6113 = dma.done.wait (%p6241_p6), %s351_s11, 9216  }
  0x40   : > { %6115 = vsyncadd (%p6241_p6), %s351_s11, 4294958080  ;;  %s395_s12 = smul.u32 48, %s6223_s9  ;;  %v9863_v1 = vmov 0.0   ;;  %v690_v2 = vld [vmem:[%s9845_s3 + $0x8] sm:$0xff]  ;;  %v689_v3 = vld [vmem:[%s9845_s3] sm:$0xff]  ;;  %vm721_vm0 = vcmask 64512   ;;  %v696_v56 = vlaneseq }
  0x41   : > { %930 = vmatprep.mubr.f32.mxu0 %v9863_v1  ;;  %1367 = vmatprep.mubr.f32.mxu1 %v9863_v1  ;;  %v692_v14 = vld [vmem:[%s9845_s3 + $0x18] sm:$0xff]  ;;  %v691_v15 = vld [vmem:[%s9845_s3 + $0x10] sm:$0xff]  ;;  %v9857_v34 = vmov 0.0|0.0   ;;  %v693_v55 = vld [vmem:[%s9845_s3 + $0x20] sm:$0xff]  ;;  %vm6141_vm1 = vmmov 0   ;;  %vm4347_vm2 = vcmask 523264  }
  0x42   : > { %p396_p11 = scmp.lt.s32.totalorder %s395_s12, 95  ;;  %866 = vmatprep.subr.mxu0 %v690_v2  ;;  %5486 = vmatprep.subr.mxu1 %v692_v14  ;;  %v6732_v57 = vshrl.u32 %v696_v56, 7  ;;  %v694_v59 = vld [vmem:[%s9846_s4] sm:$0x1f]  ;;  %vm5484_vm3 = vmpackc.low %vm4347_vm2, %vm4347_vm2  ;;  %s4726_s19 = sshll.u32 %s6223_s9, 4  ;;  %vm4430_vm4 = vcmask 188416  }
  0x43   : > { %867 = vmatpush1.msra.mxu0 %v689_v3  ;;  %5487 = vmatpush1.msra.mxu1 %v691_v15  ;;  %v6745_v61 = vld [vmem:[%s6304_s27] sm:$0xff]  ;;  %s394_s21 = scalar_lea.vmem [#allocation6], %s6300_s28  ;;  %s9798_s17 = scalar_lea.hbm %s9852_s10, %s4726_s19 }
  0x44   : > { %s11052_s12 = smov (!%p396_p11, %s395_s12), 95  ;;  %1219 = vmatprep.subr.mxu0 %v692_v14  ;;  %5194 = vmatprep.subr.bf16.mxu1 %v9857_v34  ;;  %10110 = vst [vmem:[#allocation11_spill] sm:$0xff] %v6732_v57  ;;  %v9855_v58 = vsub.s32 0, %v6732_v57  ;;  %10111 = vst [vmem:[#allocation12_spill] sm:$0xff] %v6745_v61  ;;  %v9856_v0 = vunpack.c.h.bf16 %v6745_v61  ;;  %s4445_s29 = sshll.u32 %s394_s21, 4  ;;  %s9800_s29 = int_to_ptr.vmem [resolvable:$true] %s4445_s29 }
  0x45   : > { %s4528_s13 = sshll.u32 %s11052_s12, 3  ;;  %p11043_p12 = scmp.ne.s32.totalorder %s10107_s25, 0 }
  0x46   : > { %s6322_s23 = scalar_lea.vmem %s9842_s0, %s4528_s13  ;;  %v6749_v62 = vrot.slane %v694_v59, %v9855_v58  ;;  %s6143_s9 = smov [#allocation6]  }
  0x47   : > { %v6325_v4 = vld [vmem:[%s6322_s23] sm:$0xff]  ;;  %v6331_v5 = vld [vmem:[%s6322_s23 + $0x8] sm:$0xff]  ;;  %v6337_v6 = vld [vmem:[%s6322_s23 + $0x10] sm:$0xff]  ;;  %s6072_s22 = sshll.u32 %s6143_s9, 4  ;;  %s6073_s22 = int_to_ptr.vmem [resolvable:$false] %s6072_s22 }
  0x48   : > { %4529 = vmatmul.mubr.msk.f32.vlgmr.msra.gmra.mrb[0].mxu0 %vm721_vm0, %v6325_v4  ;;  %v6343_v7 = vld [vmem:[%s6322_s23 + $0x18] sm:$0xff]  ;;  %v6349_v8 = vld [vmem:[%s6322_s23 + $0x20] sm:$0xff]  ;;  %v6355_v9 = vld [vmem:[%s6322_s23 + $0x28] sm:$0xff]  ;;  %s6074_s30 = scalar_lea.vmem %s6073_s22, 32  ;;  %p6075_p10 = scmp.lt.s32.totalorder %s9800_s29, %s6073_s22 }
  0x49   : > { %936 = vmatprep.mubr.f32.mxu0 %v9863_v1  ;;  %v6361_v10 = vld [vmem:[%s6322_s23 + $0x30] sm:$0xff]  ;;  %v6367_v11 = vld [vmem:[%s6322_s23 + $0x38] sm:$0xff]  ;;  %v6373_v12 = vld [vmem:[%s6322_s23 + $0x40] sm:$0xff]  ;;  %1220 = vmatpush1.msra.mxu0 %v691_v15 }
  0x4a   : > { %v6379_v13 = vld [vmem:[%s6322_s23 + $0x48] sm:$0xff]  ;;  %v6391_v16 = vld [vmem:[%s6322_s23 + $0x50] sm:$0xff]  ;;  %v6402_v18 = vld [vmem:[%s6322_s23 + $0x58] sm:$0xff]  ;;  %4925 = vmatprep.subr.mxu0 %v693_v55 }
  0x4b   : > { %v6394_v17 = vld [vmem:[%s6322_s23 + $0x70] sm:$0xff]  ;;  %v6406_v19 = vld [vmem:[%s6322_s23 + $0x78] sm:$0xff]  ;;  %v6414_v20 = vld [vmem:[%s6322_s23 + $0x60] sm:$0xff] }
  0x4c   : > { %4530 = vmatmul.mubr.msk.f32.gmra.mrb[2].mxu0 %vm721_vm0, %v6331_v5  ;;  %4591 = vmatmul.mubr.msk.f32.vlgmr.msra.gmra.mrb[0].mxu1 %vm721_vm0, %v6394_v17  ;;  %v6418_v21 = vld [vmem:[%s6322_s23 + $0x80] sm:$0xff]  ;;  %v6426_v22 = vld [vmem:[%s6322_s23 + $0x68] sm:$0xff]  ;;  %v6439_v24 = vld [vmem:[%s6322_s23 + $0x90] sm:$0xff] }
  0x4d   : > { %942 = vmatprep.mubr.f32.mxu0 %v9863_v1  ;;  %1373 = vmatprep.mubr.f32.mxu1 %v9863_v1  ;;  %v6430_v23 = vld [vmem:[%s6322_s23 + $0x88] sm:$0xff]  ;;  %v6448_v25 = vld [vmem:[%s6322_s23 + $0x98] sm:$0xff]  ;;  %v6457_v26 = vld [vmem:[%s6322_s23 + $0xa0] sm:$0xff] }
  0x4e   : > { %v6466_v27 = vld [vmem:[%s6322_s23 + $0xa8] sm:$0xff]  ;;  %v6475_v28 = vld [vmem:[%s6322_s23 + $0xb0] sm:$0xff]  ;;  %v6484_v29 = vld [vmem:[%s6322_s23 + $0xb8] sm:$0xff] }
  0x4f   : > { %v6493_v30 = vld [vmem:[%s6322_s23 + $0xc0] sm:$0xff]  ;;  %v6502_v31 = vld [vmem:[%s6322_s23 + $0xc8] sm:$0xff]  ;;  %v6511_v32 = vld [vmem:[%s6322_s23 + $0xd0] sm:$0xff] }
  0x50   : > { %4531 = vmatmul.mubr.msk.f32.gmra.mrb[4].mxu0 %vm721_vm0, %v6337_v6  ;;  %4592 = vmatmul.mubr.msk.f32.gmra.mrb[2].mxu1 %vm721_vm0, %v6406_v19  ;;  %v6520_v33 = vld [vmem:[%s6322_s23 + $0xd8] sm:$0xff]  ;;  %v6530_v35 = vld [vmem:[%s6322_s23 + $0xe0] sm:$0xff]  ;;  %v6539_v36 = vld [vmem:[%s6322_s23 + $0xe8] sm:$0xff] }
  0x51   : > { %948 = vmatprep.mubr.f32.mxu0 %v9863_v1  ;;  %1379 = vmatprep.mubr.f32.mxu1 %v9863_v1  ;;  %v6548_v37 = vld [vmem:[%s6322_s23 + $0xf0] sm:$0xff]  ;;  %v6557_v38 = vld [vmem:[%s6322_s23 + $0xf8] sm:$0xff]  ;;  %v6566_v39 = vld [vmem:[%s6322_s23 + $0x100] sm:$0xff] }
  0x52   : > { %v6575_v40 = vld [vmem:[%s6322_s23 + $0x108] sm:$0xff]  ;;  %v6584_v41 = vld [vmem:[%s6322_s23 + $0x110] sm:$0xff]  ;;  %v6593_v42 = vld [vmem:[%s6322_s23 + $0x118] sm:$0xff] }
  0x53   : > { %v6602_v43 = vld [vmem:[%s6322_s23 + $0x120] sm:$0xff]  ;;  %v6611_v44 = vld [vmem:[%s6322_s23 + $0x128] sm:$0xff]  ;;  %v6620_v45 = vld [vmem:[%s6322_s23 + $0x130] sm:$0xff] }
  0x54   : > { %4532 = vmatmul.mubr.msk.f32.gmra.mrb[6].mxu0 %vm721_vm0, %v6343_v7  ;;  %4593 = vmatmul.mubr.msk.f32.gmra.mrb[4].mxu1 %vm721_vm0, %v6418_v21  ;;  %v6629_v46 = vld [vmem:[%s6322_s23 + $0x138] sm:$0xff]  ;;  %v6638_v47 = vld [vmem:[%s6322_s23 + $0x140] sm:$0xff]  ;;  %v6647_v48 = vld [vmem:[%s6322_s23 + $0x148] sm:$0xff] }
  0x55   : > { %954 = vmatprep.mubr.f32.mxu0 %v9863_v1  ;;  %1385 = vmatprep.mubr.f32.mxu1 %v9863_v1  ;;  %v6656_v49 = vld [vmem:[%s6322_s23 + $0x150] sm:$0xff]  ;;  %v6665_v50 = vld [vmem:[%s6322_s23 + $0x158] sm:$0xff]  ;;  %v6674_v51 = vld [vmem:[%s6322_s23 + $0x160] sm:$0xff] }
  0x56   : > { %v6683_v52 = vld [vmem:[%s6322_s23 + $0x168] sm:$0xff]  ;;  %v6692_v53 = vld [vmem:[%s6322_s23 + $0x170] sm:$0xff]  ;;  %v6701_v54 = vld [vmem:[%s6322_s23 + $0x178] sm:$0xff]  ;;  %s4433_s23 = scalar_lea.sflag [#allocation5], %s6300_s28 }
  0x58   : > { %4533 = vmatmul.mubr.msk.f32.gmra.mrb[8].mxu0 %vm721_vm0, %v6349_v8  ;;  %4594 = vmatmul.mubr.msk.f32.gmra.mrb[6].mxu1 %vm721_vm0, %v6430_v23 }
  0x59   : > { %960 = vmatprep.mubr.f32.mxu0 %v9863_v1  ;;  %1391 = vmatprep.mubr.f32.mxu1 %v9863_v1 }
  0x5c   : > { %4534 = vmatmul.mubr.msk.f32.gmra.mrb[10].mxu0 %vm721_vm0, %v6355_v9  ;;  %4595 = vmatmul.mubr.msk.f32.gmra.mrb[8].mxu1 %vm721_vm0, %v6439_v24 }
  0x5d   : > { %966 = vmatprep.mubr.f32.mxu0 %v9863_v1  ;;  %1397 = vmatprep.mubr.f32.mxu1 %v9863_v1 }
  0x60   : > { %4535 = vmatmul.mubr.msk.f32.gmra.mrb[12].mxu0 %vm721_vm0, %v6361_v10  ;;  %4596 = vmatmul.mubr.msk.f32.gmra.mrb[10].mxu1 %vm721_vm0, %v6448_v25 }
  0x61   : > { %972 = vmatprep.mubr.f32.mxu0 %v9863_v1  ;;  %1403 = vmatprep.mubr.f32.mxu1 %v9863_v1 }
  0x64   : > { %4536 = vmatmul.mubr.msk.f32.gmra.mrb[14].mxu0 %vm721_vm0, %v6367_v11  ;;  %4597 = vmatmul.mubr.msk.f32.gmra.mrb[12].mxu1 %vm721_vm0, %v6457_v26 }
  0x65   : > { %978 = vmatprep.mubr.f32.mxu0 %v9863_v1  ;;  %1409 = vmatprep.mubr.f32.mxu1 %v9863_v1 }
  0x68   : > { %4537 = vmatmul.mubr.msk.f32.gmra.mrb[16].mxu0 %vm721_vm0, %v6373_v12  ;;  %4598 = vmatmul.mubr.msk.f32.gmra.mrb[14].mxu1 %vm721_vm0, %v6466_v27 }
  0x69   : > { %984 = vmatprep.mubr.f32.mxu0 %v9863_v1  ;;  %1415 = vmatprep.mubr.f32.mxu1 %v9863_v1 }
  0x6c   : > { %4538 = vmatmul.mubr.msk.f32.gmra.mrb[18].mxu0 %vm721_vm0, %v6379_v13  ;;  %4599 = vmatmul.mubr.msk.f32.gmra.mrb[16].mxu1 %vm721_vm0, %v6475_v28 }
  0x6d   : > { %990 = vmatprep.mubr.f32.mxu0 %v9863_v1  ;;  %1421 = vmatprep.mubr.f32.mxu1 %v9863_v1 }
  0x70   : > { %4539 = vmatmul.mubr.msk.f32.gmra.mrb[20].mxu0 %vm721_vm0, %v6391_v16  ;;  %4600 = vmatmul.mubr.msk.f32.gmra.mrb[18].mxu1 %vm721_vm0, %v6484_v29 }
  0x71   : > { %996 = vmatprep.mubr.f32.mxu0 %v9863_v1  ;;  %1427 = vmatprep.mubr.f32.mxu1 %v9863_v1 }
  0x74   : > { %4540 = vmatmul.mubr.msk.f32.gmra.mrb[22].mxu0 %vm721_vm0, %v6402_v18  ;;  %4601 = vmatmul.mubr.msk.f32.gmra.mrb[20].mxu1 %vm721_vm0, %v6493_v30 }
  0x75   : > { %1002 = vmatprep.mubr.f32.mxu0 %v9863_v1  ;;  %1433 = vmatprep.mubr.f32.mxu1 %v9863_v1 }
  0x78   : > { %4541 = vmatmul.mubr.msk.f32.gmra.mrb[24].mxu0 %vm721_vm0, %v6414_v20  ;;  %4602 = vmatmul.mubr.msk.f32.gmra.mrb[22].mxu1 %vm721_vm0, %v6502_v31 }
  0x79   : > { %1008 = vmatprep.mubr.f32.mxu0 %v9863_v1  ;;  %1439 = vmatprep.mubr.f32.mxu1 %v9863_v1 }
  0x7c   : > { %4542 = vmatmul.mubr.msk.f32.gmra.mrb[26].mxu0 %vm721_vm0, %v6426_v22  ;;  %4603 = vmatmul.mubr.msk.f32.gmra.mrb[24].mxu1 %vm721_vm0, %v6511_v32 }
  0x7d   : > { %1014 = vmatprep.mubr.f32.mxu0 %v9863_v1  ;;  %1445 = vmatprep.mubr.f32.mxu1 %v9863_v1 }
  0x80   : > { %4543 = vmatmul.mubr.msk.f32.gmra.mrb[28].mxu0 %vm721_vm0, %v6394_v17  ;;  %4604 = vmatmul.mubr.msk.f32.gmra.mrb[26].mxu1 %vm721_vm0, %v6520_v33 }
  0x81   : > { %1020 = vmatprep.mubr.f32.mxu0 %v9863_v1  ;;  %1451 = vmatprep.mubr.f32.mxu1 %v9863_v1 }
  0x84   : > { %4544 = vmatmul.mubr.msk.f32.gmra.mrb[30].mxu0 %vm721_vm0, %v6406_v19  ;;  %4605 = vmatmul.mubr.msk.f32.gmra.mrb[28].mxu1 %vm721_vm0, %v6530_v35 }
  0x85   : > { %1026 = vmatprep.mubr.f32.mxu0 %v9863_v1  ;;  %1457 = vmatprep.mubr.f32.mxu1 %v9863_v1 }
  0x88   : > { %4545 = vmatmul.mubr.msk.f32.gmra.mrb[32].mxu0 %vm721_vm0, %v6418_v21  ;;  %4606 = vmatmul.mubr.msk.f32.gmra.mrb[30].mxu1 %vm721_vm0, %v6539_v36 }
  0x89   : > { %1032 = vmatprep.mubr.f32.mxu0 %v9863_v1  ;;  %1463 = vmatprep.mubr.f32.mxu1 %v9863_v1 }
  0x8c   : > { %4546 = vmatmul.mubr.msk.f32.gmra.mrb[34].mxu0 %vm721_vm0, %v6430_v23  ;;  %4607 = vmatmul.mubr.msk.f32.gmra.mrb[32].mxu1 %vm721_vm0, %v6548_v37 }
  0x8d   : > { %1038 = vmatprep.mubr.f32.mxu0 %v9863_v1  ;;  %1469 = vmatprep.mubr.f32.mxu1 %v9863_v1 }
  0x90   : > { %4547 = vmatmul.mubr.msk.f32.gmra.mrb[36].mxu0 %vm721_vm0, %v6439_v24  ;;  %4608 = vmatmul.mubr.msk.f32.gmra.mrb[34].mxu1 %vm721_vm0, %v6557_v38 }
  0x91   : > { %1044 = vmatprep.mubr.f32.mxu0 %v9863_v1  ;;  %1475 = vmatprep.mubr.f32.mxu1 %v9863_v1 }
  0x94   : > { %4548 = vmatmul.mubr.msk.f32.gmra.mrb[38].mxu0 %vm721_vm0, %v6448_v25  ;;  %4609 = vmatmul.mubr.msk.f32.gmra.mrb[36].mxu1 %vm721_vm0, %v6566_v39 }
  0x95   : > { %1050 = vmatprep.mubr.f32.mxu0 %v9863_v1  ;;  %1481 = vmatprep.mubr.f32.mxu1 %v9863_v1 }
  0x98   : > { %4549 = vmatmul.mubr.msk.f32.gmra.mrb[40].mxu0 %vm721_vm0, %v6457_v26  ;;  %4610 = vmatmul.mubr.msk.f32.gmra.mrb[38].mxu1 %vm721_vm0, %v6575_v40 }
  0x99   : > { %1056 = vmatprep.mubr.f32.mxu0 %v9863_v1  ;;  %1487 = vmatprep.mubr.f32.mxu1 %v9863_v1 }
  0x9c   : > { %4550 = vmatmul.mubr.msk.f32.gmra.mrb[42].mxu0 %vm721_vm0, %v6466_v27  ;;  %4611 = vmatmul.mubr.msk.f32.gmra.mrb[40].mxu1 %vm721_vm0, %v6584_v41 }
  0x9d   : > { %1062 = vmatprep.mubr.f32.mxu0 %v9863_v1  ;;  %1493 = vmatprep.mubr.f32.mxu1 %v9863_v1 }
  0xa0   : > { %4551 = vmatmul.mubr.msk.f32.gmra.mrb[44].mxu0 %vm721_vm0, %v6475_v28  ;;  %4612 = vmatmul.mubr.msk.f32.gmra.mrb[42].mxu1 %vm721_vm0, %v6593_v42 }
  0xa1   : > { %1068 = vmatprep.mubr.f32.mxu0 %v9863_v1  ;;  %1499 = vmatprep.mubr.f32.mxu1 %v9863_v1 }
  0xa4   : > { %4552 = vmatmul.mubr.msk.f32.gmra.mrb[46].mxu0 %vm721_vm0, %v6484_v29  ;;  %4613 = vmatmul.mubr.msk.f32.gmra.mrb[44].mxu1 %vm721_vm0, %v6602_v43 }
  0xa5   : > { %1074 = vmatprep.mubr.f32.mxu0 %v9863_v1  ;;  %1505 = vmatprep.mubr.f32.mxu1 %v9863_v1 }
  0xa8   : > { %4553 = vmatmul.mubr.msk.f32.gmra.mrb[48].mxu0 %vm721_vm0, %v6493_v30  ;;  %4614 = vmatmul.mubr.msk.f32.gmra.mrb[46].mxu1 %vm721_vm0, %v6611_v44 }
  0xa9   : > { %1080 = vmatprep.mubr.f32.mxu0 %v9863_v1  ;;  %1511 = vmatprep.mubr.f32.mxu1 %v9863_v1 }
  0xac   : > { %4554 = vmatmul.mubr.msk.f32.gmra.mrb[50].mxu0 %vm721_vm0, %v6502_v31  ;;  %4615 = vmatmul.mubr.msk.f32.gmra.mrb[48].mxu1 %vm721_vm0, %v6620_v45 }
  0xad   : > { %1086 = vmatprep.mubr.f32.mxu0 %v9863_v1  ;;  %1517 = vmatprep.mubr.f32.mxu1 %v9863_v1 }
  0xb0   : > { %4555 = vmatmul.mubr.msk.f32.gmra.mrb[52].mxu0 %vm721_vm0, %v6511_v32  ;;  %4616 = vmatmul.mubr.msk.f32.gmra.mrb[50].mxu1 %vm721_vm0, %v6629_v46 }
  0xb1   : > { %1092 = vmatprep.mubr.f32.mxu0 %v9863_v1  ;;  %1523 = vmatprep.mubr.f32.mxu1 %v9863_v1 }
  0xb4   : > { %4556 = vmatmul.mubr.msk.f32.gmra.mrb[54].mxu0 %vm721_vm0, %v6520_v33  ;;  %4617 = vmatmul.mubr.msk.f32.gmra.mrb[52].mxu1 %vm721_vm0, %v6638_v47 }
  0xb5   : > { %1098 = vmatprep.mubr.f32.mxu0 %v9863_v1  ;;  %1529 = vmatprep.mubr.f32.mxu1 %v9863_v1 }
  0xb8   : > { %4557 = vmatmul.mubr.msk.f32.gmra.mrb[56].mxu0 %vm721_vm0, %v6530_v35  ;;  %4618 = vmatmul.mubr.msk.f32.gmra.mrb[54].mxu1 %vm721_vm0, %v6647_v48 }
  0xb9   : > { %1104 = vmatprep.mubr.f32.mxu0 %v9863_v1  ;;  %1535 = vmatprep.mubr.f32.mxu1 %v9863_v1 }
  0xbc   : > { %4558 = vmatmul.mubr.msk.f32.gmra.mrb[58].mxu0 %vm721_vm0, %v6539_v36  ;;  %4619 = vmatmul.mubr.msk.f32.gmra.mrb[56].mxu1 %vm721_vm0, %v6656_v49 }
  0xbd   : > { %1110 = vmatprep.mubr.f32.mxu0 %v9863_v1  ;;  %1541 = vmatprep.mubr.f32.mxu1 %v9863_v1 }
  0xc0   : > { %4559 = vmatmul.mubr.msk.f32.gmra.mrb[60].mxu0 %vm721_vm0, %v6548_v37  ;;  %4620 = vmatmul.mubr.msk.f32.gmra.mrb[58].mxu1 %vm721_vm0, %v6665_v50 }
  0xc1   : > { %1116 = vmatprep.mubr.f32.mxu0 %v9863_v1  ;;  %1547 = vmatprep.mubr.f32.mxu1 %v9863_v1 }
  0xc4   : > { %4560 = vmatmul.mubr.msk.f32.gmra.mrb[62].mxu0 %vm721_vm0, %v6557_v38  ;;  %4621 = vmatmul.mubr.msk.f32.gmra.mrb[60].mxu1 %vm721_vm0, %v6674_v51 }
  0xc5   : > { %1122 = vmatprep.mubr.f32.mxu0 %v9863_v1  ;;  %1553 = vmatprep.mubr.f32.mxu1 %v9863_v1 }
  0xc8   : > { %4561 = vmatmul.mubr.msk.f32.gmra.mrb[64].mxu0 %vm721_vm0, %v6566_v39  ;;  %4622 = vmatmul.mubr.msk.f32.gmra.mrb[62].mxu1 %vm721_vm0, %v6683_v52 }
  0xc9   : > { %1128 = vmatprep.mubr.f32.mxu0 %v9863_v1  ;;  %1559 = vmatprep.mubr.f32.mxu1 %v9863_v1 }
  0xcc   : > { %4562 = vmatmul.mubr.msk.f32.gmra.mrb[66].mxu0 %vm721_vm0, %v6575_v40  ;;  %4623 = vmatmul.mubr.msk.f32.gmra.mrb[64].mxu1 %vm721_vm0, %v6692_v53 }
  0xcd   : > { %1134 = vmatprep.mubr.f32.mxu0 %v9863_v1  ;;  %1565 = vmatprep.mubr.f32.mxu1 %v9863_v1 }
  0xd0   : > { %4563 = vmatmul.mubr.msk.f32.gmra.mrb[68].mxu0 %vm721_vm0, %v6584_v41  ;;  %4624 = vmatmul.mubr.msk.f32.gmra.mrb[66].mxu1 %vm721_vm0, %v6701_v54 }
  0xd1   : > { %1140 = vmatprep.mubr.f32.mxu0 %v9863_v1  ;;  %1941 = vmatprep.mubr.f32.mxu1 %v9856_v0 }
  0xd4   : > { %4564 = vmatmul.mubr.msk.f32.gmra.mrb[70].mxu0 %vm721_vm0, %v6593_v42 }
  0xd5   : > { %1146 = vmatprep.mubr.f32.mxu0 %v9863_v1 }
  0xd8   : > { %4565 = vmatmul.mubr.msk.f32.gmra.mrb[72].mxu0 %vm721_vm0, %v6602_v43 }
  0xd9   : > { %1152 = vmatprep.mubr.f32.mxu0 %v9863_v1 }
  0xdc   : > { %4566 = vmatmul.mubr.msk.f32.gmra.mrb[74].mxu0 %vm721_vm0, %v6611_v44 }
  0xdd   : > { %1158 = vmatprep.mubr.f32.mxu0 %v9863_v1 }
  0xe0   : > { %4567 = vmatmul.mubr.msk.f32.gmra.mrb[76].mxu0 %vm721_vm0, %v6620_v45 }
  0xe1   : > { %1164 = vmatprep.mubr.f32.mxu0 %v9863_v1 }
  0xe4   : > { %4568 = vmatmul.mubr.msk.f32.gmra.mrb[78].mxu0 %vm721_vm0, %v6629_v46 }
  0xe5   : > { %1170 = vmatprep.mubr.f32.mxu0 %v9863_v1 }
  0xe8   : > { %4569 = vmatmul.mubr.msk.f32.gmra.mrb[80].mxu0 %vm721_vm0, %v6638_v47 }
  0xe9   : > { %1176 = vmatprep.mubr.f32.mxu0 %v9863_v1 }
  0xec   : > { %4570 = vmatmul.mubr.msk.f32.gmra.mrb[82].mxu0 %vm721_vm0, %v6647_v48 }
  0xed   : > { %1182 = vmatprep.mubr.f32.mxu0 %v9863_v1 }
  0xf0   : > { %4571 = vmatmul.mubr.msk.f32.gmra.mrb[84].mxu0 %vm721_vm0, %v6656_v49 }
  0xf1   : > { %1188 = vmatprep.mubr.f32.mxu0 %v9863_v1 }
  0xf4   : > { %4572 = vmatmul.mubr.msk.f32.gmra.mrb[86].mxu0 %vm721_vm0, %v6665_v50 }
  0xf5   : > { %1194 = vmatprep.mubr.f32.mxu0 %v9863_v1 }
  0xf8   : > { %4573 = vmatmul.mubr.msk.f32.gmra.mrb[88].mxu0 %vm721_vm0, %v6674_v51 }
  0xf9   : > { %1200 = vmatprep.mubr.f32.mxu0 %v9863_v1 }
  0xfc   : > { %4574 = vmatmul.mubr.msk.f32.gmra.mrb[90].mxu0 %vm721_vm0, %v6683_v52 }
  0xfd   : > { %1206 = vmatprep.mubr.f32.mxu0 %v9863_v1 }
 0x100   : > { %4575 = vmatmul.mubr.msk.f32.gmra.mrb[92].mxu0 %vm721_vm0, %v6692_v53 }
 0x101   : > { %1212 = vmatprep.mubr.f32.mxu0 %v9863_v1 }
 0x104   : > { %4576 = vmatmul.mubr.msk.f32.gmra.mrb[94].mxu0 %vm721_vm0, %v6701_v54 }
 0x105   : > { %1283 = vmatprep.mubr.f32.mxu0 %v9863_v1 }
 0x108   : > { %4577 = vmatmul.mubr.msk.f32.vlgmr.msra.gmra.mrb[96].mxu0 %vm721_vm0, %v6325_v4 }
 0x109   : > { %1289 = vmatprep.mubr.f32.mxu0 %v9863_v1  ;;  %4926 = vmatpush3.msra.mxu0 %v693_v55 }
 0x10c   : > { %4578 = vmatmul.mubr.msk.f32.gmra.mrb[98].mxu0 %vm721_vm0, %v6331_v5 }
 0x10d   : > { %1295 = vmatprep.mubr.f32.mxu0 %v9863_v1 }
 0x110   : > { %4579 = vmatmul.mubr.msk.f32.gmra.mrb[100].mxu0 %vm721_vm0, %v6337_v6 }
 0x111   : > { %1301 = vmatprep.mubr.f32.mxu0 %v9863_v1 }
 0x114   : > { %4580 = vmatmul.mubr.msk.f32.gmra.mrb[102].mxu0 %vm721_vm0, %v6343_v7 }
 0x115   : > { %1307 = vmatprep.mubr.f32.mxu0 %v9863_v1 }
 0x118   : > { %4581 = vmatmul.mubr.msk.f32.gmra.mrb[104].mxu0 %vm721_vm0, %v6349_v8 }
 0x119   : > { %1313 = vmatprep.mubr.f32.mxu0 %v9863_v1 }
 0x11b   : > { %v932_v60 = vpop.f32.mrb[0].mxu0 }
 0x11c   : > { %v6751_v63 = vpop.f32.mrb[1].mxu0  ;;  %4582 = vmatmul.mubr.msk.f32.gmra.mrb[106].mxu0 %vm721_vm0, %v6355_v9  ;;  %v6760_v3 = vadd.f32 %v932_v60, %v6749_v62 }
 0x11d   : > { %10112 = vst [vmem:[#allocation13_spill] sm:$0xff] %v6751_v63  ;;  %1319 = vmatprep.mubr.f32.mxu0 %v9863_v1 }
 0x11f   : > { %v938_v2 = vpop.f32.mrb[2].mxu0 }
 0x120   : > { %v6763_v14 = vadd.f32 %v938_v2, %v6749_v62  ;;  %v6765_v15 = vpop.f32.mrb[3].mxu0  ;;  %4583 = vmatmul.mubr.msk.f32.gmra.mrb[108].mxu0 %vm721_vm0, %v6361_v10 }
 0x121   : > { %10113 = vst [vmem:[#allocation14_spill] sm:$0xff] %v6765_v15  ;;  %1325 = vmatprep.mubr.f32.mxu0 %v9863_v1 }
 0x122   : > { %v5195_v55 = vpack.c.bf16 %v6763_v14, %v6760_v3 }
 0x123   : > { %v944_v56 = vpop.f32.mrb[4].mxu0 }
 0x124   : > { %v6772_v59 = vpop.f32.mrb[5].mxu0  ;;  %5196 = vmatpush1.bf16.msra.mxu1 %v5195_v55  ;;  %4584 = vmatmul.mubr.msk.f32.gmra.mrb[110].mxu0 %vm721_vm0, %v6367_v11  ;;  %v6779_v2 = vadd.f32 %v944_v56, %v6749_v62  ;;  %v10118_v56 = vmov 0.0|0.0  }
 0x125   : > { %10114 = vst [vmem:[#allocation15_spill] sm:$0xff] %v6772_v59  ;;  %5197 = vmatprep.subr.bf16.mxu1 %v9857_v34  ;;  %1331 = vmatprep.mubr.f32.mxu0 %v9863_v1 }
 0x126   : > { %10115 = vst [vmem:[#allocation16_spill] sm:$0xff] %v6779_v2 }
 0x127   : > { %v950_v60 = vpop.f32.mrb[6].mxu0 }
 0x128   : > { %v6782_v58 = vadd.f32 %v950_v60, %v6749_v62  ;;  %v6784_v0 = vpop.f32.mrb[7].mxu0  ;;  %4585 = vmatmul.mubr.msk.f32.gmra.mrb[112].mxu0 %vm721_vm0, %v6373_v12 }
 0x129   : > { %10116 = vst [vmem:[#allocation17_spill] sm:$0xff] %v6784_v0  ;;  %1337 = vmatprep.mubr.f32.mxu0 %v9863_v1 }
 0x12a   : > { %v5198_v55 = vpack.c.bf16 %v6782_v58, %v6779_v2 }
 0x12b   : > { %v956_v34 = vpop.f32.mrb[8].mxu0 }
 0x12c   : > { %v6791_v59 = vpop.f32.mrb[9].mxu0  ;;  %5199 = vmatpush1.bf16.msra.mxu1 %v5198_v55  ;;  %4586 = vmatmul.mubr.msk.f32.gmra.mrb[114].mxu0 %vm721_vm0, %v6379_v13  ;;  %v6798_v0 = vadd.f32 %v956_v34, %v6749_v62 }
 0x12d   : > { %10117 = vst [vmem:[#allocation18_spill] sm:$0xff] %v6791_v59  ;;  %5200 = vmatprep.subr.bf16.mxu1 %v10118_v56  ;;  %1343 = vmatprep.mubr.f32.mxu0 %v9863_v1 }
 0x12e   : > { %10119 = vst [vmem:[#allocation19_spill] sm:$0xff] %v6798_v0 }
 0x12f   : > { %v962_v60 = vpop.f32.mrb[10].mxu0 }
 0x130   : > { %v6801_v15 = vadd.f32 %v962_v60, %v6749_v62  ;;  %v6803_v63 = vpop.f32.mrb[11].mxu0  ;;  %4587 = vmatmul.mubr.msk.f32.gmra.mrb[116].mxu0 %vm721_vm0, %v6391_v16 }
 0x131   : > { %10120 = vst [vmem:[#allocation20_spill] sm:$0xff] %v6803_v63  ;;  %1349 = vmatprep.mubr.f32.mxu0 %v9863_v1 }
 0x132   : > { %v5201_v55 = vpack.c.bf16 %v6801_v15, %v6798_v0 }
 0x133   : > { %v968_v59 = vpop.f32.mrb[12].mxu0 }
 0x134   : > { %v6810_v57 = vpop.f32.mrb[13].mxu0  ;;  %5202 = vmatpush1.bf16.msra.mxu1 %v5201_v55  ;;  %4588 = vmatmul.mubr.msk.f32.gmra.mrb[118].mxu0 %vm721_vm0, %v6402_v18  ;;  %v6817_v60 = vadd.f32 %v968_v59, %v6749_v62 }
 0x135   : > { %10121 = vst [vmem:[#allocation21_spill] sm:$0xff] %v6810_v57  ;;  %5203 = vmatprep.subr.bf16.mxu1 %v10118_v56  ;;  %1355 = vmatprep.mubr.f32.mxu0 %v9863_v1 }
 0x137   : > { %v974_v34 = vpop.f32.mrb[14].mxu0 }
 0x138   : > { %v6820_v63 = vadd.f32 %v974_v34, %v6749_v62  ;;  %v6822_v2 = vpop.f32.mrb[15].mxu0  ;;  %4589 = vmatmul.mubr.msk.f32.gmra.mrb[120].mxu0 %vm721_vm0, %v6414_v20 }
 0x139   : > { %10122 = vst [vmem:[#allocation22_spill] sm:$0xff] %v6822_v2  ;;  %1361 = vmatprep.mubr.f32.mxu0 %v9863_v1 }
 0x13a   : > { %v5204_v55 = vpack.c.bf16 %v6820_v63, %v6817_v60 }
 0x13b   : > { %v980_v57 = vpop.f32.mrb[16].mxu0 }
 0x13c   : > { %v6829_v0 = vpop.f32.mrb[17].mxu0  ;;  %5205 = vmatpush1.bf16.msra.mxu1 %v5204_v55  ;;  %4590 = vmatmul.mubr.msk.f32.gmra.mrb[122].mxu0 %vm721_vm0, %v6426_v22  ;;  %v6837_v34 = vadd.f32 %v980_v57, %v6749_v62 }
 0x13d   : > { %10123 = vst [vmem:[#allocation23_spill] sm:$0xff] %v6829_v0  ;;  %5206 = vmatprep.subr.bf16.mxu1 %v10118_v56  ;;  %4927 = vmatprep.mubr.msk.f32.mxu0 %vm721_vm0, %v6325_v4 }
 0x13f   : > { %v986_v59 = vpop.f32.mrb[18].mxu0 }
 0x140   : > { %v6840_v1 = vadd.f32 %v986_v59, %v6749_v62  ;;  %v6842_v2 = vpop.f32.mrb[19].mxu0  ;;  %4928 = vmatmul.mubr.msk.f32.vlgmr.msra.gmra.mrb[124].mxu0 %vm721_vm0, %v6331_v5 }
 0x141   : > { %10124 = vst [vmem:[#allocation24_spill] sm:$0xff] %v6842_v2  ;;  %4930 = vmatprep.mubr.msk.f32.mxu0 %vm721_vm0, %v6337_v6 }
 0x142   : > { %v5207_v55 = vpack.c.bf16 %v6840_v1, %v6837_v34 }
 0x143   : > { %v992_v0 = vpop.f32.mrb[20].mxu0 }
 0x144   : > { %v6850_v4 = vpop.f32.mrb[21].mxu0  ;;  %5208 = vmatpush1.bf16.msra.mxu1 %v5207_v55  ;;  %4931 = vmatmul.mubr.msk.f32.gmra.mrb[126].mxu0 %vm721_vm0, %v6343_v7  ;;  %v6858_v5 = vadd.f32 %v992_v0, %v6749_v62 }
 0x145   : > { %10125 = vst [vmem:[#allocation25_spill] sm:$0xff] %v6850_v4  ;;  %5209 = vmatprep.subr.bf16.mxu1 %v10118_v56  ;;  %4933 = vmatprep.mubr.msk.f32.mxu0 %vm721_vm0, %v6349_v8 }
 0x147   : > { %v998_v57 = vpop.f32.mrb[22].mxu0 }
 0x148   : > { %v6861_v6 = vadd.f32 %v998_v57, %v6749_v62  ;;  %v6863_v59 = vpop.f32.mrb[23].mxu0  ;;  %4934 = vmatmul.mubr.msk.f32.gmra.mrb[128].mxu0 %vm721_vm0, %v6355_v9 }
 0x149   : > { %10126 = vst [vmem:[#allocation26_spill] sm:$0xff] %v6863_v59  ;;  %4936 = vmatprep.mubr.msk.f32.mxu0 %vm721_vm0, %v6361_v10 }
 0x14a   : > { %v5210_v7 = vpack.c.bf16 %v6861_v6, %v6858_v5 }
 0x14b   : > { %v1004_v55 = vpop.f32.mrb[24].mxu0 }
 0x14c   : > { %v6871_v8 = vpop.f32.mrb[25].mxu0  ;;  %5211 = vmatpush1.bf16.msra.mxu1 %v5210_v7  ;;  %4937 = vmatmul.mubr.msk.f32.gmra.mrb[130].mxu0 %vm721_vm0, %v6367_v11  ;;  %v6879_v9 = vadd.f32 %v1004_v55, %v6749_v62 }
 0x14d   : > { %10127 = vst [vmem:[#allocation27_spill] sm:$0xff] %v6871_v8  ;;  %5212 = vmatprep.subr.bf16.mxu1 %v10118_v56  ;;  %4939 = vmatprep.mubr.msk.f32.mxu0 %vm721_vm0, %v6373_v12 }
 0x14f   : > { %v1010_v0 = vpop.f32.mrb[26].mxu0 }
 0x150   : > { %v6882_v10 = vadd.f32 %v1010_v0, %v6749_v62  ;;  %v6884_v57 = vpop.f32.mrb[27].mxu0  ;;  %4940 = vmatmul.mubr.msk.f32.gmra.mrb[132].mxu0 %vm721_vm0, %v6379_v13 }
 0x151   : > { %10128 = vst [vmem:[#allocation28_spill] sm:$0xff] %v6884_v57  ;;  %4942 = vmatprep.mubr.msk.f32.mxu0 %vm721_vm0, %v6391_v16 }
 0x152   : > { %v5213_v11 = vpack.c.bf16 %v6882_v10, %v6879_v9 }
 0x153   : > { %v1016_v7 = vpop.f32.mrb[28].mxu0 }
 0x154   : > { %v6892_v12 = vpop.f32.mrb[29].mxu0  ;;  %5214 = vmatpush1.bf16.msra.mxu1 %v5213_v11  ;;  %4943 = vmatmul.mubr.msk.f32.gmra.mrb[134].mxu0 %vm721_vm0, %v6402_v18  ;;  %v6900_v13 = vadd.f32 %v1016_v7, %v6749_v62 }
 0x155   : > { %10129 = vst [vmem:[#allocation29_spill] sm:$0xff] %v6892_v12  ;;  %5215 = vmatprep.subr.bf16.mxu1 %v10118_v56  ;;  %4945 = vmatprep.mubr.msk.f32.mxu0 %vm721_vm0, %v6414_v20 }
 0x157   : > { %v1022_v55 = vpop.f32.mrb[30].mxu0 }
 0x158   : > { %v6903_v16 = vadd.f32 %v1022_v55, %v6749_v62  ;;  %v6905_v0 = vpop.f32.mrb[31].mxu0  ;;  %4946 = vmatmul.mubr.msk.f32.gmra.mrb[136].mxu0 %vm721_vm0, %v6426_v22 }
 0x159   : > { %10130 = vst [vmem:[#allocation30_spill] sm:$0xff] %v6905_v0  ;;  %4948 = vmatprep.mubr.msk.f32.mxu0 %vm721_vm0, %v6394_v17 }
 0x15a   : > { %v5216_v18 = vpack.c.bf16 %v6903_v16, %v6900_v13 }
 0x15b   : > { %v1028_v11 = vpop.f32.mrb[32].mxu0 }
 0x15c   : > { %v6913_v20 = vpop.f32.mrb[33].mxu0  ;;  %5217 = vmatpush1.bf16.msra.mxu1 %v5216_v18  ;;  %4949 = vmatmul.mubr.msk.f32.gmra.mrb[138].mxu0 %vm721_vm0, %v6406_v19  ;;  %v6921_v22 = vadd.f32 %v1028_v11, %v6749_v62 }
 0x15d   : > { %10131 = vst [vmem:[#allocation31_spill] sm:$0xff] %v6913_v20  ;;  %5218 = vmatprep.subr.bf16.mxu1 %v10118_v56  ;;  %4951 = vmatprep.mubr.msk.f32.mxu0 %vm721_vm0, %v6418_v21 }
 0x15f   : > { %v1034_v7 = vpop.f32.mrb[34].mxu0 }
 0x160   : > { %v6924_v17 = vadd.f32 %v1034_v7, %v6749_v62  ;;  %v6926_v55 = vpop.f32.mrb[35].mxu0  ;;  %4952 = vmatmul.mubr.msk.f32.gmra.mrb[140].mxu0 %vm721_vm0, %v6430_v23 }
 0x161   : > { %10132 = vst [vmem:[#allocation32_spill] sm:$0xff] %v6926_v55  ;;  %4954 = vmatprep.mubr.msk.f32.mxu0 %vm721_vm0, %v6439_v24 }
 0x162   : > { %v5219_v19 = vpack.c.bf16 %v6924_v17, %v6921_v22 }
 0x163   : > { %v1040_v18 = vpop.f32.mrb[36].mxu0 }
 0x164   : > { %v6934_v21 = vpop.f32.mrb[37].mxu0  ;;  %5220 = vmatpush1.bf16.msra.mxu1 %v5219_v19  ;;  %4955 = vmatmul.mubr.msk.f32.gmra.mrb[142].mxu0 %vm721_vm0, %v6448_v25  ;;  %v6942_v23 = vadd.f32 %v1040_v18, %v6749_v62 }
 0x165   : > { %10133 = vst [vmem:[#allocation33_spill] sm:$0xff] %v6934_v21  ;;  %5221 = vmatprep.subr.bf16.mxu1 %v10118_v56  ;;  %4957 = vmatprep.mubr.msk.f32.mxu0 %vm721_vm0, %v6457_v26  ;;  %v7203_v21 = vld [vmem:[%s6304_s27 + $0x60] sm:$0xff] }
 0x166   : > { %10179 = vst [vmem:[#allocation74_spill] sm:$0xff] %v7203_v21 }
 0x167   : > { %v1046_v11 = vpop.f32.mrb[38].mxu0 }
 0x168   : > { %v6945_v24 = vadd.f32 %v1046_v11, %v6749_v62  ;;  %v6947_v7 = vpop.f32.mrb[39].mxu0  ;;  %4958 = vmatmul.mubr.msk.f32.gmra.mrb[144].mxu0 %vm721_vm0, %v6466_v27 }
 0x169   : > { %10134 = vst [vmem:[#allocation34_spill] sm:$0xff] %v6947_v7  ;;  %4960 = vmatprep.mubr.msk.f32.mxu0 %vm721_vm0, %v6475_v28 }
 0x16a   : > { %v5222_v25 = vpack.c.bf16 %v6945_v24, %v6942_v23 }
 0x16b   : > { %v1052_v19 = vpop.f32.mrb[40].mxu0 }
 0x16c   : > { %v6955_v26 = vpop.f32.mrb[41].mxu0  ;;  %5223 = vmatpush1.bf16.msra.mxu1 %v5222_v25  ;;  %4961 = vmatmul.mubr.msk.f32.gmra.mrb[146].mxu0 %vm721_vm0, %v6484_v29  ;;  %v6963_v27 = vadd.f32 %v1052_v19, %v6749_v62 }
 0x16d   : > { %10135 = vst [vmem:[#allocation35_spill] sm:$0xff] %v6955_v26  ;;  %5224 = vmatprep.subr.bf16.mxu1 %v10118_v56  ;;  %4963 = vmatprep.mubr.msk.f32.mxu0 %vm721_vm0, %v6493_v30 }
 0x16f   : > { %v1058_v18 = vpop.f32.mrb[42].mxu0 }
 0x170   : > { %v6966_v28 = vadd.f32 %v1058_v18, %v6749_v62  ;;  %v6968_v11 = vpop.f32.mrb[43].mxu0  ;;  %4964 = vmatmul.mubr.msk.f32.gmra.mrb[148].mxu0 %vm721_vm0, %v6502_v31 }
 0x171   : > { %10136 = vst [vmem:[#allocation36_spill] sm:$0xff] %v6968_v11  ;;  %4966 = vmatprep.mubr.msk.f32.mxu0 %vm721_vm0, %v6511_v32 }
 0x172   : > { %v5225_v29 = vpack.c.bf16 %v6966_v28, %v6963_v27 }
 0x173   : > { %v1064_v25 = vpop.f32.mrb[44].mxu0 }
 0x174   : > { %v6976_v30 = vpop.f32.mrb[45].mxu0  ;;  %5226 = vmatpush1.bf16.msra.mxu1 %v5225_v29  ;;  %4967 = vmatmul.mubr.msk.f32.gmra.mrb[150].mxu0 %vm721_vm0, %v6520_v33  ;;  %v6984_v31 = vadd.f32 %v1064_v25, %v6749_v62 }
 0x175   : > { %10137 = vst [vmem:[#allocation37_spill] sm:$0xff] %v6976_v30  ;;  %5227 = vmatprep.subr.bf16.mxu1 %v10118_v56  ;;  %4969 = vmatprep.mubr.msk.f32.mxu0 %vm721_vm0, %v6530_v35  ;;  %v7165_v30 = vld [vmem:[%s6304_s27 + $0x48] sm:$0xff] }
 0x176   : > { %10167 = vst [vmem:[#allocation64_spill] sm:$0xff] %v7165_v30 }
 0x177   : > { %v1070_v19 = vpop.f32.mrb[46].mxu0 }
 0x178   : > { %v6987_v32 = vadd.f32 %v1070_v19, %v6749_v62  ;;  %v6989_v18 = vpop.f32.mrb[47].mxu0  ;;  %4970 = vmatmul.mubr.msk.f32.gmra.mrb[152].mxu0 %vm721_vm0, %v6539_v36 }
 0x179   : > { %10138 = vst [vmem:[#allocation38_spill] sm:$0xff] %v6989_v18  ;;  %4972 = vmatprep.mubr.msk.f32.mxu0 %vm721_vm0, %v6548_v37 }
 0x17a   : > { %v5228_v33 = vpack.c.bf16 %v6987_v32, %v6984_v31 }
 0x17b   : > { %v1076_v29 = vpop.f32.mrb[48].mxu0 }
 0x17c   : > { %v6997_v35 = vpop.f32.mrb[49].mxu0  ;;  %5229 = vmatpush1.bf16.msra.mxu1 %v5228_v33  ;;  %4973 = vmatmul.mubr.msk.f32.gmra.mrb[154].mxu0 %vm721_vm0, %v6557_v38  ;;  %v7005_v36 = vadd.f32 %v1076_v29, %v6749_v62 }
 0x17d   : > { %10139 = vst [vmem:[#allocation39_spill] sm:$0xff] %v6997_v35  ;;  %5230 = vmatprep.subr.bf16.mxu1 %v10118_v56  ;;  %4975 = vmatprep.mubr.msk.f32.mxu0 %vm721_vm0, %v6566_v39 }
 0x17f   : > { %v1082_v25 = vpop.f32.mrb[50].mxu0 }
 0x180   : > { %v7008_v37 = vadd.f32 %v1082_v25, %v6749_v62  ;;  %v7010_v19 = vpop.f32.mrb[51].mxu0  ;;  %4976 = vmatmul.mubr.msk.f32.gmra.mrb[156].mxu0 %vm721_vm0, %v6575_v40 }
 0x181   : > { %10140 = vst [vmem:[#allocation40_spill] sm:$0xff] %v7010_v19  ;;  %4978 = vmatprep.mubr.msk.f32.mxu0 %vm721_vm0, %v6584_v41 }
 0x182   : > { %v5231_v38 = vpack.c.bf16 %v7008_v37, %v7005_v36 }
 0x183   : > { %v1088_v33 = vpop.f32.mrb[52].mxu0 }
 0x184   : > { %v7018_v39 = vpop.f32.mrb[53].mxu0  ;;  %5232 = vmatpush1.bf16.msra.mxu1 %v5231_v38  ;;  %4979 = vmatmul.mubr.msk.f32.gmra.mrb[158].mxu0 %vm721_vm0, %v6593_v42  ;;  %v7026_v40 = vadd.f32 %v1088_v33, %v6749_v62 }
 0x185   : > { %10141 = vst [vmem:[#allocation41_spill] sm:$0xff] %v7018_v39  ;;  %5233 = vmatprep.subr.bf16.mxu1 %v10118_v56  ;;  %4981 = vmatprep.mubr.msk.f32.mxu0 %vm721_vm0, %v6602_v43 }
 0x187   : > { %v1094_v29 = vpop.f32.mrb[54].mxu0 }
 0x188   : > { %v7029_v41 = vadd.f32 %v1094_v29, %v6749_v62  ;;  %v7031_v25 = vpop.f32.mrb[55].mxu0  ;;  %4982 = vmatmul.mubr.msk.f32.gmra.mrb[160].mxu0 %vm721_vm0, %v6611_v44 }
 0x189   : > { %10142 = vst [vmem:[#allocation42_spill] sm:$0xff] %v7031_v25  ;;  %4984 = vmatprep.mubr.msk.f32.mxu0 %vm721_vm0, %v6620_v45 }
 0x18a   : > { %v5234_v42 = vpack.c.bf16 %v7029_v41, %v7026_v40 }
 0x18b   : > { %v1100_v38 = vpop.f32.mrb[56].mxu0 }
 0x18c   : > { %v7039_v43 = vpop.f32.mrb[57].mxu0  ;;  %5235 = vmatpush1.bf16.msra.mxu1 %v5234_v42  ;;  %4985 = vmatmul.mubr.msk.f32.gmra.mrb[162].mxu0 %vm721_vm0, %v6629_v46  ;;  %v7047_v33 = vadd.f32 %v1100_v38, %v6749_v62  ;;  %v7068_v38 = vld [vmem:[%s6304_s27 + $0x8] ss:$12 sps:$4 sm:$0xff]  }
 0x18d   : > { %10143 = vst [vmem:[#allocation43_spill] sm:$0xff] %v7039_v43  ;;  %5236 = vmatprep.subr.bf16.mxu1 %v10118_v56  ;;  %4987 = vmatprep.mubr.msk.f32.mxu0 %vm721_vm0, %v6638_v47  ;;  %10146 = vst [vmem:[#allocation46_spill] sm:$0xff] %v7068_v38  ;;  %v7114_v43 = vld [vmem:[%s6304_s27 + $0x24] sm:$0xff] }
 0x18e   : > { %10153 = vst [vmem:[#allocation52_spill] sm:$0xff] %v7114_v43  ;;  %v10163_v35 = vunpack.c.l.bf16 %v7114_v43 }
 0x18f   : > { %v1106_v44 = vpop.f32.mrb[58].mxu0 }
 0x190   : > { %v7050_v45 = vadd.f32 %v1106_v44, %v6749_v62  ;;  %v7052_v29 = vpop.f32.mrb[59].mxu0  ;;  %4988 = vmatmul.mubr.msk.f32.gmra.mrb[164].mxu0 %vm721_vm0, %v6647_v48 }
 0x191   : > { %10144 = vst [vmem:[#allocation44_spill] sm:$0xff] %v7052_v29  ;;  %4990 = vmatprep.mubr.msk.f32.mxu0 %vm721_vm0, %v6656_v49 }
 0x192   : > { %v5237_v46 = vpack.c.bf16 %v7050_v45, %v7047_v33 }
 0x193   : > { %v1112_v47 = vpop.f32.mrb[60].mxu0 }
 0x194   : > { %v7060_v42 = vpop.f32.mrb[61].mxu0  ;;  %5238 = vmatpush1.bf16.msra.mxu1 %v5237_v46  ;;  %4991 = vmatmul.mubr.msk.f32.gmra.mrb[166].mxu0 %vm721_vm0, %v6665_v50  ;;  %v7071_v49 = vadd.f32 %v1112_v47, %v6749_v62  ;;  %v7081_v50 = vld [vmem:[%s6304_s27 + $0xc] sm:$0xff] }
 0x195   : > { %10145 = vst [vmem:[#allocation45_spill] sm:$0xff] %v7060_v42  ;;  %5239 = vmatprep.subr.bf16.mxu1 %v10118_v56  ;;  %4993 = vmatprep.mubr.msk.f32.mxu0 %vm721_vm0, %v6674_v51  ;;  %10148 = vst [vmem:[#allocation48_spill] sm:$0xff] %v7081_v50  ;;  %v9866_v51 = vunpack.c.l.bf16 %v7068_v38  ;;  %v10154_v25 = vunpack.c.l.bf16 %v7081_v50 }
 0x197   : > { %v1118_v48 = vpop.f32.mrb[62].mxu0 }
 0x198   : > { %v7074_v44 = vadd.f32 %v1118_v48, %v6749_v62  ;;  %v7076_v42 = vpop.f32.mrb[63].mxu0  ;;  %4994 = vmatmul.mubr.msk.f32.gmra.mrb[168].mxu0 %vm721_vm0, %v6683_v52  ;;  %v9867_v48 = vunpack.c.l.bf16 %v6745_v61  ;;  %v7095_v52 = vld [vmem:[%s6304_s27 + $0x18] sm:$0xff] }
 0x199   : > { %10147 = vst [vmem:[#allocation47_spill] sm:$0xff] %v7076_v42  ;;  %4996 = vmatprep.mubr.msk.f32.mxu0 %vm721_vm0, %v6692_v53  ;;  %10150 = vst [vmem:[#allocation50_spill] sm:$0xff] %v7095_v52 }
 0x19a   : > { %v5240_v46 = vpack.c.bf16 %v7074_v44, %v7071_v49 }
 0x19b   : > { %v1124_v47 = vpop.f32.mrb[64].mxu0 }
 0x19c   : > { %v7089_v56 = vpop.f32.mrb[65].mxu0  ;;  %5241 = vmatpush1.bf16.msra.mxu1 %v5240_v46  ;;  %4997 = vmatmul.mubr.msk.f32.gmra.mrb[170].mxu0 %vm721_vm0, %v6701_v54  ;;  %v10152_v54 = vunpack.c.h.bf16 %v7081_v50  ;;  %v7132_v50 = vpop.f32.mrb[0].mxu1 }
 0x19d   : > { %10149 = vst [vmem:[#allocation49_spill] sm:$0xff] %v7089_v56  ;;  %5031 = vmatprep.mubr.f32.mxu0 %v9866_v51  ;;  %v7103_v56 = vadd.f32 %v1124_v47, %v6749_v62  ;;  %v9870_v51 = vunpack.c.h.bf16 %v7095_v52  ;;  %v9873_v47 = vunpack.c.l.bf16 %v7095_v52  ;;  %10157 = vst [vmem:[#allocation55_spill] sm:$0xff] %v7132_v50  ;;  %v7145_v52 = vpop.f32.mrb[1].mxu1 }
 0x19e   : > { %10161 = vst [vmem:[#allocation59_spill] sm:$0xff] %v7145_v52 }
 0x19f   : > { %v1130_v53 = vpop.f32.mrb[66].mxu0  ;;  %1942 = vmatmul.mubr.f32.vlgmr.msra.gmra.mrb[68].mxu1 %v9867_v48 }
 0x1a0   : > { %v7106_v46 = vadd.f32 %v1130_v53, %v6749_v62  ;;  %v7108_v42 = vpop.f32.mrb[67].mxu0  ;;  %1946 = vmatprep.mubr.f32.mxu1 %v10152_v54  ;;  %v9874_v54 = vunpack.c.h.bf16 %v7114_v43 }
 0x1a1   : > { %10151 = vst [vmem:[#allocation51_spill] sm:$0xff] %v7108_v42  ;;  %v7127_v42 = vld [vmem:[%s6304_s27 + $0x30] sm:$0xff] }
 0x1a2   : > { %v5242_v48 = vpack.c.bf16 %v7106_v46, %v7103_v56  ;;  %10156 = vst [vmem:[#allocation54_spill] sm:$0xff] %v7127_v42 }
 0x1a3   : > { %v1136_v29 = vpop.f32.mrb[68].mxu0  ;;  %1947 = vmatmul.mubr.f32.gmra.mrb[70].mxu1 %v10154_v25 }
 0x1a4   : > { %v7121_v53 = vpop.f32.mrb[69].mxu0  ;;  %5243 = vmatprep.subr.bf16.mxu0 %v5242_v48  ;;  %1951 = vmatprep.mubr.f32.mxu1 %v9870_v51 }
 0x1a5   : > { %10155 = vst [vmem:[#allocation53_spill] sm:$0xff] %v7121_v53  ;;  %5245 = vmatpush3.bf16.msra.mxu0 %v5242_v48  ;;  %v7135_v53 = vadd.f32 %v1136_v29, %v6749_v62  ;;  %v9877_v48 = vunpack.c.h.bf16 %v7127_v42 }
 0x1a7   : > { %v1142_v39 = vpop.f32.mrb[70].mxu0  ;;  %1952 = vmatmul.mubr.f32.gmra.mrb[72].mxu1 %v9873_v47  ;;  %10158 = vst [vmem:[#allocation56_spill] sm:$0xff] %v7135_v53  ;;  %v7148_v47 = vld [vmem:[%s6304_s27 + $0x3c] sm:$0xff] }
 0x1a8   : > { %v7138_v19 = vadd.f32 %v1142_v39, %v6749_v62  ;;  %v7140_v51 = vpop.f32.mrb[71].mxu0  ;;  %1956 = vmatprep.mubr.f32.mxu1 %v9874_v54  ;;  %10162 = vst [vmem:[#allocation60_spill] sm:$0xff] %v7148_v47  ;;  %v9880_v39 = vunpack.c.l.bf16 %v7127_v42  ;;  %v10175_v26 = vunpack.c.l.bf16 %v7148_v47 }
 0x1a9   : > { %10160 = vst [vmem:[#allocation58_spill] sm:$0xff] %v7140_v51  ;;  %v7155_v51 = vpop.f32.mrb[2].mxu1 }
 0x1aa   : > { %10159 = vst [vmem:[#allocation57_spill] sm:$0xff] %v7138_v19  ;;  %v5246_v25 = vpack.c.bf16 %v7138_v19, %v7135_v53  ;;  %10164 = vst [vmem:[#allocation61_spill] sm:$0xff] %v7155_v51  ;;  %v7162_v52 = vpop.f32.mrb[3].mxu1 }
 0x1ab   : > { %v1148_v29 = vpop.f32.mrb[72].mxu0  ;;  %1957 = vmatmul.mubr.f32.gmra.mrb[74].mxu1 %v10163_v35  ;;  %10166 = vst [vmem:[#allocation63_spill] sm:$0xff] %v7162_v52  ;;  %v7170_v11 = vpop.f32.mrb[4].mxu1  ;;  %v9883_v52 = vunpack.c.h.bf16 %v7165_v30 }
 0x1ac   : > { %v7157_v18 = vpop.f32.mrb[73].mxu0  ;;  %5247 = vmatprep.subr.bf16.mxu0 %v5246_v25  ;;  %1961 = vmatprep.mubr.f32.mxu1 %v9877_v48  ;;  %10168 = vst [vmem:[#allocation65_spill] sm:$0xff] %v7170_v11  ;;  %v7183_v42 = vpop.f32.mrb[5].mxu1 }
 0x1ad   : > { %10165 = vst [vmem:[#allocation62_spill] sm:$0xff] %v7157_v18  ;;  %5249 = vmatpush3.bf16.msra.mxu0 %v5246_v25  ;;  %v7173_v18 = vadd.f32 %v1148_v29, %v6749_v62  ;;  %v10172_v25 = vunpack.c.h.bf16 %v7148_v47  ;;  %10173 = vst [vmem:[#allocation69_spill] sm:$0xff] %v7183_v42 }
 0x1af   : > { %v1154_v43 = vpop.f32.mrb[74].mxu0  ;;  %1962 = vmatmul.mubr.f32.gmra.mrb[76].mxu1 %v9880_v39  ;;  %10169 = vst [vmem:[#allocation66_spill] sm:$0xff] %v7173_v18  ;;  %v7186_v39 = vld [vmem:[%s6304_s27 + $0x54] sm:$0xff] }
 0x1b0   : > { %v7176_v48 = vadd.f32 %v1154_v43, %v6749_v62  ;;  %v7178_v54 = vpop.f32.mrb[75].mxu0  ;;  %1966 = vmatprep.mubr.f32.mxu1 %v10172_v25  ;;  %10174 = vst [vmem:[#allocation70_spill] sm:$0xff] %v7186_v39 }
 0x1b1   : > { %10171 = vst [vmem:[#allocation68_spill] sm:$0xff] %v7178_v54  ;;  %v7193_v54 = vpop.f32.mrb[6].mxu1 }
 0x1b2   : > { %10170 = vst [vmem:[#allocation67_spill] sm:$0xff] %v7176_v48  ;;  %v5250_v35 = vpack.c.bf16 %v7176_v48, %v7173_v18  ;;  %10176 = vst [vmem:[#allocation71_spill] sm:$0xff] %v7193_v54  ;;  %v7200_v42 = vpop.f32.mrb[7].mxu1  ;;  %v10182_v54 = vunpack.c.l.bf16 %v7165_v30  ;;  %v10510_v18 = vld [vmem:[#allocation16_spill] sm:$0xff] }
 0x1b3   : > { %v1160_v29 = vpop.f32.mrb[76].mxu0  ;;  %1967 = vmatmul.mubr.f32.gmra.mrb[78].mxu1 %v10175_v26  ;;  %10178 = vst [vmem:[#allocation73_spill] sm:$0xff] %v7200_v42  ;;  %v7205_v47 = vpop.f32.mrb[8].mxu1  ;;  %v10187_v42 = vunpack.c.h.bf16 %v7186_v39 }
 0x1b4   : > { %v7195_v7 = vpop.f32.mrb[77].mxu0  ;;  %5251 = vmatprep.subr.bf16.mxu0 %v5250_v35  ;;  %1971 = vmatprep.mubr.f32.mxu1 %v9883_v52  ;;  %10180 = vst [vmem:[#allocation75_spill] sm:$0xff] %v7205_v47  ;;  %v7207_v26 = vpop.f32.mrb[9].mxu1  ;;  %v7215_v52 = vadd.f32 %v1160_v29, %v6749_v62 }
 0x1b5   : > { %10177 = vst [vmem:[#allocation72_spill] sm:$0xff] %v7195_v7  ;;  %5253 = vmatpush3.bf16.msra.mxu0 %v5250_v35  ;;  %10181 = vst [vmem:[#allocation76_spill] sm:$0xff] %v7207_v26  ;;  %v7212_v55 = vpop.f32.mrb[10].mxu1 }
 0x1b6   : > { %10183 = vst [vmem:[#allocation77_spill] sm:$0xff] %v7212_v55  ;;  %10184 = vst [vmem:[#allocation78_spill] sm:$0xff] %v7215_v52  ;;  %v7225_v30 = vpop.f32.mrb[11].mxu1 }
 0x1b7   : > { %v1166_v43 = vpop.f32.mrb[78].mxu0  ;;  %1972 = vmatmul.mubr.f32.gmra.mrb[80].mxu1 %v10182_v54  ;;  %10188 = vst [vmem:[#allocation81_spill] sm:$0xff] %v7225_v30  ;;  %v7228_v54 = vld [vmem:[%s6304_s27 + $0x6c] sm:$0xff]  ;;  %v7230_v7 = vpop.f32.mrb[12].mxu1  ;;  %v10195_v30 = vunpack.c.h.bf16 %v7203_v21 }
 0x1b8   : > { %v7218_v25 = vadd.f32 %v1166_v43, %v6749_v62  ;;  %v7220_v35 = vpop.f32.mrb[79].mxu0  ;;  %1976 = vmatprep.mubr.f32.mxu1 %v10187_v42  ;;  %10189 = vst [vmem:[#allocation82_spill] sm:$0xff] %v7228_v54  ;;  %10190 = vst [vmem:[#allocation83_spill] sm:$0xff] %v7230_v7  ;;  %v7234_v55 = vpop.f32.mrb[13].mxu1 }
 0x1b9   : > { %10186 = vst [vmem:[#allocation80_spill] sm:$0xff] %v7220_v35  ;;  %10191 = vst [vmem:[#allocation84_spill] sm:$0xff] %v7234_v55  ;;  %v10192_v35 = vunpack.c.l.bf16 %v7186_v39  ;;  %v7239_v47 = vpop.f32.mrb[14].mxu1  ;;  %v7249_v55 = vld [vmem:[%s6304_s27 + $0x78] sm:$0xff] }
 0x1ba   : > { %10185 = vst [vmem:[#allocation79_spill] sm:$0xff] %v7218_v25  ;;  %v5254_v29 = vpack.c.bf16 %v7218_v25, %v7215_v52  ;;  %10193 = vst [vmem:[#allocation85_spill] sm:$0xff] %v7239_v47  ;;  %v7246_v11 = vpop.f32.mrb[15].mxu1  ;;  %v10200_v47 = vunpack.c.l.bf16 %v7203_v21 }
 0x1bb   : > { %v1172_v43 = vpop.f32.mrb[80].mxu0  ;;  %1977 = vmatmul.mubr.f32.gmra.mrb[82].mxu1 %v10192_v35  ;;  %10196 = vst [vmem:[#allocation87_spill] sm:$0xff] %v7246_v11  ;;  %10197 = vst [vmem:[#allocation88_spill] sm:$0xff] %v7249_v55  ;;  %v7251_v39 = vpop.f32.mrb[16].mxu1  ;;  %v10205_v11 = vunpack.c.h.bf16 %v7228_v54 }
 0x1bc   : > { %v7241_v26 = vpop.f32.mrb[81].mxu0  ;;  %5255 = vmatprep.subr.bf16.mxu0 %v5254_v29  ;;  %1981 = vmatprep.mubr.f32.mxu1 %v10195_v30  ;;  %10198 = vst [vmem:[#allocation89_spill] sm:$0xff] %v7251_v39  ;;  %v7253_v35 = vpop.f32.mrb[17].mxu1  ;;  %v7261_v30 = vadd.f32 %v1172_v43, %v6749_v62 }
 0x1bd   : > { %10194 = vst [vmem:[#allocation86_spill] sm:$0xff] %v7241_v26  ;;  %5257 = vmatpush3.bf16.msra.mxu0 %v5254_v29  ;;  %10199 = vst [vmem:[#allocation90_spill] sm:$0xff] %v7253_v35  ;;  %v7258_v20 = vpop.f32.mrb[18].mxu1 }
 0x1be   : > { %10201 = vst [vmem:[#allocation91_spill] sm:$0xff] %v7258_v20  ;;  %10202 = vst [vmem:[#allocation92_spill] sm:$0xff] %v7261_v30  ;;  %v7271_v21 = vpop.f32.mrb[19].mxu1 }
 0x1bf   : > { %v1178_v42 = vpop.f32.mrb[82].mxu0  ;;  %1982 = vmatmul.mubr.f32.gmra.mrb[84].mxu1 %v10200_v47  ;;  %10206 = vst [vmem:[#allocation95_spill] sm:$0xff] %v7271_v21  ;;  %v7274_v47 = vld [vmem:[%s6304_s27 + $0x84] sm:$0xff]  ;;  %v7276_v26 = vpop.f32.mrb[20].mxu1  ;;  %v10213_v21 = vunpack.c.h.bf16 %v7249_v55 }
 0x1c0   : > { %v7264_v7 = vadd.f32 %v1178_v42, %v6749_v62  ;;  %v7266_v29 = vpop.f32.mrb[83].mxu0  ;;  %1986 = vmatprep.mubr.f32.mxu1 %v10205_v11  ;;  %10207 = vst [vmem:[#allocation96_spill] sm:$0xff] %v7274_v47  ;;  %10208 = vst [vmem:[#allocation97_spill] sm:$0xff] %v7276_v26  ;;  %v7280_v20 = vpop.f32.mrb[21].mxu1 }
 0x1c1   : > { %10204 = vst [vmem:[#allocation94_spill] sm:$0xff] %v7266_v29  ;;  %10209 = vst [vmem:[#allocation98_spill] sm:$0xff] %v7280_v20  ;;  %v10210_v29 = vunpack.c.l.bf16 %v7228_v54  ;;  %v7285_v39 = vpop.f32.mrb[22].mxu1  ;;  %v7295_v20 = vld [vmem:[%s6304_s27 + $0x90] sm:$0xff] }
 0x1c2   : > { %10203 = vst [vmem:[#allocation93_spill] sm:$0xff] %v7264_v7  ;;  %v5258_v43 = vpack.c.bf16 %v7264_v7, %v7261_v30  ;;  %10211 = vst [vmem:[#allocation99_spill] sm:$0xff] %v7285_v39  ;;  %v7292_v51 = vpop.f32.mrb[23].mxu1  ;;  %v10218_v39 = vunpack.c.l.bf16 %v7249_v55 }
 0x1c3   : > { %v1184_v42 = vpop.f32.mrb[84].mxu0  ;;  %1987 = vmatmul.mubr.f32.gmra.mrb[86].mxu1 %v10210_v29  ;;  %10214 = vst [vmem:[#allocation101_spill] sm:$0xff] %v7292_v51  ;;  %10215 = vst [vmem:[#allocation102_spill] sm:$0xff] %v7295_v20  ;;  %v7297_v54 = vpop.f32.mrb[24].mxu1  ;;  %v10223_v51 = vunpack.c.h.bf16 %v7274_v47 }
 0x1c4   : > { %v7287_v35 = vpop.f32.mrb[85].mxu0  ;;  %5259 = vmatprep.subr.bf16.mxu0 %v5258_v43  ;;  %1991 = vmatprep.mubr.f32.mxu1 %v10213_v21  ;;  %10216 = vst [vmem:[#allocation103_spill] sm:$0xff] %v7297_v54  ;;  %v7299_v29 = vpop.f32.mrb[25].mxu1  ;;  %v7307_v21 = vadd.f32 %v1184_v42, %v6749_v62 }
 0x1c5   : > { %10212 = vst [vmem:[#allocation100_spill] sm:$0xff] %v7287_v35  ;;  %5261 = vmatpush3.bf16.msra.mxu0 %v5258_v43  ;;  %10217 = vst [vmem:[#allocation104_spill] sm:$0xff] %v7299_v29  ;;  %v7304_v0 = vpop.f32.mrb[26].mxu1 }
 0x1c6   : > { %10219 = vst [vmem:[#allocation105_spill] sm:$0xff] %v7304_v0  ;;  %10220 = vst [vmem:[#allocation106_spill] sm:$0xff] %v7307_v21  ;;  %v7317_v55 = vpop.f32.mrb[27].mxu1 }
 0x1c7   : > { %v1190_v11 = vpop.f32.mrb[86].mxu0  ;;  %1992 = vmatmul.mubr.f32.gmra.mrb[88].mxu1 %v10218_v39  ;;  %10224 = vst [vmem:[#allocation109_spill] sm:$0xff] %v7317_v55  ;;  %v7320_v39 = vld [vmem:[%s6304_s27 + $0x9c] sm:$0xff]  ;;  %v7322_v35 = vpop.f32.mrb[28].mxu1  ;;  %v10231_v55 = vunpack.c.h.bf16 %v7295_v20 }
 0x1c8   : > { %v7310_v26 = vadd.f32 %v1190_v11, %v6749_v62  ;;  %v7312_v43 = vpop.f32.mrb[87].mxu0  ;;  %1996 = vmatprep.mubr.f32.mxu1 %v10223_v51  ;;  %10225 = vst [vmem:[#allocation110_spill] sm:$0xff] %v7320_v39  ;;  %10226 = vst [vmem:[#allocation111_spill] sm:$0xff] %v7322_v35  ;;  %v7326_v0 = vpop.f32.mrb[29].mxu1 }
 0x1c9   : > { %10222 = vst [vmem:[#allocation108_spill] sm:$0xff] %v7312_v43  ;;  %10227 = vst [vmem:[#allocation112_spill] sm:$0xff] %v7326_v0  ;;  %v10228_v43 = vunpack.c.l.bf16 %v7274_v47  ;;  %v7331_v54 = vpop.f32.mrb[30].mxu1  ;;  %v7341_v0 = vld [vmem:[%s6304_s27 + $0xa8] sm:$0xff] }
 0x1ca   : > { %10221 = vst [vmem:[#allocation107_spill] sm:$0xff] %v7310_v26  ;;  %v5262_v42 = vpack.c.bf16 %v7310_v26, %v7307_v21  ;;  %10229 = vst [vmem:[#allocation113_spill] sm:$0xff] %v7331_v54  ;;  %v7338_v50 = vpop.f32.mrb[31].mxu1  ;;  %v10236_v54 = vunpack.c.l.bf16 %v7295_v20 }
 0x1cb   : > { %v1196_v11 = vpop.f32.mrb[88].mxu0  ;;  %1997 = vmatmul.mubr.f32.gmra.mrb[90].mxu1 %v10228_v43  ;;  %10232 = vst [vmem:[#allocation115_spill] sm:$0xff] %v7338_v50  ;;  %10233 = vst [vmem:[#allocation116_spill] sm:$0xff] %v7341_v0  ;;  %v7343_v47 = vpop.f32.mrb[32].mxu1  ;;  %v10241_v50 = vunpack.c.h.bf16 %v7320_v39 }
 0x1cc   : > { %v7333_v29 = vpop.f32.mrb[89].mxu0  ;;  %5263 = vmatprep.subr.bf16.mxu0 %v5262_v42  ;;  %2001 = vmatprep.mubr.f32.mxu1 %v10231_v55  ;;  %10234 = vst [vmem:[#allocation117_spill] sm:$0xff] %v7343_v47  ;;  %v7345_v43 = vpop.f32.mrb[33].mxu1  ;;  %v7353_v55 = vadd.f32 %v1196_v11, %v6749_v62 }
 0x1cd   : > { %10230 = vst [vmem:[#allocation114_spill] sm:$0xff] %v7333_v29  ;;  %5265 = vmatpush3.bf16.msra.mxu0 %v5262_v42  ;;  %10235 = vst [vmem:[#allocation118_spill] sm:$0xff] %v7345_v43  ;;  %v7350_v12 = vpop.f32.mrb[34].mxu1 }
 0x1ce   : > { %10237 = vst [vmem:[#allocation119_spill] sm:$0xff] %v7350_v12  ;;  %10238 = vst [vmem:[#allocation120_spill] sm:$0xff] %v7353_v55  ;;  %v7363_v20 = vpop.f32.mrb[35].mxu1 }
 0x1cf   : > { %v1202_v51 = vpop.f32.mrb[90].mxu0  ;;  %2002 = vmatmul.mubr.f32.gmra.mrb[92].mxu1 %v10236_v54  ;;  %10242 = vst [vmem:[#allocation123_spill] sm:$0xff] %v7363_v20  ;;  %v7366_v54 = vld [vmem:[%s6304_s27 + $0xb4] sm:$0xff]  ;;  %v7368_v29 = vpop.f32.mrb[36].mxu1  ;;  %v10249_v20 = vunpack.c.h.bf16 %v7341_v0 }
 0x1d0   : > { %v7356_v35 = vadd.f32 %v1202_v51, %v6749_v62  ;;  %v7358_v42 = vpop.f32.mrb[91].mxu0  ;;  %2006 = vmatprep.mubr.f32.mxu1 %v10241_v50  ;;  %10243 = vst [vmem:[#allocation124_spill] sm:$0xff] %v7366_v54  ;;  %10244 = vst [vmem:[#allocation125_spill] sm:$0xff] %v7368_v29  ;;  %v7372_v12 = vpop.f32.mrb[37].mxu1 }
 0x1d1   : > { %10240 = vst [vmem:[#allocation122_spill] sm:$0xff] %v7358_v42  ;;  %10245 = vst [vmem:[#allocation126_spill] sm:$0xff] %v7372_v12  ;;  %v10246_v42 = vunpack.c.l.bf16 %v7320_v39  ;;  %v7377_v47 = vpop.f32.mrb[38].mxu1  ;;  %v7387_v12 = vld [vmem:[%s6304_s27 + $0xc0] sm:$0xff] }
 0x1d2   : > { %10239 = vst [vmem:[#allocation121_spill] sm:$0xff] %v7356_v35  ;;  %v5266_v11 = vpack.c.bf16 %v7356_v35, %v7353_v55  ;;  %10247 = vst [vmem:[#allocation127_spill] sm:$0xff] %v7377_v47  ;;  %v7384_v57 = vpop.f32.mrb[39].mxu1 }
 0x1d3   : > { %v1208_v51 = vpop.f32.mrb[92].mxu0  ;;  %2007 = vmatmul.mubr.f32.gmra.mrb[94].mxu1 %v10246_v42  ;;  %10250 = vst [vmem:[#allocation129_spill] sm:$0xff] %v7384_v57  ;;  %10251 = vst [vmem:[#allocation130_spill] sm:$0xff] %v7387_v12  ;;  %v7389_v42 = vpop.f32.mrb[40].mxu1 }
 0x1d4   : > { %v7379_v43 = vpop.f32.mrb[93].mxu0  ;;  %5267 = vmatprep.subr.bf16.mxu0 %v5266_v11  ;;  %2011 = vmatprep.mubr.f32.mxu1 %v10249_v20  ;;  %10252 = vst [vmem:[#allocation131_spill] sm:$0xff] %v7389_v42  ;;  %v7391_v50 = vpop.f32.mrb[41].mxu1  ;;  %v7399_v29 = vadd.f32 %v1208_v51, %v6749_v62  ;;  %v10259_v42 = vunpack.c.h.bf16 %v7366_v54 }
 0x1d5   : > { %10248 = vst [vmem:[#allocation128_spill] sm:$0xff] %v7379_v43  ;;  %5269 = vmatpush3.bf16.msra.mxu0 %v5266_v11  ;;  %10253 = vst [vmem:[#allocation132_spill] sm:$0xff] %v7391_v50  ;;  %v10254_v43 = vunpack.c.l.bf16 %v7341_v0  ;;  %v7396_v20 = vpop.f32.mrb[42].mxu1  ;;  %v7419_v0 = vld [vmem:[%s6304_s27 + $0x20] ss:$12 sps:$4 sm:$0xff]  }
 0x1d6   : > { %10255 = vst [vmem:[#allocation133_spill] sm:$0xff] %v7396_v20  ;;  %10256 = vst [vmem:[#allocation134_spill] sm:$0xff] %v7399_v29  ;;  %v7409_v8 = vpop.f32.mrb[43].mxu1  ;;  %v10290_v20 = vunpack.c.h.bf16 %v7419_v0 }
 0x1d7   : > { %v1214_v39 = vpop.f32.mrb[94].mxu0  ;;  %2012 = vmatmul.mubr.f32.gmra.mrb[96].mxu1 %v10254_v43  ;;  %10260 = vst [vmem:[#allocation137_spill] sm:$0xff] %v7409_v8  ;;  %v7412_v43 = vld [vmem:[%s6304_s27 + $0xcc] sm:$0xff]  ;;  %v7414_v47 = vpop.f32.mrb[44].mxu1  ;;  %10263 = vst [vmem:[#allocation140_spill] sm:$0xff] %v7419_v0 }
 0x1d8   : > { %v7402_v11 = vadd.f32 %v1214_v39, %v6749_v62  ;;  %v7404_v57 = vpop.f32.mrb[95].mxu0  ;;  %2016 = vmatprep.mubr.f32.mxu1 %v10259_v42  ;;  %10261 = vst [vmem:[#allocation138_spill] sm:$0xff] %v7412_v43  ;;  %10262 = vst [vmem:[#allocation139_spill] sm:$0xff] %v7414_v47  ;;  %v7421_v62 = vpop.f32.mrb[45].mxu1  ;;  %v10265_v39 = vunpack.c.l.bf16 %v7366_v54  ;;  %v7440_v42 = vld [vmem:[%s6304_s27 + $0xd8] sm:$0xff]  ;;  %v10275_v47 = vunpack.c.l.bf16 %v7387_v12  ;;  %v10287_v4 = vunpack.c.l.bf16 %v7412_v43 }
 0x1d9   : > { %10258 = vst [vmem:[#allocation136_spill] sm:$0xff] %v7404_v57  ;;  %10264 = vst [vmem:[#allocation141_spill] sm:$0xff] %v7421_v62  ;;  %v7428_v8 = vpop.f32.mrb[46].mxu1  ;;  %v10268_v57 = vunpack.c.h.bf16 %v7387_v12  ;;  %v10299_v2 = vunpack.c.l.bf16 %v7440_v42 }
 0x1da   : > { %10257 = vst [vmem:[#allocation135_spill] sm:$0xff] %v7402_v11  ;;  %v5270_v51 = vpack.c.bf16 %v7402_v11, %v7399_v29  ;;  %10267 = vst [vmem:[#allocation143_spill] sm:$0xff] %v7428_v8  ;;  %v7436_v62 = vpop.f32.mrb[47].mxu1  ;;  %v7445_v8 = vld [vmem:[%s6304_s27 + $0x38] ss:$12 sps:$4 sm:$0xff]  }
 0x1db   : > { %2017 = vmatmul.mubr.f32.gmra.mrb[98].mxu1 %v10265_v39  ;;  %v7426_v50 = vpop.f32.mrb[96].mxu0  ;;  %10270 = vst [vmem:[#allocation145_spill] sm:$0xff] %v7436_v62  ;;  %10271 = vst [vmem:[#allocation146_spill] sm:$0xff] %v7440_v42  ;;  %v7442_v54 = vpop.f32.mrb[48].mxu1  ;;  %v10278_v39 = vunpack.c.h.bf16 %v7068_v38  ;;  %v10279_v62 = vunpack.c.h.bf16 %v7412_v43  ;;  %v7475_v38 = vld [vmem:[%s6304_s27 + $0x50] ss:$12 sps:$4 sm:$0xff]  }
 0x1dc   : > { %10266 = vst [vmem:[#allocation142_spill] sm:$0xff] %v7426_v50  ;;  %5271 = vmatprep.subr.bf16.mxu0 %v5270_v51  ;;  %2021 = vmatprep.mubr.f32.mxu1 %v10268_v57  ;;  %v7434_v59 = vpop.f32.mrb[97].mxu0  ;;  %10272 = vst [vmem:[#allocation147_spill] sm:$0xff] %v7442_v54  ;;  %v7447_v57 = vpop.f32.mrb[49].mxu1  ;;  %v10302_v54 = vunpack.c.h.bf16 %v7445_v8  ;;  %v2491_v50 = vld [vmem:[%s9847_s5 + $0x20] sm:$0xff] }
 0x1dd   : > { %10269 = vst [vmem:[#allocation144_spill] sm:$0xff] %v7434_v59  ;;  %5273 = vmatpush3.bf16.msra.mxu0 %v5270_v51  ;;  %10273 = vst [vmem:[#allocation148_spill] sm:$0xff] %v7445_v8  ;;  %v7454_v51 = vpop.f32.mrb[50].mxu1 }
 0x1de   : > { %10274 = vst [vmem:[#allocation149_spill] sm:$0xff] %v7447_v57  ;;  %10277 = vst [vmem:[#allocation151_spill] sm:$0xff] %v7454_v51  ;;  %v7464_v12 = vpop.f32.mrb[51].mxu1  ;;  %v7470_v51 = vld [vmem:[%s6304_s27 + $0xe4] sm:$0xff] }
 0x1df   : > { %2022 = vmatmul.mubr.f32.gmra.mrb[100].mxu1 %v10275_v47  ;;  %v7452_v59 = vpop.f32.mrb[98].mxu0  ;;  %10281 = vst [vmem:[#allocation153_spill] sm:$0xff] %v7464_v12  ;;  %v10282_v47 = vunpack.c.l.bf16 %v7419_v0  ;;  %10283 = vst [vmem:[#allocation154_spill] sm:$0xff] %v7470_v51  ;;  %v7505_v0 = vld [vmem:[%s6304_s27 + $0x68] ss:$12 sps:$4 sm:$0xff]  }
 0x1e0   : > { %10276 = vst [vmem:[#allocation150_spill] sm:$0xff] %v7452_v59  ;;  %5032 = vmatmul.mubr.f32.vlgmr.msra.gmra.mrb[172].mxu0 %v10278_v39  ;;  %2026 = vmatprep.mubr.f32.mxu1 %v10279_v62  ;;  %v7462_v57 = vpop.f32.mrb[99].mxu0  ;;  %v7472_v39 = vpop.f32.mrb[52].mxu1  ;;  %10285 = vst [vmem:[#allocation156_spill] sm:$0xff] %v7475_v38 }
 0x1e1   : > { %10280 = vst [vmem:[#allocation152_spill] sm:$0xff] %v7462_v57  ;;  %5034 = vmatprep.mubr.f32.mxu0 %v10282_v47  ;;  %10284 = vst [vmem:[#allocation155_spill] sm:$0xff] %v7472_v39  ;;  %v7477_v62 = vpop.f32.mrb[53].mxu1  ;;  %v10291_v57 = vunpack.c.h.bf16 %v7440_v42  ;;  %v10314_v39 = vunpack.c.h.bf16 %v7475_v38 }
 0x1e2   : > { %10286 = vst [vmem:[#allocation157_spill] sm:$0xff] %v7477_v62  ;;  %v7484_v47 = vpop.f32.mrb[54].mxu1  ;;  %10297 = vst [vmem:[#allocation164_spill] sm:$0xff] %v7505_v0 }
 0x1e3   : > { %2027 = vmatmul.mubr.f32.gmra.mrb[102].mxu1 %v10287_v4  ;;  %v7482_v12 = vpop.f32.mrb[100].mxu0  ;;  %10289 = vst [vmem:[#allocation159_spill] sm:$0xff] %v7484_v47  ;;  %v7494_v43 = vpop.f32.mrb[55].mxu1  ;;  %v10294_v4 = vunpack.c.l.bf16 %v7445_v8  ;;  %v7500_v47 = vld [vmem:[%s6304_s27 + $0xf0] sm:$0xff]  ;;  %v7535_v8 = vld [vmem:[%s6304_s27 + $0x80] ss:$12 sps:$4 sm:$0xff]  }
 0x1e4   : > { %10288 = vst [vmem:[#allocation158_spill] sm:$0xff] %v7482_v12  ;;  %5035 = vmatmul.mubr.f32.gmra.mrb[174].mxu0 %v10290_v20  ;;  %2031 = vmatprep.mubr.f32.mxu1 %v10291_v57  ;;  %v7492_v62 = vpop.f32.mrb[101].mxu0  ;;  %10293 = vst [vmem:[#allocation161_spill] sm:$0xff] %v7494_v43  ;;  %v7502_v20 = vpop.f32.mrb[56].mxu1  ;;  %v10311_v12 = vunpack.c.l.bf16 %v7470_v51 }
 0x1e5   : > { %10292 = vst [vmem:[#allocation160_spill] sm:$0xff] %v7492_v62  ;;  %5037 = vmatprep.mubr.f32.mxu0 %v10294_v4  ;;  %10295 = vst [vmem:[#allocation162_spill] sm:$0xff] %v7500_v47  ;;  %v7507_v57 = vpop.f32.mrb[57].mxu1  ;;  %v10303_v62 = vunpack.c.h.bf16 %v7470_v51 }
 0x1e6   : > { %10296 = vst [vmem:[#allocation163_spill] sm:$0xff] %v7502_v20  ;;  %10298 = vst [vmem:[#allocation165_spill] sm:$0xff] %v7507_v57  ;;  %v7514_v4 = vpop.f32.mrb[58].mxu1  ;;  %v10326_v20 = vunpack.c.h.bf16 %v7505_v0 }
 0x1e7   : > { %2032 = vmatmul.mubr.f32.gmra.mrb[104].mxu1 %v10299_v2  ;;  %v7512_v43 = vpop.f32.mrb[102].mxu0  ;;  %10301 = vst [vmem:[#allocation167_spill] sm:$0xff] %v7514_v4  ;;  %v7524_v42 = vpop.f32.mrb[59].mxu1  ;;  %v10306_v2 = vunpack.c.l.bf16 %v7475_v38  ;;  %v7530_v4 = vld [vmem:[%s6304_s27 + $0xfc] sm:$0xff]  ;;  %10309 = vst [vmem:[#allocation172_spill] sm:$0xff] %v7535_v8 }
 0x1e8   : > { %10300 = vst [vmem:[#allocation166_spill] sm:$0xff] %v7512_v43  ;;  %5038 = vmatmul.mubr.f32.gmra.mrb[176].mxu0 %v10302_v54  ;;  %2036 = vmatprep.mubr.f32.mxu1 %v10303_v62  ;;  %v7522_v57 = vpop.f32.mrb[103].mxu0  ;;  %10305 = vst [vmem:[#allocation169_spill] sm:$0xff] %v7524_v42  ;;  %v7532_v54 = vpop.f32.mrb[60].mxu1  ;;  %v10323_v43 = vunpack.c.l.bf16 %v7500_v47  ;;  %v10327_v38 = vunpack.c.h.bf16 %v7530_v4 }
 0x1e9   : > { %10304 = vst [vmem:[#allocation168_spill] sm:$0xff] %v7522_v57  ;;  %5040 = vmatprep.mubr.f32.mxu0 %v10306_v2  ;;  %10307 = vst [vmem:[#allocation170_spill] sm:$0xff] %v7530_v4  ;;  %v7537_v62 = vpop.f32.mrb[61].mxu1  ;;  %v10315_v57 = vunpack.c.h.bf16 %v7500_v47 }
 0x1ea   : > { %10308 = vst [vmem:[#allocation171_spill] sm:$0xff] %v7532_v54  ;;  %10310 = vst [vmem:[#allocation173_spill] sm:$0xff] %v7537_v62  ;;  %v7544_v2 = vpop.f32.mrb[62].mxu1 }
 0x1eb   : > { %2037 = vmatmul.mubr.f32.gmra.mrb[106].mxu1 %v10311_v12  ;;  %v7542_v42 = vpop.f32.mrb[104].mxu0  ;;  %10313 = vst [vmem:[#allocation175_spill] sm:$0xff] %v7544_v2  ;;  %v7554_v51 = vpop.f32.mrb[63].mxu1  ;;  %v10318_v12 = vunpack.c.l.bf16 %v7505_v0  ;;  %v7560_v2 = vld [vmem:[%s6304_s27 + $0x108] sm:$0xff]  ;;  %v7590_v0 = vld [vmem:[%s6304_s27 + $0x114] sm:$0xff] }
 0x1ec   : > { %10312 = vst [vmem:[#allocation174_spill] sm:$0xff] %v7542_v42  ;;  %5041 = vmatmul.mubr.f32.gmra.mrb[178].mxu0 %v10314_v39  ;;  %2041 = vmatprep.mubr.f32.mxu1 %v10315_v57  ;;  %v7552_v62 = vpop.f32.mrb[105].mxu0  ;;  %10317 = vst [vmem:[#allocation177_spill] sm:$0xff] %v7554_v51  ;;  %v7562_v39 = vpop.f32.mrb[64].mxu1  ;;  %v7565_v57 = vld [vmem:[%s6304_s27 + $0x98] ss:$12 sps:$4 sm:$0xff]   ;;  %v10330_v51 = vunpack.c.l.bf16 %v7535_v8 }
 0x1ed   : > { %10316 = vst [vmem:[#allocation176_spill] sm:$0xff] %v7552_v62  ;;  %5043 = vmatprep.mubr.f32.mxu0 %v10318_v12  ;;  %10319 = vst [vmem:[#allocation178_spill] sm:$0xff] %v7560_v2  ;;  %v7567_v54 = vpop.f32.mrb[65].mxu1  ;;  %v7612_v42 = vld [vmem:[%s6304_s27 + $0x120] sm:$0xff]  ;;  %v10343_v47 = vunpack.c.h.bf16 %v7565_v57 }
 0x1ee   : > { %10320 = vst [vmem:[#allocation179_spill] sm:$0xff] %v7562_v39  ;;  %10321 = vst [vmem:[#allocation180_spill] sm:$0xff] %v7565_v57  ;;  %v7574_v12 = vpop.f32.mrb[66].mxu1 }
 0x1ef   : > { %10322 = vst [vmem:[#allocation181_spill] sm:$0xff] %v7567_v54  ;;  %2042 = vmatmul.mubr.f32.gmra.mrb[108].mxu1 %v10323_v43  ;;  %v7572_v62 = vpop.f32.mrb[106].mxu0  ;;  %10325 = vst [vmem:[#allocation183_spill] sm:$0xff] %v7574_v12  ;;  %v7584_v43 = vpop.f32.mrb[67].mxu1 }
 0x1f0   : > { %10324 = vst [vmem:[#allocation182_spill] sm:$0xff] %v7572_v62  ;;  %5044 = vmatmul.mubr.f32.gmra.mrb[180].mxu0 %v10326_v20  ;;  %2046 = vmatprep.mubr.f32.mxu1 %v10327_v38  ;;  %v7582_v54 = vpop.f32.mrb[107].mxu0  ;;  %10329 = vst [vmem:[#allocation185_spill] sm:$0xff] %v7584_v43  ;;  %v7593_v20 = vld [vmem:[%s6304_s27 + $0xb0] ss:$12 sps:$4 sm:$0xff]   ;;  %v10333_v38 = vunpack.c.l.bf16 %v7530_v4  ;;  %v10336_v43 = vunpack.c.h.bf16 %v7560_v2  ;;  %v10338_v4 = vunpack.c.l.bf16 %v7565_v57 }
 0x1f1   : > { %10328 = vst [vmem:[#allocation184_spill] sm:$0xff] %v7582_v54  ;;  %5046 = vmatprep.mubr.f32.mxu0 %v10330_v51  ;;  %10331 = vst [vmem:[#allocation186_spill] sm:$0xff] %v7590_v0  ;;  %v10335_v54 = vunpack.c.h.bf16 %v7535_v8  ;;  %v7615_v8 = vld [vmem:[%s6304_s27 + $0xc8] ss:$12 sps:$4 sm:$0xff]   ;;  %v7637_v57 = vld [vmem:[%s6304_s27 + $0xe0] ss:$12 sps:$4 sm:$0xff]  }
 0x1f2   : > { %10332 = vst [vmem:[#allocation187_spill] sm:$0xff] %v7593_v20  ;;  %10339 = vst [vmem:[#allocation190_spill] sm:$0xff] %v7612_v42 }
 0x1f3   : > { %2047 = vmatmul.mubr.f32.gmra.mrb[110].mxu1 %v10333_v38  ;;  %v7598_v39 = vpop.f32.mrb[108].mxu0  ;;  %10340 = vst [vmem:[#allocation191_spill] sm:$0xff] %v7615_v8  ;;  %10348 = vst [vmem:[#allocation195_spill] sm:$0xff] %v7637_v57  ;;  %v10351_v38 = vunpack.c.h.bf16 %v7593_v20 }
 0x1f4   : > { %10334 = vst [vmem:[#allocation188_spill] sm:$0xff] %v7598_v39  ;;  %5047 = vmatmul.mubr.f32.gmra.mrb[182].mxu0 %v10335_v54  ;;  %2051 = vmatprep.mubr.f32.mxu1 %v10336_v43  ;;  %v7606_v12 = vpop.f32.mrb[109].mxu0  ;;  %v10341_v54 = vunpack.c.l.bf16 %v7560_v2  ;;  %v10346_v2 = vunpack.c.l.bf16 %v7593_v20  ;;  %v7634_v43 = vld [vmem:[%s6304_s27 + $0x12c] sm:$0xff]  ;;  %v7659_v20 = vld [vmem:[%s6304_s27 + $0xf8] ss:$12 sps:$4 sm:$0xff]  }
 0x1f5   : > { %10337 = vst [vmem:[#allocation189_spill] sm:$0xff] %v7606_v12  ;;  %5049 = vmatprep.mubr.f32.mxu0 %v10338_v4  ;;  %v10344_v12 = vunpack.c.h.bf16 %v7590_v0  ;;  %10347 = vst [vmem:[#allocation194_spill] sm:$0xff] %v7634_v43 }
 0x1f6   : > { %10356 = vst [vmem:[#allocation199_spill] sm:$0xff] %v7659_v20 }
 0x1f7   : > { %2052 = vmatmul.mubr.f32.gmra.mrb[112].mxu1 %v10341_v54  ;;  %v7620_v51 = vpop.f32.mrb[110].mxu0  ;;  %v10359_v54 = vunpack.c.h.bf16 %v7615_v8 }
 0x1f8   : > { %10342 = vst [vmem:[#allocation192_spill] sm:$0xff] %v7620_v51  ;;  %5050 = vmatmul.mubr.f32.gmra.mrb[184].mxu0 %v10343_v47  ;;  %2056 = vmatprep.mubr.f32.mxu1 %v10344_v12  ;;  %v7628_v39 = vpop.f32.mrb[111].mxu0  ;;  %v10349_v47 = vunpack.c.l.bf16 %v7590_v0  ;;  %v10354_v0 = vunpack.c.l.bf16 %v7615_v8  ;;  %v7656_v12 = vld [vmem:[%s6304_s27 + $0x138] sm:$0xff] }
 0x1f9   : > { %10345 = vst [vmem:[#allocation193_spill] sm:$0xff] %v7628_v39  ;;  %5052 = vmatprep.mubr.f32.mxu0 %v10346_v2  ;;  %v10352_v39 = vunpack.c.h.bf16 %v7612_v42  ;;  %10355 = vst [vmem:[#allocation198_spill] sm:$0xff] %v7656_v12  ;;  %v7681_v8 = vld [vmem:[%s6304_s27 + $0x110] ss:$12 sps:$4 sm:$0xff]  }
 0x1fa   : > { %10364 = vst [vmem:[#allocation203_spill] sm:$0xff] %v7681_v8 }
 0x1fb   : > { %2057 = vmatmul.mubr.f32.gmra.mrb[114].mxu1 %v10349_v47  ;;  %v7642_v4 = vpop.f32.mrb[112].mxu0  ;;  %v10367_v47 = vunpack.c.h.bf16 %v7637_v57 }
 0x1fc   : > { %10350 = vst [vmem:[#allocation196_spill] sm:$0xff] %v7642_v4  ;;  %5053 = vmatmul.mubr.f32.gmra.mrb[186].mxu0 %v10351_v38  ;;  %2061 = vmatprep.mubr.f32.mxu1 %v10352_v39  ;;  %v7650_v51 = vpop.f32.mrb[113].mxu0  ;;  %v10357_v38 = vunpack.c.l.bf16 %v7612_v42  ;;  %v10362_v42 = vunpack.c.l.bf16 %v7637_v57  ;;  %v7678_v39 = vld [vmem:[%s6304_s27 + $0x144] sm:$0xff] }
 0x1fd   : > { %10353 = vst [vmem:[#allocation197_spill] sm:$0xff] %v7650_v51  ;;  %5055 = vmatprep.mubr.f32.mxu0 %v10354_v0  ;;  %v10360_v51 = vunpack.c.h.bf16 %v7634_v43  ;;  %10363 = vst [vmem:[#allocation202_spill] sm:$0xff] %v7678_v39  ;;  %v7703_v57 = vld [vmem:[%s6304_s27 + $0x128] ss:$12 sps:$4 sm:$0xff]  }
 0x1fe   : > { %10372 = vst [vmem:[#allocation207_spill] sm:$0xff] %v7703_v57 }
 0x1ff   : > { %2062 = vmatmul.mubr.f32.gmra.mrb[116].mxu1 %v10357_v38  ;;  %v7664_v2 = vpop.f32.mrb[114].mxu0  ;;  %v10375_v38 = vunpack.c.h.bf16 %v7659_v20 }
 0x200   : > { %10358 = vst [vmem:[#allocation200_spill] sm:$0xff] %v7664_v2  ;;  %5056 = vmatmul.mubr.f32.gmra.mrb[188].mxu0 %v10359_v54  ;;  %2066 = vmatprep.mubr.f32.mxu1 %v10360_v51  ;;  %v7672_v4 = vpop.f32.mrb[115].mxu0  ;;  %v10365_v54 = vunpack.c.l.bf16 %v7634_v43  ;;  %v10370_v43 = vunpack.c.l.bf16 %v7659_v20  ;;  %v7700_v51 = vld [vmem:[%s6304_s27 + $0x150] sm:$0xff]  ;;  %v7725_v20 = vld [vmem:[%s6304_s27 + $0x140] ss:$12 sps:$4 sm:$0xff]  }
 0x201   : > { %10361 = vst [vmem:[#allocation201_spill] sm:$0xff] %v7672_v4  ;;  %5058 = vmatprep.mubr.f32.mxu0 %v10362_v42  ;;  %v10368_v4 = vunpack.c.h.bf16 %v7656_v12  ;;  %10371 = vst [vmem:[#allocation206_spill] sm:$0xff] %v7700_v51  ;;  %v10394_v62 = vunpack.c.l.bf16 %v7725_v20 }
 0x202   : > { %10380 = vst [vmem:[#allocation211_spill] sm:$0xff] %v7725_v20 }
 0x203   : > { %2067 = vmatmul.mubr.f32.gmra.mrb[118].mxu1 %v10365_v54  ;;  %v7686_v0 = vpop.f32.mrb[116].mxu0  ;;  %v10383_v54 = vunpack.c.h.bf16 %v7681_v8 }
 0x204   : > { %10366 = vst [vmem:[#allocation204_spill] sm:$0xff] %v7686_v0  ;;  %5059 = vmatmul.mubr.f32.gmra.mrb[190].mxu0 %v10367_v47  ;;  %2071 = vmatprep.mubr.f32.mxu1 %v10368_v4  ;;  %v7694_v2 = vpop.f32.mrb[117].mxu0  ;;  %v10373_v47 = vunpack.c.l.bf16 %v7656_v12  ;;  %v10378_v12 = vunpack.c.l.bf16 %v7681_v8  ;;  %v7722_v4 = vld [vmem:[%s6304_s27 + $0x15c] sm:$0xff]  ;;  %v7747_v8 = vld [vmem:[%s6304_s27 + $0x158] ss:$12 sps:$4 sm:$0xff]  }
 0x205   : > { %10369 = vst [vmem:[#allocation205_spill] sm:$0xff] %v7694_v2  ;;  %5061 = vmatprep.mubr.f32.mxu0 %v10370_v43  ;;  %v10376_v2 = vunpack.c.h.bf16 %v7678_v39  ;;  %10379 = vst [vmem:[#allocation210_spill] sm:$0xff] %v7722_v4 }
 0x206   : > { %10388 = vst [vmem:[#allocation215_spill] sm:$0xff] %v7747_v8 }
 0x207   : > { %2072 = vmatmul.mubr.f32.gmra.mrb[120].mxu1 %v10373_v47  ;;  %v7708_v42 = vpop.f32.mrb[118].mxu0  ;;  %v10391_v47 = vunpack.c.h.bf16 %v7703_v57 }
 0x208   : > { %10374 = vst [vmem:[#allocation208_spill] sm:$0xff] %v7708_v42  ;;  %5062 = vmatmul.mubr.f32.gmra.mrb[192].mxu0 %v10375_v38  ;;  %2076 = vmatprep.mubr.f32.mxu1 %v10376_v2  ;;  %v7716_v0 = vpop.f32.mrb[119].mxu0  ;;  %v10381_v38 = vunpack.c.l.bf16 %v7678_v39  ;;  %v10386_v39 = vunpack.c.l.bf16 %v7703_v57  ;;  %v7744_v2 = vld [vmem:[%s6304_s27 + $0x168] sm:$0xff] }
 0x209   : > { %10377 = vst [vmem:[#allocation209_spill] sm:$0xff] %v7716_v0  ;;  %5064 = vmatprep.mubr.f32.mxu0 %v10378_v12  ;;  %v10384_v0 = vunpack.c.h.bf16 %v7700_v51  ;;  %10387 = vst [vmem:[#allocation214_spill] sm:$0xff] %v7744_v2 }
 0x20b   : > { %2077 = vmatmul.mubr.f32.gmra.mrb[122].mxu1 %v10381_v38  ;;  %v7730_v43 = vpop.f32.mrb[120].mxu0  ;;  %v10399_v38 = vunpack.c.h.bf16 %v7725_v20  ;;  %v7803_v20 = vld [vmem:[%s6304_s27 + $0x188] ss:$12 sps:$4 sm:$0xff]  }
 0x20c   : > { %10382 = vst [vmem:[#allocation212_spill] sm:$0xff] %v7730_v43  ;;  %5065 = vmatmul.mubr.f32.gmra.mrb[194].mxu0 %v10383_v54  ;;  %2081 = vmatprep.mubr.f32.mxu1 %v10384_v0  ;;  %v7738_v42 = vpop.f32.mrb[121].mxu0  ;;  %v10389_v54 = vunpack.c.l.bf16 %v7700_v51  ;;  %v7766_v0 = vld [vmem:[%s6304_s27 + $0x174] sm:$0xff]  ;;  %v7769_v51 = vld [vmem:[%s6304_s27 + $0x170] ss:$12 sps:$4 sm:$0xff]   ;;  %10404 = vst [vmem:[#allocation223_spill] sm:$0xff] %v7803_v20 }
 0x20d   : > { %10385 = vst [vmem:[#allocation213_spill] sm:$0xff] %v7738_v42  ;;  %5067 = vmatprep.mubr.f32.mxu0 %v10386_v39  ;;  %v10392_v42 = vunpack.c.h.bf16 %v7722_v4  ;;  %10395 = vst [vmem:[#allocation218_spill] sm:$0xff] %v7766_v0 }
 0x20e   : > { %10396 = vst [vmem:[#allocation219_spill] sm:$0xff] %v7769_v51 }
 0x20f   : > { %2082 = vmatmul.mubr.f32.gmra.mrb[124].mxu1 %v10389_v54  ;;  %v7752_v12 = vpop.f32.mrb[122].mxu0 }
 0x210   : > { %10390 = vst [vmem:[#allocation216_spill] sm:$0xff] %v7752_v12  ;;  %5068 = vmatmul.mubr.f32.gmra.mrb[196].mxu0 %v10391_v47  ;;  %2086 = vmatprep.mubr.f32.mxu1 %v10392_v42  ;;  %v7760_v43 = vpop.f32.mrb[123].mxu0  ;;  %v10397_v47 = vunpack.c.l.bf16 %v7722_v4  ;;  %v2490_v42 = vld [vmem:[%s9847_s5 + $0x18] sm:$0xff]  ;;  %v10405_v12 = vunpack.c.l.bf16 %v7744_v2 }
 0x211   : > { %10393 = vst [vmem:[#allocation217_spill] sm:$0xff] %v7760_v43  ;;  %5070 = vmatprep.mubr.f32.mxu0 %v10394_v62  ;;  %v10400_v62 = vunpack.c.h.bf16 %v7744_v2  ;;  %v2487_v43 = vld [vmem:[%s9847_s5] sm:$0xff] }
 0x212   : > { %v2495_v2 = vld [vmem:[%s9847_s5 + $0x40] sm:$0xff] }
 0x213   : > { %2087 = vmatmul.mubr.f32.gmra.mrb[126].mxu1 %v10397_v47  ;;  %v7774_v39 = vpop.f32.mrb[124].mxu0  ;;  %v2488_v47 = vld [vmem:[%s9847_s5 + $0x8] sm:$0xff] }
 0x214   : > { %10398 = vst [vmem:[#allocation220_spill] sm:$0xff] %v7774_v39  ;;  %5071 = vmatmul.mubr.f32.gmra.mrb[198].mxu0 %v10399_v38  ;;  %2091 = vmatprep.mubr.f32.mxu1 %v10400_v62  ;;  %v7782_v57 = vpop.f32.mrb[125].mxu0  ;;  %v10402_v39 = vunpack.c.l.bf16 %v7747_v8  ;;  %v7794_v62 = vld [vmem:[%s6304_s27 + $0x180] sm:$0xff]  ;;  %v5274_v54 = vpack.c.bf16 %v2490_v42, %v2488_v47  ;;  %v10407_v42 = vunpack.c.h.bf16 %v7747_v8  ;;  %v10408_v47 = vunpack.c.h.bf16 %v7766_v0 }
 0x215   : > { %10401 = vst [vmem:[#allocation221_spill] sm:$0xff] %v7782_v57  ;;  %10403 = vst [vmem:[#allocation222_spill] sm:$0xff] %v7794_v62  ;;  %v2489_v57 = vld [vmem:[%s9847_s5 + $0x10] sm:$0xff] }
 0x216   : > { %5073 = vmatprep.mubr.f32.mxu0 %v10402_v39  ;;  %v5276_v4 = vpack.c.bf16 %v2489_v57, %v2487_v43  ;;  %5275 = vmatprep.subr.bf16.mxu0 %v5274_v54  ;;  %v2492_v43 = vld [vmem:[%s9847_s5 + $0x28] sm:$0xff]  ;;  %v10410_v54 = vunpack.c.l.bf16 %v7769_v51  ;;  %v2493_v39 = vld [vmem:[%s9847_s5 + $0x30] sm:$0xff] }
 0x217   : > { %2092 = vmatmul.mubr.f32.gmra.mrb[128].mxu1 %v10405_v12  ;;  %v7808_v38 = vpop.f32.mrb[126].mxu0  ;;  %v2494_v12 = vld [vmem:[%s9847_s5 + $0x38] sm:$0xff] }
 0x218   : > { %10406 = vst [vmem:[#allocation224_spill] sm:$0xff] %v7808_v38  ;;  %5074 = vmatmul.mubr.f32.gmra.mrb[200].mxu0 %v10407_v42  ;;  %2096 = vmatprep.mubr.f32.mxu1 %v10408_v47  ;;  %v7816_v57 = vpop.f32.mrb[127].mxu0  ;;  %v7828_v47 = vld [vmem:[%s6304_s27 + $0x18c] sm:$0xff]  ;;  %v5278_v59 = vpack.c.bf16 %v2494_v12, %v2492_v43  ;;  %v10416_v43 = vunpack.c.h.bf16 %v7794_v62 }
 0x219   : > { %10409 = vst [vmem:[#allocation225_spill] sm:$0xff] %v7816_v57  ;;  %5076 = vmatprep.mubr.f32.mxu0 %v10410_v54  ;;  %10411 = vst [vmem:[#allocation226_spill] sm:$0xff] %v7828_v47  ;;  %5277 = vmatpush1.bf16.msra.mxu0 %v5276_v4  ;;  %v7837_v38 = vld [vmem:[%s6304_s27 + $0x1a0] ss:$12 sps:$4 sm:$0xff]   ;;  %v5280_v57 = vpack.c.bf16 %v2493_v39, %v2491_v50  ;;  %v10413_v54 = vunpack.c.l.bf16 %v7766_v0  ;;  %v10415_v4 = vunpack.c.h.bf16 %v7769_v51 }
 0x21a   : > { %10412 = vst [vmem:[#allocation227_spill] sm:$0xff] %v7837_v38  ;;  %5279 = vmatprep.subr.bf16.mxu0 %v5278_v59  ;;  %v2496_v39 = vld [vmem:[%s9847_s5 + $0x48] sm:$0xff]  ;;  %v2498_v59 = vld [vmem:[%s9847_s5 + $0x58] sm:$0xff]  ;;  %v2497_v42 = vld [vmem:[%s9847_s5 + $0x50] sm:$0xff] }
 0x21b   : > { %2097 = vmatmul.mubr.f32.gmra.mrb[130].mxu1 %v10413_v54  ;;  %v7842_v8 = vpop.f32.mrb[128].mxu0  ;;  %v10418_v54 = vunpack.c.l.bf16 %v7803_v20  ;;  %v5282_v12 = vpack.c.bf16 %v2498_v59, %v2496_v39  ;;  %v10424_v39 = vunpack.c.h.bf16 %v7828_v47  ;;  %v2499_v0 = vld [vmem:[%s9847_s5 + $0x60] sm:$0xff]  ;;  %v2501_v51 = vld [vmem:[%s9847_s5 + $0x70] sm:$0xff] }
 0x21c   : > { %10414 = vst [vmem:[#allocation228_spill] sm:$0xff] %v7842_v8  ;;  %5077 = vmatmul.mubr.f32.gmra.mrb[202].mxu0 %v10415_v4  ;;  %2101 = vmatprep.mubr.f32.mxu1 %v10416_v43  ;;  %v7850_v50 = vpop.f32.mrb[129].mxu0  ;;  %v7861_v4 = vld [vmem:[%s6304_s27 + $0x198] sm:$0xff] }
 0x21d   : > { %10417 = vst [vmem:[#allocation229_spill] sm:$0xff] %v7850_v50  ;;  %5079 = vmatprep.mubr.f32.mxu0 %v10418_v54  ;;  %10419 = vst [vmem:[#allocation230_spill] sm:$0xff] %v7861_v4  ;;  %5281 = vmatpush1.bf16.msra.mxu0 %v5280_v57  ;;  %v7871_v8 = vld [vmem:[%s6304_s27 + $0x1b8] ss:$12 sps:$4 sm:$0xff]   ;;  %v5284_v50 = vpack.c.bf16 %v2497_v42, %v2495_v2  ;;  %v10421_v54 = vunpack.c.l.bf16 %v7794_v62  ;;  %v10423_v57 = vunpack.c.h.bf16 %v7803_v20  ;;  %v2505_v20 = vld [vmem:[%s9847_s5 + $0x90] sm:$0xff] }
 0x21e   : > { %10420 = vst [vmem:[#allocation231_spill] sm:$0xff] %v7871_v8  ;;  %5283 = vmatprep.subr.bf16.mxu0 %v5282_v12  ;;  %v2500_v42 = vld [vmem:[%s9847_s5 + $0x68] sm:$0xff]  ;;  %v2502_v12 = vld [vmem:[%s9847_s5 + $0x78] sm:$0xff]  ;;  %v2503_v62 = vld [vmem:[%s9847_s5 + $0x80] sm:$0xff] }
 0x21f   : > { %2102 = vmatmul.mubr.f32.gmra.mrb[132].mxu1 %v10421_v54  ;;  %v7876_v43 = vpop.f32.mrb[130].mxu0  ;;  %v10426_v54 = vunpack.c.l.bf16 %v7837_v38  ;;  %v5286_v59 = vpack.c.bf16 %v2502_v12, %v2500_v42  ;;  %v10432_v42 = vunpack.c.h.bf16 %v7837_v38  ;;  %v10437_v38 = vunpack.c.l.bf16 %v7861_v4 }
 0x220   : > { %10422 = vst [vmem:[#allocation232_spill] sm:$0xff] %v7876_v43  ;;  %5080 = vmatmul.mubr.f32.gmra.mrb[204].mxu0 %v10423_v57  ;;  %2106 = vmatprep.mubr.f32.mxu1 %v10424_v39  ;;  %v7884_v2 = vpop.f32.mrb[131].mxu0  ;;  %v7895_v57 = vld [vmem:[%s6304_s27 + $0x1a4] sm:$0xff]  ;;  %v7905_v43 = vld [vmem:[%s6304_s27 + $0x1d0] ss:$12 sps:$4 sm:$0xff]  }
 0x221   : > { %10425 = vst [vmem:[#allocation233_spill] sm:$0xff] %v7884_v2  ;;  %5082 = vmatprep.mubr.f32.mxu0 %v10426_v54  ;;  %10427 = vst [vmem:[#allocation234_spill] sm:$0xff] %v7895_v57  ;;  %5285 = vmatpush1.bf16.msra.mxu0 %v5284_v50  ;;  %v5288_v2 = vpack.c.bf16 %v2501_v51, %v2499_v0  ;;  %v10429_v54 = vunpack.c.l.bf16 %v7828_v47  ;;  %v10431_v50 = vunpack.c.h.bf16 %v7861_v4  ;;  %v2504_v0 = vld [vmem:[%s9847_s5 + $0x88] sm:$0xff]  ;;  %v2507_v47 = vld [vmem:[%s9847_s5 + $0xa0] sm:$0xff] }
 0x222   : > { %10428 = vst [vmem:[#allocation235_spill] sm:$0xff] %v7905_v43  ;;  %5287 = vmatprep.subr.bf16.mxu0 %v5286_v59  ;;  %v2506_v59 = vld [vmem:[%s9847_s5 + $0x98] sm:$0xff]  ;;  %v2511_v4 = vld [vmem:[%s9847_s5 + $0xc0] sm:$0xff] }
 0x223   : > { %2107 = vmatmul.mubr.f32.gmra.mrb[134].mxu1 %v10429_v54  ;;  %v7910_v39 = vpop.f32.mrb[132].mxu0  ;;  %v7927_v54 = vld [vmem:[%s6304_s27 + $0x1b0] sm:$0xff]  ;;  %v5290_v12 = vpack.c.bf16 %v2506_v59, %v2504_v0  ;;  %v10440_v59 = vunpack.c.h.bf16 %v7871_v8 }
 0x224   : > { %10430 = vst [vmem:[#allocation236_spill] sm:$0xff] %v7910_v39  ;;  %2111 = vmatprep.mubr.f32.mxu1 %v10431_v50  ;;  %5083 = vmatmul.mubr.f32.gmra.mrb[206].mxu0 %v10432_v42  ;;  %v7918_v51 = vpop.f32.mrb[133].mxu0  ;;  %10434 = vst [vmem:[#allocation238_spill] sm:$0xff] %v7927_v54  ;;  %v10435_v50 = vunpack.c.l.bf16 %v7871_v8  ;;  %v7939_v39 = vld [vmem:[%s6304_s27 + $0x1e8] ss:$12 sps:$4 sm:$0xff]   ;;  %v10445_v8 = vunpack.c.l.bf16 %v7895_v57 }
 0x225   : > { %10433 = vst [vmem:[#allocation237_spill] sm:$0xff] %v7918_v51  ;;  %5289 = vmatpush1.bf16.msra.mxu0 %v5288_v2  ;;  %10436 = vst [vmem:[#allocation239_spill] sm:$0xff] %v7939_v39  ;;  %v5292_v51 = vpack.c.bf16 %v2505_v20, %v2503_v62  ;;  %v10439_v2 = vunpack.c.h.bf16 %v7895_v57  ;;  %v2510_v62 = vld [vmem:[%s9847_s5 + $0xb8] sm:$0xff]  ;;  %v2515_v57 = vld [vmem:[%s9847_s5 + $0xe0] sm:$0xff] }
 0x226   : > { %5085 = vmatprep.mubr.f32.mxu0 %v10435_v50  ;;  %5291 = vmatprep.subr.bf16.mxu0 %v5290_v12  ;;  %v7961_v12 = vld [vmem:[%s6304_s27 + $0x1bc] sm:$0xff]  ;;  %v2509_v50 = vld [vmem:[%s9847_s5 + $0xb0] sm:$0xff] }
 0x227   : > { %2112 = vmatmul.mubr.f32.gmra.mrb[136].mxu1 %v10437_v38  ;;  %v7944_v42 = vpop.f32.mrb[134].mxu0  ;;  %v2508_v38 = vld [vmem:[%s9847_s5 + $0xa8] sm:$0xff]  ;;  %10442 = vst [vmem:[#allocation242_spill] sm:$0xff] %v7961_v12 }
 0x228   : > { %10438 = vst [vmem:[#allocation240_spill] sm:$0xff] %v7944_v42  ;;  %2116 = vmatprep.mubr.f32.mxu1 %v10439_v2  ;;  %5086 = vmatmul.mubr.f32.gmra.mrb[208].mxu0 %v10440_v59  ;;  %v7952_v20 = vpop.f32.mrb[135].mxu0  ;;  %v10443_v2 = vunpack.c.l.bf16 %v7905_v43  ;;  %v5294_v59 = vpack.c.bf16 %v2510_v62, %v2508_v38  ;;  %v7973_v42 = vld [vmem:[%s6304_s27 + $0x200] ss:$12 sps:$4 sm:$0xff]   ;;  %v10448_v62 = vunpack.c.h.bf16 %v7905_v43  ;;  %v10453_v43 = vunpack.c.l.bf16 %v7927_v54 }
 0x229   : > { %10441 = vst [vmem:[#allocation241_spill] sm:$0xff] %v7952_v20  ;;  %5293 = vmatpush1.bf16.msra.mxu0 %v5292_v51  ;;  %10444 = vst [vmem:[#allocation243_spill] sm:$0xff] %v7973_v42  ;;  %v5296_v20 = vpack.c.bf16 %v2509_v50, %v2507_v47  ;;  %v10447_v51 = vunpack.c.h.bf16 %v7927_v54  ;;  %v2514_v50 = vld [vmem:[%s9847_s5 + $0xd8] sm:$0xff] }
 0x22a   : > { %5088 = vmatprep.mubr.f32.mxu0 %v10443_v2  ;;  %5295 = vmatprep.subr.bf16.mxu0 %v5294_v59  ;;  %v7995_v59 = vld [vmem:[%s6304_s27 + $0x1c8] sm:$0xff] }
 0x22b   : > { %2117 = vmatmul.mubr.f32.gmra.mrb[138].mxu1 %v10445_v8  ;;  %v7978_v0 = vpop.f32.mrb[136].mxu0  ;;  %v2512_v8 = vld [vmem:[%s9847_s5 + $0xc8] sm:$0xff]  ;;  %10450 = vst [vmem:[#allocation246_spill] sm:$0xff] %v7995_v59  ;;  %v2513_v2 = vld [vmem:[%s9847_s5 + $0xd0] sm:$0xff] }
 0x22c   : > { %10446 = vst [vmem:[#allocation244_spill] sm:$0xff] %v7978_v0  ;;  %2121 = vmatprep.mubr.f32.mxu1 %v10447_v51  ;;  %5089 = vmatmul.mubr.f32.gmra.mrb[210].mxu0 %v10448_v62  ;;  %v7986_v47 = vpop.f32.mrb[137].mxu0  ;;  %v10451_v51 = vunpack.c.l.bf16 %v7939_v39  ;;  %v5298_v62 = vpack.c.bf16 %v2514_v50, %v2512_v8  ;;  %v8007_v0 = vld [vmem:[%s6304_s27 + $0x218] ss:$12 sps:$4 sm:$0xff]   ;;  %v10456_v50 = vunpack.c.h.bf16 %v7939_v39  ;;  %v10461_v39 = vunpack.c.l.bf16 %v7961_v12 }
 0x22d   : > { %10449 = vst [vmem:[#allocation245_spill] sm:$0xff] %v7986_v47  ;;  %5297 = vmatpush1.bf16.msra.mxu0 %v5296_v20  ;;  %10452 = vst [vmem:[#allocation247_spill] sm:$0xff] %v8007_v0  ;;  %v5300_v47 = vpack.c.bf16 %v2513_v2, %v2511_v4  ;;  %v10455_v20 = vunpack.c.h.bf16 %v7961_v12  ;;  %v2518_v2 = vld [vmem:[%s9847_s5 + $0xf8] sm:$0xff] }
 0x22e   : > { %5091 = vmatprep.mubr.f32.mxu0 %v10451_v51  ;;  %5299 = vmatprep.subr.bf16.mxu0 %v5298_v62  ;;  %v8029_v62 = vld [vmem:[%s6304_s27 + $0x1d4] sm:$0xff] }
 0x22f   : > { %2122 = vmatmul.mubr.f32.gmra.mrb[140].mxu1 %v10453_v43  ;;  %v8012_v38 = vpop.f32.mrb[138].mxu0  ;;  %v2516_v43 = vld [vmem:[%s9847_s5 + $0xe8] sm:$0xff]  ;;  %10458 = vst [vmem:[#allocation250_spill] sm:$0xff] %v8029_v62  ;;  %v2517_v51 = vld [vmem:[%s9847_s5 + $0xf0] sm:$0xff] }
 0x230   : > { %10454 = vst [vmem:[#allocation248_spill] sm:$0xff] %v8012_v38  ;;  %2126 = vmatprep.mubr.f32.mxu1 %v10455_v20  ;;  %5092 = vmatmul.mubr.f32.gmra.mrb[212].mxu0 %v10456_v50  ;;  %v8020_v4 = vpop.f32.mrb[139].mxu0  ;;  %v10459_v20 = vunpack.c.l.bf16 %v7973_v42  ;;  %v5302_v50 = vpack.c.bf16 %v2518_v2, %v2516_v43  ;;  %v8041_v38 = vld [vmem:[%s6304_s27 + $0x230] ss:$12 sps:$4 sm:$0xff]   ;;  %v10464_v2 = vunpack.c.h.bf16 %v7973_v42 }
 0x231   : > { %10457 = vst [vmem:[#allocation249_spill] sm:$0xff] %v8020_v4  ;;  %5301 = vmatpush1.bf16.msra.mxu0 %v5300_v47  ;;  %10460 = vst [vmem:[#allocation251_spill] sm:$0xff] %v8041_v38  ;;  %v5304_v4 = vpack.c.bf16 %v2517_v51, %v2515_v57  ;;  %v10463_v47 = vunpack.c.h.bf16 %v7995_v59  ;;  %v8057_v51 = vld [vmem:[%s6304_s27 + $0x1e0] sm:$0xff] }
 0x232   : > { %5094 = vmatprep.mubr.f32.mxu0 %v10459_v20  ;;  %v9988_v20 = vunpack.c.l.bf16 %v7995_v59  ;;  %5303 = vmatprep.subr.bf16.mxu0 %v5302_v50  ;;  %10466 = vst [vmem:[#allocation254_spill] sm:$0xff] %v8057_v51  ;;  %v9990_v54 = vunpack.c.h.bf16 %v8057_v51  ;;  %v8133_v42 = vld [vmem:[%s6304_s27 + $0x21c] sm:$0xff] }
 0x233   : > { %2127 = vmatmul.mubr.f32.gmra.mrb[142].mxu1 %v10461_v39  ;;  %v8046_v8 = vpop.f32.mrb[140].mxu0  ;;  %v10467_v39 = vunpack.c.l.bf16 %v8007_v0  ;;  %10486 = vst [vmem:[#allocation269_spill] sm:$0xff] %v8133_v42 }
 0x234   : > { %10462 = vst [vmem:[#allocation252_spill] sm:$0xff] %v8046_v8  ;;  %2131 = vmatprep.mubr.f32.mxu1 %v10463_v47  ;;  %5095 = vmatmul.mubr.f32.gmra.mrb[214].mxu0 %v10464_v2  ;;  %v8054_v57 = vpop.f32.mrb[141].mxu0  ;;  %v9989_v47 = vunpack.c.l.bf16 %v8029_v62  ;;  %v10469_v2 = vunpack.c.h.bf16 %v8029_v62  ;;  %v10470_v8 = vunpack.c.h.bf16 %v8007_v0  ;;  %v8120_v0 = vld [vmem:[%s6304_s27 + $0x210] sm:$0xff] }
 0x235   : > { %10465 = vst [vmem:[#allocation253_spill] sm:$0xff] %v8054_v57  ;;  %5097 = vmatprep.mubr.f32.mxu0 %v10467_v39  ;;  %5305 = vmatpush1.bf16.msra.mxu0 %v5304_v4  ;;  %v9991_v39 = vunpack.c.h.bf16 %v8041_v38  ;;  %v8076_v4 = vld [vmem:[%s6304_s27 + $0x1ec] sm:$0xff]  ;;  %v10477_v57 = vmov 0.0   ;;  %10483 = vst [vmem:[#allocation266_spill] sm:$0xff] %v8120_v0 }
 0x236   : > { %10472 = vst [vmem:[#allocation257_spill] sm:$0xff] %v8076_v4 }
 0x237   : > { %2132 = vmatmul.mubr.f32.gmra.mrb[144].mxu1 %v9988_v20  ;;  %v8065_v43 = vpop.f32.mrb[142].mxu0  ;;  %v10473_v20 = vunpack.c.l.bf16 %v8041_v38 }
 0x238   : > { %10468 = vst [vmem:[#allocation255_spill] sm:$0xff] %v8065_v43  ;;  %2136 = vmatprep.mubr.f32.mxu1 %v10469_v2  ;;  %5098 = vmatmul.mubr.f32.gmra.mrb[216].mxu0 %v10470_v8  ;;  %v8073_v50 = vpop.f32.mrb[143].mxu0  ;;  %v9994_v2 = vunpack.c.l.bf16 %v8057_v51  ;;  %v9995_v8 = vunpack.c.h.bf16 %v8076_v4 }
 0x239   : > { %10471 = vst [vmem:[#allocation256_spill] sm:$0xff] %v8073_v50  ;;  %5100 = vmatprep.mubr.f32.mxu0 %v10473_v20  ;;  %v8093_v20 = vld [vmem:[%s6304_s27 + $0x1f8] sm:$0xff] }
 0x23a   : > { %10476 = vst [vmem:[#allocation260_spill] sm:$0xff] %v8093_v20  ;;  %v10002_v38 = vunpack.c.l.bf16 %v8093_v20 }
 0x23b   : > { %2137 = vmatmul.mubr.f32.gmra.mrb[146].mxu1 %v9989_v47  ;;  %v8083_v43 = vpop.f32.mrb[144].mxu0  ;;  %v9998_v47 = vunpack.c.l.bf16 %v8076_v4 }
 0x23c   : > { %10474 = vst [vmem:[#allocation258_spill] sm:$0xff] %v8083_v43  ;;  %2141 = vmatprep.mubr.f32.mxu1 %v9990_v54  ;;  %5101 = vmatmul.mubr.f32.gmra.mrb[218].mxu0 %v9991_v39  ;;  %v8090_v50 = vpop.f32.mrb[145].mxu0  ;;  %v9999_v54 = vunpack.c.h.bf16 %v8093_v20  ;;  %v8146_v20 = vld [vmem:[%s6304_s27 + $0x228] sm:$0xff] }
 0x23d   : > { %10475 = vst [vmem:[#allocation259_spill] sm:$0xff] %v8090_v50  ;;  %2583 = vmatprep.mubr.f32.mxu0 %v10477_v57  ;;  %v8107_v50 = vld [vmem:[%s6304_s27 + $0x204] sm:$0xff]  ;;  %10489 = vst [vmem:[#allocation272_spill] sm:$0xff] %v8146_v20 }
 0x23e   : > { %10480 = vst [vmem:[#allocation263_spill] sm:$0xff] %v8107_v50 }
 0x23f   : > { %2142 = vmatmul.mubr.f32.gmra.mrb[148].mxu1 %v9994_v2  ;;  %v8099_v43 = vpop.f32.mrb[146].mxu0 }
 0x240   : > { %10478 = vst [vmem:[#allocation261_spill] sm:$0xff] %v8099_v43  ;;  %2146 = vmatprep.mubr.f32.mxu1 %v9995_v8  ;;  %v8104_v39 = vpop.f32.mrb[147].mxu0  ;;  %v10003_v43 = vunpack.c.h.bf16 %v8107_v50 }
 0x241   : > { %10479 = vst [vmem:[#allocation262_spill] sm:$0xff] %v8104_v39  ;;  %v10008_v39 = vunpack.c.l.bf16 %v8107_v50 }
 0x243   : > { %2147 = vmatmul.mubr.f32.gmra.mrb[150].mxu1 %v9998_v47  ;;  %v8112_v2 = vpop.f32.mrb[148].mxu0 }
 0x244   : > { %10481 = vst [vmem:[#allocation264_spill] sm:$0xff] %v8112_v2  ;;  %2151 = vmatprep.mubr.f32.mxu1 %v9999_v54  ;;  %v8117_v8 = vpop.f32.mrb[149].mxu0  ;;  %v10009_v2 = vunpack.c.h.bf16 %v8120_v0 }
 0x245   : > { %10482 = vst [vmem:[#allocation265_spill] sm:$0xff] %v8117_v8  ;;  %v10012_v8 = vunpack.c.l.bf16 %v8120_v0 }
 0x247   : > { %2152 = vmatmul.mubr.f32.gmra.mrb[152].mxu1 %v10002_v38  ;;  %v8125_v47 = vpop.f32.mrb[150].mxu0 }
 0x248   : > { %10484 = vst [vmem:[#allocation267_spill] sm:$0xff] %v8125_v47  ;;  %2156 = vmatprep.mubr.f32.mxu1 %v10003_v43  ;;  %v8130_v54 = vpop.f32.mrb[151].mxu0  ;;  %v10013_v47 = vunpack.c.h.bf16 %v8133_v42 }
 0x249   : > { %10485 = vst [vmem:[#allocation268_spill] sm:$0xff] %v8130_v54  ;;  %v10014_v54 = vunpack.c.l.bf16 %v8133_v42 }
 0x24b   : > { %2157 = vmatmul.mubr.f32.gmra.mrb[154].mxu1 %v10008_v39  ;;  %v8138_v38 = vpop.f32.mrb[152].mxu0  ;;  %v10015_v39 = vunpack.c.h.bf16 %v8146_v20 }
 0x24c   : > { %10487 = vst [vmem:[#allocation270_spill] sm:$0xff] %v8138_v38  ;;  %2161 = vmatprep.mubr.f32.mxu1 %v10009_v2  ;;  %v8143_v43 = vpop.f32.mrb[153].mxu0  ;;  %v8159_v2 = vld [vmem:[%s6304_s27 + $0x234] sm:$0xff]  ;;  %s6068_s27 = scalar_lea.vmem %s9800_s29, 16 }
 0x24d   : > { %10488 = vst [vmem:[#allocation271_spill] sm:$0xff] %v8143_v43  ;;  %10492 = vst [vmem:[#allocation275_spill] sm:$0xff] %v8159_v2  ;;  %v10016_v43 = vunpack.c.l.bf16 %v8146_v20  ;;  %p6069_p6 = scmp.ne.s32.totalorder %s9800_s29, %s6068_s27  ;;  %p6076_p0 = scmp.lt.s32.totalorder %s6074_s30, %s6068_s27 }
 0x24f   : > { %2162 = vmatmul.mubr.f32.gmra.mrb[156].mxu1 %v10012_v8  ;;  %v8151_v50 = vpop.f32.mrb[154].mxu0  ;;  %v10021_v8 = vunpack.c.h.bf16 %v8159_v2  ;;  %p6070_p13 = pnand %p6069_p6, %p11043_p12  ;;  %p6077_p2 = por %p6076_p0, %p6075_p10 }
 0x250   : > { %10490 = vst [vmem:[#allocation273_spill] sm:$0xff] %v8151_v50  ;;  %2166 = vmatprep.mubr.f32.mxu1 %v10013_v47  ;;  %v8156_v38 = vpop.f32.mrb[155].mxu0  ;;  %v10022_v47 = vunpack.c.l.bf16 %v8159_v2 }
 0x251   : > { %10491 = vst [vmem:[#allocation274_spill] sm:$0xff] %v8156_v38  ;;  %p6071_p8 = pneg %p6070_p13 }
 0x253   : > { %2167 = vmatmul.mubr.f32.gmra.mrb[158].mxu1 %v10014_v54  ;;  %v8164_v0 = vpop.f32.mrb[156].mxu0  ;;  %p6078_p4 = pnand %p6077_p2, %p6071_p8 }
 0x254   : > { %10493 = vst [vmem:[#allocation276_spill] sm:$0xff] %v8164_v0  ;;  %2171 = vmatprep.mubr.f32.mxu1 %v10015_v39  ;;  %v8169_v50 = vpop.f32.mrb[157].mxu0 }
 0x255   : > { %10494 = vst [vmem:[#allocation277_spill] sm:$0xff] %v8169_v50  ;;  %v10499_v50 = vunpack.c.h.bf16 %v6745_v61 }
 0x257   : > { %2172 = vmatmul.mubr.f32.gmra.mrb[160].mxu1 %v10016_v43  ;;  %v8174_v38 = vpop.f32.mrb[158].mxu0 }
 0x258   : > { %10495 = vst [vmem:[#allocation278_spill] sm:$0xff] %v8174_v38  ;;  %2176 = vmatprep.mubr.f32.mxu1 %v10021_v8  ;;  %v8178_v54 = vpop.f32.mrb[159].mxu0 }
 0x259   : > { %10496 = vst [vmem:[#allocation279_spill] sm:$0xff] %v8178_v54 }
 0x25b   : > { %2177 = vmatmul.mubr.f32.gmra.mrb[162].mxu1 %v10022_v47  ;;  %v8182_v39 = vpop.f32.mrb[160].mxu0 }
 0x25c   : > { %10497 = vst [vmem:[#allocation280_spill] sm:$0xff] %v8182_v39  ;;  %v8184_v0 = vpop.f32.mrb[161].mxu0  ;;  %2936 = vmatprep.mubr.f32.mxu1 %v10499_v50 }
 0x25d   : > { %10498 = vst [vmem:[#allocation281_spill] sm:$0xff] %v8184_v0 }
 0x25f   : > { %v8188_v43 = vpop.f32.mrb[162].mxu0 }
 0x260   : > { %10500 = vst [vmem:[#allocation282_spill] sm:$0xff] %v8188_v43  ;;  %v8190_v20 = vpop.f32.mrb[163].mxu0 }
 0x261   : > { %10501 = vst [vmem:[#allocation283_spill] sm:$0xff] %v8190_v20 }
 0x263   : > { %v8192_v38 = vpop.f32.mrb[164].mxu0 }
 0x264   : > { %10502 = vst [vmem:[#allocation284_spill] sm:$0xff] %v8192_v38  ;;  %v8194_v42 = vpop.f32.mrb[165].mxu0 }
 0x265   : > { %10503 = vst [vmem:[#allocation285_spill] sm:$0xff] %v8194_v42 }
 0x267   : > { %v8196_v8 = vpop.f32.mrb[166].mxu0 }
 0x268   : > { %10504 = vst [vmem:[#allocation286_spill] sm:$0xff] %v8196_v8  ;;  %v8198_v54 = vpop.f32.mrb[167].mxu0 }
 0x269   : > { %10505 = vst [vmem:[#allocation287_spill] sm:$0xff] %v8198_v54 }
 0x26b   : > { %v8200_v47 = vpop.f32.mrb[168].mxu0 }
 0x26c   : > { %10506 = vst [vmem:[#allocation288_spill] sm:$0xff] %v8200_v47  ;;  %v8202_v39 = vpop.f32.mrb[169].mxu0 }
 0x26d   : > { %10507 = vst [vmem:[#allocation289_spill] sm:$0xff] %v8202_v39 }
 0x26f   : > { %v8204_v0 = vpop.f32.mrb[170].mxu0 }
 0x270   : > { %10508 = vst [vmem:[#allocation290_spill] sm:$0xff] %v8204_v0  ;;  %v8206_v2 = vpop.f32.mrb[171].mxu0 }
 0x271   : > { %10509 = vst [vmem:[#allocation291_spill] sm:$0xff] %v8206_v2 }
 0x272   : > { %v1943_v50 = vpop.f32.mrb[68].mxu1 }
 0x273   : > { %v1945_v43 = vpop.f32.mrb[69].mxu1 }
 0x276   : > { %v1948_v4 = vpop.f32.mrb[70].mxu1 }
 0x277   : > { %v1950_v20 = vpop.f32.mrb[71].mxu1 }
 0x27a   : > { %v1953_v51 = vpop.f32.mrb[72].mxu1 }
 0x27b   : > { %v1955_v38 = vpop.f32.mrb[73].mxu1 }
 0x27e   : > { %v1958_v62 = vpop.f32.mrb[74].mxu1 }
 0x27f   : > { %v1960_v42 = vpop.f32.mrb[75].mxu1  ;;  %v1959_v48 = vadd.f32 %v1958_v62, %v6782_v58 }
 0x282   : > { %v1963_v59 = vpop.f32.mrb[76].mxu1 }
 0x283   : > { %v1965_v8 = vpop.f32.mrb[77].mxu1 }
 0x286   : > { %v1968_v12 = vpop.f32.mrb[78].mxu1 }
 0x287   : > { %v1970_v54 = vpop.f32.mrb[79].mxu1 }
 0x28a   : > { %v1973_v61 = vpop.f32.mrb[80].mxu1 }
 0x28b   : > { %v1975_v47 = vpop.f32.mrb[81].mxu1 }
 0x28e   : > { %v1978_v11 = vpop.f32.mrb[82].mxu1 }
 0x28f   : > { %v1980_v39 = vpop.f32.mrb[83].mxu1 }
 0x292   : > { %v1983_v29 = vpop.f32.mrb[84].mxu1 }
 0x293   : > { %v1985_v0 = vpop.f32.mrb[85].mxu1 }
 0x294   : > { %v1949_v0 = vadd.f32 %v1948_v4, %v6763_v14 }
 0x296   : > { %v1988_v35 = vpop.f32.mrb[86].mxu1 }
 0x297   : > { %v1990_v2 = vpop.f32.mrb[87].mxu1 }
 0x298   : > { %v1944_v2 = vadd.f32 %v1943_v50, %v6760_v3  ;;  %v1969_v3 = vadd.f32 %v1968_v12, %v6801_v15 }
 0x29a   : > { %v1993_v55 = vpop.f32.mrb[88].mxu1 }
 0x29b   : > { %v1995_v43 = vpop.f32.mrb[89].mxu1 }
 0x29e   : > { %v1998_v26 = vpop.f32.mrb[90].mxu1 }
 0x29f   : > { %v2000_v20 = vpop.f32.mrb[91].mxu1 }
 0x2a2   : > { %v8208_v21 = vpop.f32.mrb[92].mxu1 }
 0x2a3   : > { %v2005_v38 = vpop.f32.mrb[93].mxu1 }
 0x2a6   : > { %v8210_v42 = vpop.f32.mrb[94].mxu1 }
 0x2a7   : > { %v2010_v8 = vpop.f32.mrb[95].mxu1 }
 0x2aa   : > { %v8212_v7 = vpop.f32.mrb[96].mxu1 }
 0x2ab   : > { %v2015_v54 = vpop.f32.mrb[97].mxu1 }
 0x2ac   : > { %v1954_v54 = vadd.f32 %v1953_v51, %v10510_v18  ;;  %v1974_v51 = vadd.f32 %v1973_v61, %v6817_v60  ;;  %v1999_v60 = vadd.f32 %v1998_v26, %v6861_v6 }
 0x2ae   : > { %v8214_v47 = vpop.f32.mrb[98].mxu1 }
 0x2af   : > { %v2020_v39 = vpop.f32.mrb[99].mxu1 }
 0x2b2   : > { %v8217_v30 = vpop.f32.mrb[100].mxu1 }
 0x2b3   : > { %v5033_v43 = vpop.f32.mrb[172].mxu0  ;;  %v2025_v20 = vpop.f32.mrb[101].mxu1 }
 0x2b4   : > { %v2254_v25 = vadd.f32 %v5033_v43, %v1949_v0  ;;  %v2248_v52 = vpop.f32.mrb[173].mxu0  ;;  %v10511_v0 = vld [vmem:[#allocation19_spill] sm:$0xff] }
 0x2b5   : > { %v2249_v38 = vadd.f32 %v2248_v52, %v1944_v2  ;;  %v1964_v52 = vadd.f32 %v1963_v59, %v10511_v0  ;;  %v1994_v0 = vadd.f32 %v1993_v55, %v6858_v5 }
 0x2b6   : > { %v8221_v8 = vpop.f32.mrb[102].mxu1 }
 0x2b7   : > { %v5036_v19 = vpop.f32.mrb[174].mxu0  ;;  %2584 = vmatmul.mubr.f32.vlgmr.msra.gmra.mrb[220].mxu0 %v2249_v38  ;;  %v2030_v39 = vpop.f32.mrb[103].mxu1 }
 0x2b8   : > { %v2264_v53 = vadd.f32 %v5036_v19, %v1959_v48  ;;  %v2258_v14 = vpop.f32.mrb[175].mxu0  ;;  %2589 = vmatprep.mubr.f32.mxu0 %v10477_v57  ;;  %v1979_v19 = vadd.f32 %v1978_v11, %v6820_v63  ;;  %v1984_v39 = vadd.f32 %v1983_v29, %v6837_v34 }
 0x2b9   : > { %v2259_v4 = vadd.f32 %v2258_v14, %v1954_v54 }
 0x2ba   : > { %v8226_v50 = vpop.f32.mrb[104].mxu1 }
 0x2bb   : > { %v5039_v2 = vpop.f32.mrb[176].mxu0  ;;  %2590 = vmatmul.mubr.f32.gmra.mrb[222].mxu0 %v2254_v25  ;;  %v2035_v58 = vpop.f32.mrb[105].mxu1  ;;  %v1989_v25 = vadd.f32 %v1988_v35, %v6840_v1 }
 0x2bc   : > { %v2274_v62 = vadd.f32 %v5039_v2, %v1969_v3  ;;  %v2268_v43 = vpop.f32.mrb[177].mxu0  ;;  %2595 = vmatprep.mubr.f32.mxu0 %v10477_v57  ;;  %v2004_v58 = vadd.f32 %v8208_v21, %v6879_v9 }
 0x2bd   : > { %v2269_v18 = vadd.f32 %v2268_v43, %v1964_v52 }
 0x2be   : > { %v2038_v48 = vpop.f32.mrb[106].mxu1 }
 0x2bf   : > { %v5042_v20 = vpop.f32.mrb[178].mxu0  ;;  %2596 = vmatmul.mubr.f32.gmra.mrb[224].mxu0 %v2259_v4  ;;  %v2040_v15 = vpop.f32.mrb[107].mxu1 }
 0x2c0   : > { %v2284_v12 = vadd.f32 %v5042_v20, %v1979_v19  ;;  %v2278_v38 = vpop.f32.mrb[179].mxu0  ;;  %2601 = vmatprep.mubr.f32.mxu0 %v10477_v57  ;;  %v2029_v20 = vadd.f32 %v8221_v8, %v6924_v17  ;;  %v2034_v17 = vadd.f32 %v8226_v50, %v6942_v23 }
 0x2c1   : > { %v2279_v59 = vadd.f32 %v2278_v38, %v1974_v51 }
 0x2c2   : > { %v2043_v54 = vpop.f32.mrb[108].mxu1 }
 0x2c3   : > { %v5045_v14 = vpop.f32.mrb[180].mxu0  ;;  %2602 = vmatmul.mubr.f32.gmra.mrb[226].mxu0 %v2264_v53  ;;  %v2045_v3 = vpop.f32.mrb[109].mxu1  ;;  %v2009_v53 = vadd.f32 %v8210_v42, %v6882_v10  ;;  %v2014_v10 = vadd.f32 %v8212_v7, %v6900_v13 }
 0x2c4   : > { %v2294_v63 = vadd.f32 %v5045_v14, %v1989_v25  ;;  %v2288_v11 = vpop.f32.mrb[181].mxu0  ;;  %2607 = vmatprep.mubr.f32.mxu0 %v10477_v57  ;;  %v2039_v25 = vadd.f32 %v2038_v48, %v6945_v24 }
 0x2c5   : > { %v2289_v61 = vadd.f32 %v2288_v11, %v1984_v39 }
 0x2c6   : > { %v2048_v4 = vpop.f32.mrb[110].mxu1 }
 0x2c7   : > { %v5048_v52 = vpop.f32.mrb[182].mxu0  ;;  %2608 = vmatmul.mubr.f32.gmra.mrb[228].mxu0 %v2269_v18  ;;  %v2050_v2 = vpop.f32.mrb[111].mxu1  ;;  %v2019_v18 = vadd.f32 %v8214_v47, %v6903_v16  ;;  %v2024_v16 = vadd.f32 %v8217_v30, %v6921_v22  ;;  %v2049_v3 = vadd.f32 %v2048_v4, %v6966_v28 }
 0x2c8   : > { %v8238_v1 = vadd.f32 %v5048_v52, %v1999_v60  ;;  %v2298_v35 = vpop.f32.mrb[183].mxu0  ;;  %2613 = vmatprep.mubr.f32.mxu0 %v10477_v57  ;;  %v2044_v60 = vadd.f32 %v2043_v54, %v6963_v27 }
 0x2c9   : > { %v2299_v34 = vadd.f32 %v2298_v35, %v1994_v0 }
 0x2ca   : > { %v2053_v29 = vpop.f32.mrb[112].mxu1 }
 0x2cb   : > { %v5051_v6 = vpop.f32.mrb[184].mxu0  ;;  %2614 = vmatmul.mubr.f32.gmra.mrb[230].mxu0 %v2274_v62  ;;  %v2055_v26 = vpop.f32.mrb[113].mxu1  ;;  %v2054_v2 = vadd.f32 %v2053_v29, %v6984_v31 }
 0x2cc   : > { %v8245_v5 = vadd.f32 %v5051_v6, %v2009_v53  ;;  %v2308_v55 = vpop.f32.mrb[185].mxu0  ;;  %2619 = vmatprep.mubr.f32.mxu0 %v10477_v57 }
 0x2cd   : > { %v8248_v43 = vadd.f32 %v2308_v55, %v2004_v58 }
 0x2ce   : > { %v2058_v19 = vpop.f32.mrb[114].mxu1 }
 0x2cf   : > { %v5054_v42 = vpop.f32.mrb[186].mxu0  ;;  %2620 = vmatmul.mubr.f32.gmra.mrb[232].mxu0 %v2279_v59  ;;  %v2060_v9 = vpop.f32.mrb[115].mxu1 }
 0x2d0   : > { %v8254_v21 = vadd.f32 %v5054_v42, %v2019_v18  ;;  %v2318_v62 = vpop.f32.mrb[187].mxu0  ;;  %2625 = vmatprep.mubr.f32.mxu0 %v10477_v57 }
 0x2d1   : > { %v8257_v51 = vadd.f32 %v2318_v62, %v2014_v10 }
 0x2d2   : > { %v2063_v15 = vpop.f32.mrb[116].mxu1 }
 0x2d3   : > { %v5057_v47 = vpop.f32.mrb[188].mxu0  ;;  %2626 = vmatmul.mubr.f32.gmra.mrb[234].mxu0 %v2284_v12  ;;  %v2065_v13 = vpop.f32.mrb[117].mxu1  ;;  %v2064_v58 = vadd.f32 %v2063_v15, %v7005_v36 }
 0x2d4   : > { %v8263_v7 = vadd.f32 %v5057_v47, %v2029_v20  ;;  %v2328_v38 = vpop.f32.mrb[189].mxu0  ;;  %2631 = vmatprep.mubr.f32.mxu0 %v10477_v57 }
 0x2d5   : > { %v8266_v59 = vadd.f32 %v2328_v38, %v2024_v16 }
 0x2d6   : > { %v2068_v39 = vpop.f32.mrb[118].mxu1 }
 0x2d7   : > { %v5060_v8 = vpop.f32.mrb[190].mxu0  ;;  %2632 = vmatmul.mubr.f32.gmra.mrb[236].mxu0 %v2289_v61  ;;  %v2070_v14 = vpop.f32.mrb[119].mxu1  ;;  %v2059_v61 = vadd.f32 %v2058_v19, %v6987_v32 }
 0x2d8   : > { %v8271_v22 = vadd.f32 %v5060_v8, %v2039_v25  ;;  %v2338_v30 = vpop.f32.mrb[191].mxu0  ;;  %2637 = vmatprep.mubr.f32.mxu0 %v10477_v57 }
 0x2d9   : > { %v8274_v12 = vadd.f32 %v2338_v30, %v2034_v17 }
 0x2da   : > { %v2073_v11 = vpop.f32.mrb[120].mxu1 }
 0x2db   : > { %v5063_v24 = vpop.f32.mrb[192].mxu0  ;;  %2638 = vmatmul.mubr.f32.gmra.mrb[238].mxu0 %v2294_v63  ;;  %v2075_v48 = vpop.f32.mrb[121].mxu1  ;;  %v2069_v63 = vadd.f32 %v2068_v39, %v7008_v37  ;;  %v2074_v18 = vadd.f32 %v2073_v11, %v7026_v40 }
 0x2dc   : > { %v8278_v0 = vadd.f32 %v5063_v24, %v2049_v3  ;;  %v2348_v23 = vpop.f32.mrb[193].mxu0  ;;  %2643 = vmatprep.mubr.f32.mxu0 %v10477_v57 }
 0x2dd   : > { %v8281_v50 = vadd.f32 %v2348_v23, %v2044_v60 }
 0x2de   : > { %v2078_v52 = vpop.f32.mrb[122].mxu1 }
 0x2df   : > { %v5066_v35 = vpop.f32.mrb[194].mxu0  ;;  %2644 = vmatmul.mubr.f32.gmra.mrb[240].mxu0 %v2299_v34  ;;  %v2080_v28 = vpop.f32.mrb[123].mxu1  ;;  %v2079_v26 = vadd.f32 %v2078_v52, %v7029_v41 }
 0x2e0   : > { %v8285_v4 = vadd.f32 %v5066_v35, %v2059_v61  ;;  %v2358_v27 = vpop.f32.mrb[195].mxu0  ;;  %2649 = vmatprep.mubr.f32.mxu0 %v10477_v57 }
 0x2e1   : > { %v8288_v54 = vadd.f32 %v2358_v27, %v2054_v2  ;;  %v10513_v2 = vld [vmem:[#allocation57_spill] sm:$0xff] }
 0x2e2   : > { %v2083_v53 = vpop.f32.mrb[124].mxu1 }
 0x2e3   : > { %v5069_v6 = vpop.f32.mrb[196].mxu0  ;;  %2650 = vmatmul.mubr.f32.gmra.mrb[242].mxu0 %v8238_v1  ;;  %v2085_v32 = vpop.f32.mrb[125].mxu1  ;;  %v2084_v62 = vadd.f32 %v2083_v53, %v7047_v33 }
 0x2e4   : > { %v8293_v31 = vadd.f32 %v5069_v6, %v2069_v63  ;;  %v2368_v34 = vpop.f32.mrb[197].mxu0  ;;  %2655 = vmatprep.mubr.f32.mxu0 %v10477_v57 }
 0x2e5   : > { %v8296_v29 = vadd.f32 %v2368_v34, %v2064_v58  ;;  %v10514_v58 = vld [vmem:[#allocation66_spill] sm:$0xff] }
 0x2e6   : > { %v2088_v55 = vpop.f32.mrb[126].mxu1 }
 0x2e7   : > { %v5072_v37 = vpop.f32.mrb[198].mxu0  ;;  %2656 = vmatmul.mubr.f32.gmra.mrb[244].mxu0 %v8248_v43  ;;  %v2090_v36 = vpop.f32.mrb[127].mxu1  ;;  %v2089_v42 = vadd.f32 %v2088_v55, %v7050_v45 }
 0x2e8   : > { %v8301_v19 = vadd.f32 %v5072_v37, %v2079_v26  ;;  %v2378_v1 = vpop.f32.mrb[199].mxu0  ;;  %2661 = vmatprep.mubr.f32.mxu0 %v10477_v57 }
 0x2e9   : > { %v8304_v10 = vadd.f32 %v2378_v1, %v2074_v18  ;;  %v10515_v18 = vld [vmem:[#allocation67_spill] sm:$0xff] }
 0x2ea   : > { %v2093_v9 = vpop.f32.mrb[128].mxu1 }
 0x2eb   : > { %v5075_v41 = vpop.f32.mrb[200].mxu0  ;;  %2662 = vmatmul.mubr.f32.gmra.mrb[246].mxu0 %v8245_v5  ;;  %v2095_v40 = vpop.f32.mrb[129].mxu1  ;;  %v2094_v47 = vadd.f32 %v2093_v9, %v7071_v49 }
 0x2ec   : > { %v8309_v20 = vadd.f32 %v5075_v41, %v2089_v42  ;;  %v2388_v43 = vpop.f32.mrb[201].mxu0  ;;  %2667 = vmatprep.mubr.f32.mxu0 %v10477_v57 }
 0x2ed   : > { %v8312_v15 = vadd.f32 %v2388_v43, %v2084_v62  ;;  %v10516_v62 = vld [vmem:[#allocation78_spill] sm:$0xff] }
 0x2ee   : > { %v2098_v16 = vpop.f32.mrb[130].mxu1 }
 0x2ef   : > { %v2099_v13 = vadd.f32 %v2098_v16, %v7074_v44  ;;  %v5078_v45 = vpop.f32.mrb[202].mxu0  ;;  %2668 = vmatmul.mubr.f32.gmra.mrb[248].mxu0 %v8257_v51  ;;  %v2100_v33 = vpop.f32.mrb[131].mxu1 }
 0x2f0   : > { %v2398_v38 = vpop.f32.mrb[203].mxu0  ;;  %2673 = vmatprep.mubr.f32.mxu0 %v10477_v57 }
 0x2f1   : > { %v8318_v5 = vadd.f32 %v5078_v45, %v2099_v13  ;;  %v8320_v25 = vadd.f32 %v2398_v38, %v2094_v47  ;;  %v10517_v13 = vld [vmem:[#allocation79_spill] sm:$0xff] }
 0x2f2   : > { %v2103_v39 = vpop.f32.mrb[132].mxu1 }
 0x2f3   : > { %v2104_v17 = vadd.f32 %v2103_v39, %v7103_v56  ;;  %v5081_v8 = vpop.f32.mrb[204].mxu0  ;;  %2674 = vmatmul.mubr.f32.gmra.mrb[250].mxu0 %v8254_v21  ;;  %v2105_v49 = vpop.f32.mrb[133].mxu1  ;;  %v10512_v21 = vld [vmem:[#allocation56_spill] sm:$0xff] }
 0x2f4   : > { %v2408_v14 = vpop.f32.mrb[205].mxu0  ;;  %2679 = vmatprep.mubr.f32.mxu0 %v10477_v57 }
 0x2f5   : > { %v8325_v44 = vadd.f32 %v2408_v14, %v2104_v17 }
 0x2f6   : > { %v2108_v51 = vpop.f32.mrb[134].mxu1 }
 0x2f7   : > { %v2109_v30 = vadd.f32 %v2108_v51, %v7106_v46  ;;  %2680 = vmatmul.mubr.f32.gmra.mrb[252].mxu0 %v8266_v59  ;;  %v2110_v3 = vpop.f32.mrb[135].mxu1  ;;  %v5084_v11 = vpop.f32.mrb[206].mxu0 }
 0x2f8   : > { %2685 = vmatprep.mubr.f32.mxu0 %v10477_v57  ;;  %v2418_v60 = vpop.f32.mrb[207].mxu0  ;;  %v10519_v3 = vld [vmem:[#allocation93_spill] sm:$0xff] }
 0x2f9   : > { %v8330_v56 = vadd.f32 %v5081_v8, %v2109_v30  ;;  %v10518_v8 = vld [vmem:[#allocation92_spill] sm:$0xff] }
 0x2fa   : > { %v2113_v24 = vpop.f32.mrb[136].mxu1 }
 0x2fb   : > { %v2114_v48 = vadd.f32 %v2113_v24, %v10512_v21  ;;  %2686 = vmatmul.mubr.f32.gmra.mrb[254].mxu0 %v8263_v7  ;;  %v2115_v23 = vpop.f32.mrb[137].mxu1  ;;  %v5087_v61 = vpop.f32.mrb[208].mxu0  ;;  %v10520_v21 = vld [vmem:[#allocation106_spill] sm:$0xff] }
 0x2fc   : > { %2691 = vmatprep.mubr.f32.mxu0 %v10477_v57  ;;  %v2428_v52 = vpop.f32.mrb[209].mxu0 }
 0x2fd   : > { %v8335_v46 = vadd.f32 %v2418_v60, %v2114_v48 }
 0x2fe   : > { %v2118_v59 = vpop.f32.mrb[138].mxu1 }
 0x2ff   : > { %v2119_v35 = vadd.f32 %v2118_v59, %v10513_v2  ;;  %2692 = vmatmul.mubr.f32.gmra.mrb[0].mxu0 %v8274_v12  ;;  %v2120_v28 = vpop.f32.mrb[139].mxu1  ;;  %v5090_v27 = vpop.f32.mrb[210].mxu0 }
 0x300   : > { %2697 = vmatprep.mubr.f32.mxu0 %v10477_v57  ;;  %v2438_v63 = vpop.f32.mrb[211].mxu0  ;;  %v10522_v28 = vld [vmem:[#allocation120_spill] sm:$0xff] }
 0x301   : > { %v8340_v53 = vadd.f32 %v5084_v11, %v2119_v35 }
 0x302   : > { %v2123_v7 = vpop.f32.mrb[140].mxu1 }
 0x303   : > { %v2124_v6 = vadd.f32 %v2123_v7, %v10514_v58  ;;  %2698 = vmatmul.mubr.f32.gmra.mrb[2].mxu0 %v8271_v22  ;;  %v2125_v32 = vpop.f32.mrb[141].mxu1  ;;  %v5093_v34 = vpop.f32.mrb[212].mxu0  ;;  %v10523_v58 = vld [vmem:[#allocation121_spill] sm:$0xff] }
 0x304   : > { %2703 = vmatprep.mubr.f32.mxu0 %v10477_v57  ;;  %v2448_v26 = vpop.f32.mrb[213].mxu0 }
 0x305   : > { %v8345_v55 = vadd.f32 %v2428_v52, %v2124_v6  ;;  %v10521_v52 = vld [vmem:[#allocation107_spill] sm:$0xff] }
 0x306   : > { %v2128_v12 = vpop.f32.mrb[142].mxu1 }
 0x307   : > { %v2129_v37 = vadd.f32 %v2128_v12, %v10515_v18  ;;  %2704 = vmatmul.mubr.f32.gmra.mrb[4].mxu0 %v8281_v50  ;;  %v2130_v36 = vpop.f32.mrb[143].mxu1  ;;  %v5096_v1 = vpop.f32.mrb[214].mxu0 }
 0x308   : > { %2709 = vmatprep.mubr.f32.mxu0 %v10477_v57  ;;  %v2458_v42 = vpop.f32.mrb[215].mxu0  ;;  %v10525_v36 = vld [vmem:[#allocation135_spill] sm:$0xff] }
 0x309   : > { %v8350_v9 = vadd.f32 %v5087_v61, %v2129_v37 }
 0x30a   : > { %v2133_v22 = vpop.f32.mrb[144].mxu1 }
 0x30b   : > { %v2134_v41 = vadd.f32 %v2133_v22, %v10516_v62  ;;  %2710 = vmatmul.mubr.f32.gmra.mrb[6].mxu0 %v8278_v0  ;;  %v2135_v40 = vpop.f32.mrb[145].mxu1  ;;  %v5099_v43 = vpop.f32.mrb[216].mxu0 }
 0x30c   : > { %2715 = vmatprep.mubr.f32.mxu0 %v10477_v57  ;;  %v2468_v16 = vpop.f32.mrb[217].mxu0 }
 0x30d   : > { %v8355_v47 = vadd.f32 %v2438_v63, %v2134_v41 }
 0x30e   : > { %v2138_v50 = vpop.f32.mrb[146].mxu1 }
 0x30f   : > { %v2139_v45 = vadd.f32 %v2138_v50, %v10517_v13  ;;  %2716 = vmatmul.mubr.f32.gmra.mrb[8].mxu0 %v8288_v54  ;;  %v2140_v33 = vpop.f32.mrb[147].mxu1  ;;  %v5102_v38 = vpop.f32.mrb[218].mxu0  ;;  %v10530_v50 = vld [vmem:[#allocation150_spill] sm:$0xff] }
 0x310   : > { %2721 = vmatprep.mubr.f32.mxu0 %v10477_v57  ;;  %v2478_v39 = vpop.f32.mrb[219].mxu0 }
 0x311   : > { %v8360_v17 = vadd.f32 %v5090_v27, %v2139_v45 }
 0x312   : > { %v2143_v0 = vpop.f32.mrb[148].mxu1 }
 0x313   : > { %v2144_v49 = vadd.f32 %v2143_v0, %v10518_v8  ;;  %2722 = vmatmul.mubr.f32.gmra.mrb[10].mxu0 %v8285_v4  ;;  %v2145_v14 = vpop.f32.mrb[149].mxu1  ;;  %v10532_v8 = vld [vmem:[#allocation158_spill] sm:$0xff] }
 0x314   : > { %2727 = vmatprep.mubr.f32.mxu0 %v10477_v57 }
 0x315   : > { %v2449_v51 = vadd.f32 %v2448_v26, %v2144_v49  ;;  %v10524_v26 = vld [vmem:[#allocation134_spill] sm:$0xff] }
 0x316   : > { %v2148_v30 = vpop.f32.mrb[150].mxu1 }
 0x317   : > { %v2149_v11 = vadd.f32 %v2148_v30, %v10519_v3  ;;  %2728 = vmatmul.mubr.f32.gmra.mrb[12].mxu0 %v8296_v29  ;;  %v2150_v54 = vpop.f32.mrb[151].mxu1 }
 0x318   : > { %2733 = vmatprep.mubr.f32.mxu0 %v10477_v57 }
 0x319   : > { %v2454_v60 = vadd.f32 %v5093_v34, %v2149_v11 }
 0x31a   : > { %v2153_v24 = vpop.f32.mrb[152].mxu1 }
 0x31b   : > { %v2154_v48 = vadd.f32 %v2153_v24, %v10520_v21  ;;  %2734 = vmatmul.mubr.f32.gmra.mrb[14].mxu0 %v8293_v31  ;;  %v2155_v23 = vpop.f32.mrb[153].mxu1  ;;  %v10534_v21 = vld [vmem:[#allocation166_spill] sm:$0xff] }
 0x31c   : > { %2739 = vmatprep.mubr.f32.mxu0 %v10477_v57 }
 0x31d   : > { %v2459_v4 = vadd.f32 %v2458_v42, %v2154_v48 }
 0x31e   : > { %v2158_v61 = vpop.f32.mrb[154].mxu1 }
 0x31f   : > { %v2159_v59 = vadd.f32 %v2158_v61, %v10521_v52  ;;  %2740 = vmatmul.mubr.f32.gmra.mrb[16].mxu0 %v8304_v10  ;;  %v2160_v2 = vpop.f32.mrb[155].mxu1 }
 0x320   : > { %2745 = vmatprep.mubr.f32.mxu0 %v10477_v57 }
 0x321   : > { %v2464_v29 = vadd.f32 %v5096_v1, %v2159_v59  ;;  %v10535_v59 = vld [vmem:[#allocation18_spill] sm:$0xff] }
 0x322   : > { %v2163_v35 = vpop.f32.mrb[156].mxu1 }
 0x323   : > { %v2164_v27 = vadd.f32 %v2163_v35, %v10522_v28  ;;  %2746 = vmatmul.mubr.f32.gmra.mrb[18].mxu0 %v8301_v19  ;;  %v2165_v63 = vpop.f32.mrb[157].mxu1 }
 0x324   : > { %2751 = vmatprep.mubr.f32.mxu0 %v10477_v57 }
 0x325   : > { %v2469_v31 = vadd.f32 %v2468_v16, %v2164_v27  ;;  %v10529_v16 = vld [vmem:[#allocation14_spill] sm:$0xff] }
 0x326   : > { %v2168_v7 = vpop.f32.mrb[158].mxu1 }
 0x327   : > { %v2169_v6 = vadd.f32 %v2168_v7, %v10523_v58  ;;  %2752 = vmatmul.mubr.f32.gmra.mrb[20].mxu0 %v8312_v15  ;;  %v2170_v32 = vpop.f32.mrb[159].mxu1 }
 0x328   : > { %2757 = vmatprep.mubr.f32.mxu0 %v10477_v57 }
 0x329   : > { %v2474_v10 = vadd.f32 %v5099_v43, %v2169_v6  ;;  %v10537_v6 = vld [vmem:[#allocation20_spill] sm:$0xff] }
 0x32a   : > { %v2173_v34 = vpop.f32.mrb[160].mxu1 }
 0x32b   : > { %v2174_v12 = vadd.f32 %v2173_v34, %v10524_v26  ;;  %2758 = vmatmul.mubr.f32.gmra.mrb[22].mxu0 %v8309_v20  ;;  %v2175_v18 = vpop.f32.mrb[161].mxu1  ;;  %v10526_v20 = vld [vmem:[#allocation11_spill] sm:$0xff] }
 0x32c   : > { %2763 = vmatprep.mubr.f32.mxu0 %v10477_v57 }
 0x32d   : > { %v2479_v19 = vadd.f32 %v2478_v39, %v2174_v12 }
 0x32e   : > { %v2178_v37 = vpop.f32.mrb[162].mxu1 }
 0x32f   : > { %v2179_v1 = vadd.f32 %v2178_v37, %v10525_v36  ;;  %2764 = vmatmul.mubr.f32.gmra.mrb[24].mxu0 %v8320_v25  ;;  %v2180_v42 = vpop.f32.mrb[163].mxu1  ;;  %v706_v25 = vsub.s32 2, %v10526_v20  ;;  %v10539_v37 = vld [vmem:[#allocation21_spill] sm:$0xff] }
 0x330   : > { %2769 = vmatprep.mubr.f32.mxu0 %v10477_v57 }
 0x331   : > { %v2484_v15 = vadd.f32 %v5102_v38, %v2179_v1  ;;  %v10540_v1 = vld [vmem:[#allocation188_spill] sm:$0xff] }
 0x333   : > { %2770 = vmatmul.mubr.f32.gmra.mrb[26].mxu0 %v8318_v5  ;;  %v702_v5 = vsub.s32 1, %v10526_v20 }
 0x334   : > { %2775 = vmatprep.mubr.f32.mxu0 %v10477_v57 }
 0x337   : > { %2776 = vmatmul.mubr.f32.gmra.mrb[28].mxu0 %v8325_v44  ;;  %v6036_v44 = vld [vmem:[%s9846_s4] sm:$0x1f] }
 0x338   : > { %2781 = vmatprep.mubr.f32.mxu0 %v10477_v57 }
 0x33b   : > { %2782 = vmatmul.mubr.f32.gmra.mrb[30].mxu0 %v8330_v56  ;;  %v8416_v56 = vrot.slane %v6036_v44, %v702_v5 }
 0x33c   : > { %2787 = vmatprep.mubr.f32.mxu0 %v10477_v57 }
 0x33d   : > { %v959_v2 = vadd.f32 %v10535_v59, %v8416_v56  ;;  %v965_v32 = vadd.f32 %v10537_v6, %v8416_v56  ;;  %v971_v36 = vadd.f32 %v10539_v37, %v8416_v56  ;;  %v10550_v37 = vld [vmem:[#allocation208_spill] sm:$0xff] }
 0x33f   : > { %2788 = vmatmul.mubr.f32.gmra.mrb[32].mxu0 %v8335_v46  ;;  %v8418_v46 = vrot.slane %v6036_v44, %v706_v25 }
 0x340   : > { %2793 = vmatprep.mubr.f32.mxu0 %v10477_v57 }
 0x341   : > { %v1292_v13 = vadd.f32 %v10530_v50, %v8418_v46  ;;  %v1298_v49 = vadd.f32 %v10532_v8, %v8418_v46  ;;  %v1304_v48 = vadd.f32 %v10534_v21, %v8418_v46  ;;  %v1322_v42 = vadd.f32 %v10540_v1, %v8418_v46  ;;  %v10546_v21 = vld [vmem:[#allocation200_spill] sm:$0xff] }
 0x343   : > { %2794 = vmatmul.mubr.f32.gmra.mrb[34].mxu0 %v8340_v53  ;;  %v10527_v53 = vld [vmem:[#allocation13_spill] sm:$0xff] }
 0x344   : > { %2799 = vmatprep.mubr.f32.mxu0 %v10477_v57 }
 0x347   : > { %2800 = vmatmul.mubr.f32.gmra.mrb[36].mxu0 %v8345_v55  ;;  %v935_v55 = vadd.f32 %v10527_v53, %v8416_v56 }
 0x348   : > { %2805 = vmatprep.mubr.f32.mxu0 %v10477_v57 }
 0x34b   : > { %2806 = vmatmul.mubr.f32.gmra.mrb[38].mxu0 %v8350_v9  ;;  %v10528_v9 = vld [vmem:[#allocation142_spill] sm:$0xff] }
 0x34c   : > { %2811 = vmatprep.mubr.f32.mxu0 %v10477_v57  ;;  %v1286_v22 = vadd.f32 %v10528_v9, %v8418_v46  ;;  %v10541_v9 = vld [vmem:[#allocation22_spill] sm:$0xff] }
 0x34f   : > { %2812 = vmatmul.mubr.f32.gmra.mrb[40].mxu0 %v8355_v47  ;;  %v941_v47 = vadd.f32 %v10529_v16, %v8416_v56 }
 0x350   : > { %2817 = vmatprep.mubr.f32.mxu0 %v10477_v57 }
 0x353   : > { %2818 = vmatmul.mubr.f32.gmra.mrb[42].mxu0 %v8360_v17  ;;  %v10531_v17 = vld [vmem:[#allocation15_spill] sm:$0xff] }
 0x354   : > { %2823 = vmatprep.mubr.f32.mxu0 %v10477_v57  ;;  %v947_v0 = vadd.f32 %v10531_v17, %v8416_v56  ;;  %v10544_v17 = vld [vmem:[#allocation196_spill] sm:$0xff] }
 0x357   : > { %2824 = vmatmul.mubr.f32.gmra.mrb[44].mxu0 %v2449_v51 }
 0x358   : > { %2829 = vmatprep.mubr.f32.mxu0 %v10477_v57 }
 0x35b   : > { %2830 = vmatmul.mubr.f32.gmra.mrb[46].mxu0 %v2454_v60  ;;  %v10533_v60 = vld [vmem:[#allocation17_spill] sm:$0xff] }
 0x35c   : > { %2835 = vmatprep.mubr.f32.mxu0 %v10477_v57  ;;  %v953_v24 = vadd.f32 %v10533_v60, %v8416_v56  ;;  %v10545_v60 = vld [vmem:[#allocation24_spill] sm:$0xff] }
 0x35f   : > { %2836 = vmatmul.mubr.f32.gmra.mrb[48].mxu0 %v2459_v4 }
 0x360   : > { %2841 = vmatprep.mubr.f32.mxu0 %v10477_v57 }
 0x363   : > { %2842 = vmatmul.mubr.f32.gmra.mrb[50].mxu0 %v2464_v29  ;;  %v10536_v29 = vld [vmem:[#allocation174_spill] sm:$0xff] }
 0x364   : > { %2847 = vmatprep.mubr.f32.mxu0 %v10477_v57  ;;  %v1310_v35 = vadd.f32 %v10536_v29, %v8418_v46  ;;  %v10547_v29 = vld [vmem:[#allocation25_spill] sm:$0xff] }
 0x367   : > { %2848 = vmatmul.mubr.f32.gmra.mrb[52].mxu0 %v2469_v31 }
 0x368   : > { %2853 = vmatprep.mubr.f32.mxu0 %v10477_v57 }
 0x36b   : > { %2854 = vmatmul.mubr.f32.gmra.mrb[54].mxu0 %v2474_v10  ;;  %v10538_v10 = vld [vmem:[#allocation182_spill] sm:$0xff] }
 0x36c   : > { %2859 = vmatprep.mubr.f32.mxu0 %v10477_v57  ;;  %v1316_v34 = vadd.f32 %v10538_v10, %v8418_v46 }
 0x36f   : > { %2860 = vmatmul.mubr.f32.gmra.mrb[56].mxu0 %v2479_v19 }
 0x370   : > { %2865 = vmatprep.mubr.f32.mxu0 %v10477_v57 }
 0x373   : > { %2866 = vmatmul.mubr.f32.gmra.mrb[58].mxu0 %v2484_v15 }
 0x38a   : > { %v2585_v62 = vpop.f32.mrb[220].mxu0 }
 0x38b   : > { %v8424_v41 = vadd.f32 %v2585_v62, %v935_v55  ;;  %v2587_v40 = vpop.f32.mrb[221].mxu0  ;;  %v10542_v62 = vld [vmem:[#allocation192_spill] sm:$0xff] }
 0x38c   : > { %v8426_v43 = vadd.f32 %v2587_v40, %v1286_v22  ;;  %v977_v22 = vadd.f32 %v10541_v9, %v8416_v56  ;;  %v1328_v40 = vadd.f32 %v10542_v62, %v8418_v46  ;;  %v10552_v9 = vld [vmem:[#allocation212_spill] sm:$0xff] }
 0x38e   : > { %v2591_v45 = vpop.f32.mrb[222].mxu0 }
 0x38f   : > { %v8432_v33 = vadd.f32 %v2591_v45, %v941_v47  ;;  %v2593_v38 = vpop.f32.mrb[223].mxu0  ;;  %v10543_v45 = vld [vmem:[#allocation23_spill] sm:$0xff] }
 0x390   : > { %v8434_v39 = vadd.f32 %v2593_v38, %v1292_v13  ;;  %v983_v38 = vadd.f32 %v10543_v45, %v8416_v56 }
 0x391   : > { %v5308_v30 = vpack.c.bf16 %v8432_v33, %v8424_v41 }
 0x392   : > { %v5306_v14 = vpack.c.bf16 %v8434_v39, %v8426_v43  ;;  %v2597_v51 = vpop.f32.mrb[224].mxu0 }
 0x393   : > { %v8444_v3 = vadd.f32 %v2597_v51, %v947_v0  ;;  %v2599_v11 = vpop.f32.mrb[225].mxu0  ;;  %v1334_v0 = vadd.f32 %v10544_v17, %v8418_v46  ;;  %v10553_v17 = vld [vmem:[#allocation28_spill] sm:$0xff] }
 0x394   : > { %v8446_v54 = vadd.f32 %v2599_v11, %v1298_v49  ;;  %5307 = vmatprep.subr.bf16.mxu1 %v5306_v14 }
 0x395   : > { %5309 = vmatpush1.bf16.msra.mxu1 %v5308_v30 }
 0x396   : > { %v2603_v23 = vpop.f32.mrb[226].mxu0 }
 0x397   : > { %v8452_v4 = vadd.f32 %v2603_v23, %v953_v24  ;;  %v2605_v61 = vpop.f32.mrb[227].mxu0  ;;  %v989_v24 = vadd.f32 %v10545_v60, %v8416_v56 }
 0x398   : > { %v8454_v52 = vadd.f32 %v2605_v61, %v1304_v48  ;;  %v1340_v48 = vadd.f32 %v10546_v21, %v8418_v46  ;;  %v10555_v21 = vld [vmem:[#allocation29_spill] sm:$0xff] }
 0x399   : > { %v5312_v63 = vpack.c.bf16 %v8452_v4, %v8444_v3 }
 0x39a   : > { %v5310_v28 = vpack.c.bf16 %v8454_v52, %v8446_v54  ;;  %v2609_v27 = vpop.f32.mrb[228].mxu0 }
 0x39b   : > { %v8464_v31 = vadd.f32 %v2609_v27, %v959_v2  ;;  %v2611_v7 = vpop.f32.mrb[229].mxu0 }
 0x39c   : > { %v8466_v58 = vadd.f32 %v2611_v7, %v1310_v35  ;;  %5311 = vmatprep.subr.bf16.mxu1 %v5310_v28  ;;  %v995_v35 = vadd.f32 %v10547_v29, %v8416_v56  ;;  %v10548_v28 = vld [vmem:[#allocation204_spill] sm:$0xff]  ;;  %v10556_v29 = vld [vmem:[#allocation55_spill] sm:$0xff] }
 0x39d   : > { %5313 = vmatpush1.bf16.msra.mxu1 %v5312_v63  ;;  %v1346_v27 = vadd.f32 %v10548_v28, %v8418_v46 }
 0x39e   : > { %v2615_v26 = vpop.f32.mrb[230].mxu0 }
 0x39f   : > { %v8472_v12 = vadd.f32 %v2615_v26, %v965_v32  ;;  %v2617_v18 = vpop.f32.mrb[231].mxu0  ;;  %v10549_v26 = vld [vmem:[#allocation26_spill] sm:$0xff] }
 0x3a0   : > { %v8474_v19 = vadd.f32 %v2617_v18, %v1316_v34  ;;  %v1001_v18 = vadd.f32 %v10549_v26, %v8416_v56 }
 0x3a1   : > { %v5316_v25 = vpack.c.bf16 %v8472_v12, %v8464_v31 }
 0x3a2   : > { %v5314_v15 = vpack.c.bf16 %v8474_v19, %v8466_v58  ;;  %v2621_v5 = vpop.f32.mrb[232].mxu0 }
 0x3a3   : > { %v8484_v44 = vadd.f32 %v2621_v5, %v971_v36  ;;  %v2623_v53 = vpop.f32.mrb[233].mxu0  ;;  %v1352_v36 = vadd.f32 %v10550_v37, %v8418_v46 }
 0x3a4   : > { %v8486_v55 = vadd.f32 %v2623_v53, %v1322_v42  ;;  %5315 = vmatprep.subr.bf16.mxu1 %v5314_v15 }
 0x3a5   : > { %5317 = vmatpush1.bf16.msra.mxu1 %v5316_v25  ;;  %v10551_v25 = vld [vmem:[#allocation27_spill] sm:$0xff] }
 0x3a6   : > { %v2627_v16 = vpop.f32.mrb[234].mxu0  ;;  %v1007_v53 = vadd.f32 %v10551_v25, %v8416_v56  ;;  %v10559_v25 = vld [vmem:[#allocation31_spill] sm:$0xff] }
 0x3a7   : > { %v8492_v47 = vadd.f32 %v2627_v16, %v977_v22  ;;  %v2629_v50 = vpop.f32.mrb[235].mxu0  ;;  %v1358_v22 = vadd.f32 %v10552_v9, %v8418_v46  ;;  %v10560_v9 = vld [vmem:[#allocation65_spill] sm:$0xff] }
 0x3a8   : > { %v8494_v13 = vadd.f32 %v2629_v50, %v1328_v40 }
 0x3a9   : > { %v5320_v14 = vpack.c.bf16 %v8492_v47, %v8484_v44 }
 0x3aa   : > { %v5318_v8 = vpack.c.bf16 %v8494_v13, %v8486_v55  ;;  %v2633_v49 = vpop.f32.mrb[236].mxu0 }
 0x3ab   : > { %v8504_v51 = vadd.f32 %v2633_v49, %v983_v38  ;;  %v2635_v30 = vpop.f32.mrb[237].mxu0 }
 0x3ac   : > { %v8506_v11 = vadd.f32 %v2635_v30, %v1334_v0  ;;  %5319 = vmatprep.subr.bf16.mxu1 %v5318_v8  ;;  %v1013_v0 = vadd.f32 %v10553_v17, %v8416_v56  ;;  %v10554_v8 = vld [vmem:[#allocation216_spill] sm:$0xff] }
 0x3ad   : > { %5321 = vmatpush1.bf16.msra.mxu1 %v5320_v14  ;;  %v1364_v49 = vadd.f32 %v10554_v8, %v8418_v46  ;;  %v10561_v8 = vld [vmem:[#allocation32_spill] sm:$0xff] }
 0x3ae   : > { %v2639_v23 = vpop.f32.mrb[238].mxu0 }
 0x3af   : > { %v8512_v61 = vadd.f32 %v2639_v23, %v989_v24  ;;  %v2641_v59 = vpop.f32.mrb[239].mxu0 }
 0x3b0   : > { %v8514_v2 = vadd.f32 %v2641_v59, %v1340_v48  ;;  %v1019_v48 = vadd.f32 %v10555_v21, %v8416_v56 }
 0x3b1   : > { %v5324_v6 = vpack.c.bf16 %v8512_v61, %v8504_v51 }
 0x3b2   : > { %v5322_v63 = vpack.c.bf16 %v8514_v2, %v8506_v11  ;;  %v2645_v7 = vpop.f32.mrb[240].mxu0 }
 0x3b3   : > { %v8524_v32 = vadd.f32 %v2645_v7, %v995_v35  ;;  %v2647_v10 = vpop.f32.mrb[241].mxu0  ;;  %v1370_v35 = vadd.f32 %v10556_v29, %v8418_v46  ;;  %v10563_v29 = vld [vmem:[#allocation33_spill] sm:$0xff] }
 0x3b4   : > { %v8526_v34 = vadd.f32 %v2647_v10, %v1346_v27  ;;  %5323 = vmatprep.subr.bf16.mxu1 %v5322_v63 }
 0x3b5   : > { %5325 = vmatpush1.bf16.msra.mxu1 %v5324_v6  ;;  %v10557_v6 = vld [vmem:[#allocation30_spill] sm:$0xff] }
 0x3b6   : > { %v2651_v1 = vpop.f32.mrb[242].mxu0  ;;  %v1025_v10 = vadd.f32 %v10557_v6, %v8416_v56 }
 0x3b7   : > { %v8532_v42 = vadd.f32 %v2651_v1, %v1001_v18  ;;  %v2653_v15 = vpop.f32.mrb[243].mxu0  ;;  %v10558_v18 = vld [vmem:[#allocation61_spill] sm:$0xff] }
 0x3b8   : > { %v8534_v5 = vadd.f32 %v2653_v15, %v1352_v36  ;;  %v1376_v37 = vadd.f32 %v10558_v18, %v8418_v46 }
 0x3b9   : > { %v5328_v16 = vpack.c.bf16 %v8532_v42, %v8524_v32 }
 0x3ba   : > { %v5326_v62 = vpack.c.bf16 %v8534_v5, %v8526_v34  ;;  %v2657_v40 = vpop.f32.mrb[244].mxu0 }
 0x3bb   : > { %v8544_v50 = vadd.f32 %v2657_v40, %v1007_v53  ;;  %v2659_v45 = vpop.f32.mrb[245].mxu0  ;;  %v1031_v53 = vadd.f32 %v10559_v25, %v8416_v56  ;;  %v10565_v25 = vld [vmem:[#allocation34_spill] sm:$0xff] }
 0x3bc   : > { %v8546_v38 = vadd.f32 %v2659_v45, %v1358_v22  ;;  %5327 = vmatprep.subr.bf16.mxu1 %v5326_v62  ;;  %v1382_v22 = vadd.f32 %v10560_v9, %v8418_v46  ;;  %v10566_v9 = vld [vmem:[#allocation77_spill] sm:$0xff] }
 0x3bd   : > { %5329 = vmatpush1.bf16.msra.mxu1 %v5328_v16 }
 0x3be   : > { %v2663_v14 = vpop.f32.mrb[246].mxu0 }
 0x3bf   : > { %v8552_v30 = vadd.f32 %v2663_v14, %v1013_v0  ;;  %v2665_v60 = vpop.f32.mrb[247].mxu0  ;;  %v10562_v14 = vld [vmem:[#allocation71_spill] sm:$0xff] }
 0x3c0   : > { %v8554_v24 = vadd.f32 %v2665_v60, %v1364_v49  ;;  %v1037_v49 = vadd.f32 %v10561_v8, %v8416_v56  ;;  %v1388_v60 = vadd.f32 %v10562_v14, %v8418_v46  ;;  %v10567_v8 = vld [vmem:[#allocation35_spill] sm:$0xff] }
 0x3c1   : > { %v5332_v28 = vpack.c.bf16 %v8552_v30, %v8544_v50  ;;  %v10568_v14 = vld [vmem:[#allocation83_spill] sm:$0xff] }
 0x3c2   : > { %v5330_v23 = vpack.c.bf16 %v8554_v24, %v8546_v38  ;;  %v2669_v59 = vpop.f32.mrb[248].mxu0 }
 0x3c3   : > { %v8564_v27 = vadd.f32 %v2669_v59, %v1019_v48  ;;  %v2671_v63 = vpop.f32.mrb[249].mxu0 }
 0x3c4   : > { %v8566_v7 = vadd.f32 %v2671_v63, %v1370_v35  ;;  %5331 = vmatprep.subr.bf16.mxu1 %v5330_v23  ;;  %v1043_v35 = vadd.f32 %v10563_v29, %v8416_v56 }
 0x3c5   : > { %5333 = vmatpush1.bf16.msra.mxu1 %v5332_v28  ;;  %v10564_v28 = vld [vmem:[#allocation75_spill] sm:$0xff] }
 0x3c6   : > { %v2675_v26 = vpop.f32.mrb[250].mxu0  ;;  %v1394_v63 = vadd.f32 %v10564_v28, %v8418_v46 }
 0x3c7   : > { %v8572_v36 = vadd.f32 %v2675_v26, %v1025_v10  ;;  %v2677_v1 = vpop.f32.mrb[251].mxu0 }
 0x3c8   : > { %v8574_v15 = vadd.f32 %v2677_v1, %v1376_v37 }
 0x3c9   : > { %v5336_v16 = vpack.c.bf16 %v8572_v36, %v8564_v27 }
 0x3ca   : > { %v5334_v62 = vpack.c.bf16 %v8574_v15, %v8566_v7  ;;  %v2681_v40 = vpop.f32.mrb[252].mxu0 }
 0x3cb   : > { %v8584_v45 = vadd.f32 %v2681_v40, %v1031_v53  ;;  %v2683_v17 = vpop.f32.mrb[253].mxu0  ;;  %v1049_v53 = vadd.f32 %v10565_v25, %v8416_v56 }
 0x3cc   : > { %v8586_v0 = vadd.f32 %v2683_v17, %v1382_v22  ;;  %5335 = vmatprep.subr.bf16.mxu1 %v5334_v62  ;;  %v1400_v22 = vadd.f32 %v10566_v9, %v8418_v46 }
 0x3cd   : > { %5337 = vmatpush1.bf16.msra.mxu1 %v5336_v16 }
 0x3ce   : > { %v2687_v21 = vpop.f32.mrb[254].mxu0 }
 0x3cf   : > { %v8592_v48 = vadd.f32 %v2687_v21, %v1037_v49  ;;  %v2689_v23 = vpop.f32.mrb[255].mxu0  ;;  %v1055_v49 = vadd.f32 %v10567_v8, %v8416_v56  ;;  %v10574_v8 = vld [vmem:[#allocation89_spill] sm:$0xff] }
 0x3d0   : > { %v8594_v59 = vadd.f32 %v2689_v23, %v1388_v60  ;;  %v1406_v60 = vadd.f32 %v10568_v14, %v8418_v46 }
 0x3d1   : > { %v5340_v26 = vpack.c.bf16 %v8592_v48, %v8584_v45 }
 0x3d2   : > { %v5338_v6 = vpack.c.bf16 %v8594_v59, %v8586_v0  ;;  %v2693_v10 = vpop.f32.mrb[0].mxu0 }
 0x3d3   : > { %v8604_v18 = vadd.f32 %v2693_v10, %v1043_v35  ;;  %v2695_v37 = vpop.f32.mrb[1].mxu0 }
 0x3d4   : > { %v8606_v1 = vadd.f32 %v2695_v37, %v1394_v63  ;;  %5339 = vmatprep.subr.bf16.mxu1 %v5338_v6  ;;  %v10569_v6 = vld [vmem:[#allocation36_spill] sm:$0xff] }
 0x3d5   : > { %5341 = vmatpush1.bf16.msra.mxu1 %v5340_v26  ;;  %v1061_v10 = vadd.f32 %v10569_v6, %v8416_v56  ;;  %v10570_v26 = vld [vmem:[#allocation85_spill] sm:$0xff]  ;;  %v10577_v6 = vld [vmem:[#allocation38_spill] sm:$0xff] }
 0x3d6   : > { %v2699_v62 = vpop.f32.mrb[2].mxu0  ;;  %v1412_v37 = vadd.f32 %v10570_v26, %v8418_v46  ;;  %v10578_v26 = vld [vmem:[#allocation91_spill] sm:$0xff] }
 0x3d7   : > { %v8612_v40 = vadd.f32 %v2699_v62, %v1049_v53  ;;  %v2701_v16 = vpop.f32.mrb[3].mxu0  ;;  %v10573_v62 = vld [vmem:[#allocation37_spill] sm:$0xff] }
 0x3d8   : > { %v8614_v17 = vadd.f32 %v2701_v16, %v1400_v22  ;;  %v1067_v16 = vadd.f32 %v10573_v62, %v8416_v56 }
 0x3d9   : > { %v5344_v29 = vpack.c.bf16 %v8612_v40, %v8604_v18 }
 0x3da   : > { %v5342_v21 = vpack.c.bf16 %v8614_v17, %v8606_v1  ;;  %v2705_v23 = vpop.f32.mrb[4].mxu0 }
 0x3db   : > { %v8624_v35 = vadd.f32 %v2705_v23, %v1055_v49  ;;  %v2707_v28 = vpop.f32.mrb[5].mxu0  ;;  %v1418_v49 = vadd.f32 %v10574_v8, %v8418_v46 }
 0x3dc   : > { %v8626_v63 = vadd.f32 %v2707_v28, %v1406_v60  ;;  %5343 = vmatprep.subr.bf16.mxu1 %v5342_v21 }
 0x3dd   : > { %5345 = vmatpush1.bf16.msra.mxu1 %v5344_v29 }
 0x3de   : > { %v2711_v25 = vpop.f32.mrb[6].mxu0 }
 0x3df   : > { %v8632_v53 = vadd.f32 %v2711_v25, %v1061_v10  ;;  %v2713_v9 = vpop.f32.mrb[7].mxu0  ;;  %v1073_v10 = vadd.f32 %v10577_v6, %v8416_v56 }
 0x3e0   : > { %v8634_v22 = vadd.f32 %v2713_v9, %v1412_v37  ;;  %v1424_v37 = vadd.f32 %v10578_v26, %v8418_v46 }
 0x3e1   : > { %10571 = vst [vmem:[#allocation16_spill] sm:$0xff] %v8632_v53  ;;  %v5348_v21 = vpack.c.bf16 %v8632_v53, %v8624_v35 }
 0x3e2   : > { %10572 = vst [vmem:[#allocation19_spill] sm:$0xff] %v8634_v22  ;;  %v5346_v14 = vpack.c.bf16 %v8634_v22, %v8626_v63  ;;  %v2717_v60 = vpop.f32.mrb[8].mxu0 }
 0x3e3   : > { %v8644_v23 = vadd.f32 %v2717_v60, %v1067_v16  ;;  %v2719_v29 = vpop.f32.mrb[9].mxu0  ;;  %v10581_v16 = vld [vmem:[#allocation39_spill] sm:$0xff] }
 0x3e4   : > { %v8646_v28 = vadd.f32 %v2719_v29, %v1418_v49  ;;  %5347 = vmatprep.subr.bf16.mxu1 %v5346_v14  ;;  %v1079_v60 = vadd.f32 %v10581_v16, %v8416_v56  ;;  %v10582_v49 = vld [vmem:[#allocation97_spill] sm:$0xff]  ;;  %v10586_v16 = vld [vmem:[#allocation99_spill] sm:$0xff] }
 0x3e5   : > { %10575 = vst [vmem:[#allocation56_spill] sm:$0xff] %v8644_v23  ;;  %5349 = vmatpush1.bf16.msra.mxu1 %v5348_v21  ;;  %v1430_v29 = vadd.f32 %v10582_v49, %v8418_v46  ;;  %v1436_v49 = vadd.f32 %v10586_v16, %v8418_v46 }
 0x3e6   : > { %10576 = vst [vmem:[#allocation57_spill] sm:$0xff] %v8646_v28  ;;  %v2723_v25 = vpop.f32.mrb[10].mxu0 }
 0x3e7   : > { %v8652_v9 = vadd.f32 %v2723_v25, %v1073_v10  ;;  %v2725_v62 = vpop.f32.mrb[11].mxu0 }
 0x3e8   : > { %v8654_v8 = vadd.f32 %v2725_v62, %v1424_v37  ;;  %v10585_v37 = vld [vmem:[#allocation40_spill] sm:$0xff] }
 0x3e9   : > { %10579 = vst [vmem:[#allocation66_spill] sm:$0xff] %v8652_v9  ;;  %v5352_v6 = vpack.c.bf16 %v8652_v9, %v8644_v23  ;;  %v1085_v62 = vadd.f32 %v10585_v37, %v8416_v56 }
 0x3ea   : > { %10580 = vst [vmem:[#allocation67_spill] sm:$0xff] %v8654_v8  ;;  %v5350_v14 = vpack.c.bf16 %v8654_v8, %v8646_v28  ;;  %v2729_v21 = vpop.f32.mrb[12].mxu0 }
 0x3eb   : > { %v8664_v26 = vadd.f32 %v2729_v21, %v1079_v60  ;;  %v2731_v10 = vpop.f32.mrb[13].mxu0  ;;  %v10589_v60 = vld [vmem:[#allocation41_spill] sm:$0xff] }
 0x3ec   : > { %v8666_v25 = vadd.f32 %v2731_v10, %v1430_v29  ;;  %5351 = vmatprep.subr.bf16.mxu1 %v5350_v14  ;;  %v1091_v21 = vadd.f32 %v10589_v60, %v8416_v56  ;;  %v10590_v29 = vld [vmem:[#allocation103_spill] sm:$0xff]  ;;  %v10594_v60 = vld [vmem:[#allocation105_spill] sm:$0xff] }
 0x3ed   : > { %10583 = vst [vmem:[#allocation78_spill] sm:$0xff] %v8664_v26  ;;  %5353 = vmatpush1.bf16.msra.mxu1 %v5352_v6  ;;  %v1442_v10 = vadd.f32 %v10590_v29, %v8418_v46  ;;  %v1448_v29 = vadd.f32 %v10594_v60, %v8418_v46 }
 0x3ee   : > { %10584 = vst [vmem:[#allocation79_spill] sm:$0xff] %v8666_v25  ;;  %v2735_v22 = vpop.f32.mrb[14].mxu0 }
 0x3ef   : > { %v8672_v53 = vadd.f32 %v2735_v22, %v1085_v62  ;;  %v2737_v8 = vpop.f32.mrb[15].mxu0 }
 0x3f0   : > { %v8674_v28 = vadd.f32 %v2737_v8, %v1436_v49  ;;  %v10593_v8 = vld [vmem:[#allocation42_spill] sm:$0xff] }
 0x3f1   : > { %10587 = vst [vmem:[#allocation92_spill] sm:$0xff] %v8672_v53  ;;  %v5356_v37 = vpack.c.bf16 %v8672_v53, %v8664_v26  ;;  %v1097_v49 = vadd.f32 %v10593_v8, %v8416_v56 }
 0x3f2   : > { %10588 = vst [vmem:[#allocation93_spill] sm:$0xff] %v8674_v28  ;;  %v5354_v14 = vpack.c.bf16 %v8674_v28, %v8666_v25  ;;  %v2741_v6 = vpop.f32.mrb[16].mxu0 }
 0x3f3   : > { %v8684_v16 = vadd.f32 %v2741_v6, %v1091_v21  ;;  %v2743_v22 = vpop.f32.mrb[17].mxu0  ;;  %v10597_v21 = vld [vmem:[#allocation43_spill] sm:$0xff] }
 0x3f4   : > { %v8686_v62 = vadd.f32 %v2743_v22, %v1442_v10  ;;  %5355 = vmatprep.subr.bf16.mxu1 %v5354_v14  ;;  %v1103_v6 = vadd.f32 %v10597_v21, %v8416_v56  ;;  %v10598_v10 = vld [vmem:[#allocation111_spill] sm:$0xff]  ;;  %v10602_v21 = vld [vmem:[#allocation113_spill] sm:$0xff] }
 0x3f5   : > { %10591 = vst [vmem:[#allocation106_spill] sm:$0xff] %v8684_v16  ;;  %5357 = vmatpush1.bf16.msra.mxu1 %v5356_v37  ;;  %v1454_v22 = vadd.f32 %v10598_v10, %v8418_v46  ;;  %v1460_v10 = vadd.f32 %v10602_v21, %v8418_v46 }
 0x3f6   : > { %10592 = vst [vmem:[#allocation107_spill] sm:$0xff] %v8686_v62  ;;  %v2747_v9 = vpop.f32.mrb[18].mxu0 }
 0x3f7   : > { %v8692_v23 = vadd.f32 %v2747_v9, %v1097_v49  ;;  %v2749_v28 = vpop.f32.mrb[19].mxu0 }
 0x3f8   : > { %v8694_v25 = vadd.f32 %v2749_v28, %v1448_v29  ;;  %v10601_v28 = vld [vmem:[#allocation44_spill] sm:$0xff] }
 0x3f9   : > { %10595 = vst [vmem:[#allocation120_spill] sm:$0xff] %v8692_v23  ;;  %v5360_v8 = vpack.c.bf16 %v8692_v23, %v8684_v16  ;;  %v1109_v29 = vadd.f32 %v10601_v28, %v8416_v56 }
 0x3fa   : > { %10596 = vst [vmem:[#allocation121_spill] sm:$0xff] %v8694_v25  ;;  %v5358_v14 = vpack.c.bf16 %v8694_v25, %v8686_v62  ;;  %v2753_v37 = vpop.f32.mrb[20].mxu0 }
 0x3fb   : > { %v8704_v60 = vadd.f32 %v2753_v37, %v1103_v6  ;;  %v2755_v9 = vpop.f32.mrb[21].mxu0  ;;  %v10605_v6 = vld [vmem:[#allocation45_spill] sm:$0xff] }
 0x3fc   : > { %v8706_v49 = vadd.f32 %v2755_v9, %v1454_v22  ;;  %5359 = vmatprep.subr.bf16.mxu1 %v5358_v14  ;;  %v1115_v37 = vadd.f32 %v10605_v6, %v8416_v56  ;;  %v10606_v22 = vld [vmem:[#allocation117_spill] sm:$0xff]  ;;  %v10610_v6 = vld [vmem:[#allocation119_spill] sm:$0xff] }
 0x3fd   : > { %10599 = vst [vmem:[#allocation134_spill] sm:$0xff] %v8704_v60  ;;  %5361 = vmatpush1.bf16.msra.mxu1 %v5360_v8  ;;  %v1466_v9 = vadd.f32 %v10606_v22, %v8418_v46  ;;  %v1472_v22 = vadd.f32 %v10610_v6, %v8418_v46 }
 0x3fe   : > { %10600 = vst [vmem:[#allocation135_spill] sm:$0xff] %v8706_v49  ;;  %v2759_v53 = vpop.f32.mrb[22].mxu0 }
 0x3ff   : > { %v8712_v26 = vadd.f32 %v2759_v53, %v1109_v29  ;;  %v2761_v25 = vpop.f32.mrb[23].mxu0 }
 0x400   : > { %v8714_v62 = vadd.f32 %v2761_v25, %v1460_v10  ;;  %v10609_v25 = vld [vmem:[#allocation47_spill] sm:$0xff] }
 0x401   : > { %10603 = vst [vmem:[#allocation13_spill] sm:$0xff] %v8712_v26  ;;  %v5364_v28 = vpack.c.bf16 %v8712_v26, %v8704_v60  ;;  %v1121_v10 = vadd.f32 %v10609_v25, %v8416_v56 }
 0x402   : > { %10604 = vst [vmem:[#allocation142_spill] sm:$0xff] %v8714_v62  ;;  %v5362_v14 = vpack.c.bf16 %v8714_v62, %v8706_v49  ;;  %v2765_v8 = vpop.f32.mrb[24].mxu0 }
 0x403   : > { %v8724_v21 = vadd.f32 %v2765_v8, %v1115_v37  ;;  %v2767_v53 = vpop.f32.mrb[25].mxu0  ;;  %v10613_v37 = vld [vmem:[#allocation49_spill] sm:$0xff] }
 0x404   : > { %v8726_v29 = vadd.f32 %v2767_v53, %v1466_v9  ;;  %5363 = vmatprep.subr.bf16.mxu1 %v5362_v14  ;;  %v1127_v8 = vadd.f32 %v10613_v37, %v8416_v56  ;;  %v10614_v9 = vld [vmem:[#allocation125_spill] sm:$0xff]  ;;  %v10618_v37 = vld [vmem:[#allocation127_spill] sm:$0xff] }
 0x405   : > { %10607 = vst [vmem:[#allocation14_spill] sm:$0xff] %v8724_v21  ;;  %5365 = vmatpush1.bf16.msra.mxu1 %v5364_v28  ;;  %v1478_v53 = vadd.f32 %v10614_v9, %v8418_v46  ;;  %v1484_v9 = vadd.f32 %v10618_v37, %v8418_v46 }
 0x406   : > { %10608 = vst [vmem:[#allocation150_spill] sm:$0xff] %v8726_v29  ;;  %v2771_v23 = vpop.f32.mrb[26].mxu0 }
 0x407   : > { %v8732_v16 = vadd.f32 %v2771_v23, %v1121_v10  ;;  %v2773_v62 = vpop.f32.mrb[27].mxu0 }
 0x408   : > { %v8734_v49 = vadd.f32 %v2773_v62, %v1472_v22  ;;  %v10617_v62 = vld [vmem:[#allocation51_spill] sm:$0xff] }
 0x409   : > { %10611 = vst [vmem:[#allocation15_spill] sm:$0xff] %v8732_v16  ;;  %v5368_v25 = vpack.c.bf16 %v8732_v16, %v8724_v21  ;;  %v1133_v22 = vadd.f32 %v10617_v62, %v8416_v56  ;;  %v10621_v16 = vld [vmem:[#allocation12_spill] sm:$0xff] }
 0x40a   : > { %10612 = vst [vmem:[#allocation158_spill] sm:$0xff] %v8734_v49  ;;  %v5366_v14 = vpack.c.bf16 %v8734_v49, %v8726_v29  ;;  %v2777_v28 = vpop.f32.mrb[28].mxu0 }
 0x40b   : > { %v8744_v6 = vadd.f32 %v2777_v28, %v1127_v8  ;;  %v2779_v23 = vpop.f32.mrb[29].mxu0  ;;  %v10622_v8 = vunpack.c.l.bf16 %v10621_v16 }
 0x40c   : > { %v8746_v10 = vadd.f32 %v2779_v23, %v1478_v53  ;;  %5367 = vmatprep.subr.bf16.mxu1 %v5366_v14  ;;  %v10623_v53 = vld [vmem:[#allocation53_spill] sm:$0xff]  ;;  %v10624_v14 = vld [vmem:[#allocation48_spill] sm:$0xff]  ;;  %v10626_v23 = vld [vmem:[#allocation131_spill] sm:$0xff] }
 0x40d   : > { %10615 = vst [vmem:[#allocation17_spill] sm:$0xff] %v8744_v6  ;;  %5369 = vmatpush1.bf16.msra.mxu1 %v5368_v25  ;;  %v1139_v28 = vadd.f32 %v10623_v53, %v8416_v56  ;;  %v10625_v25 = vunpack.c.h.bf16 %v10624_v14  ;;  %v1490_v62 = vadd.f32 %v10626_v23, %v8418_v46  ;;  %v10630_v53 = vld [vmem:[#allocation58_spill] sm:$0xff] }
 0x40e   : > { %10616 = vst [vmem:[#allocation166_spill] sm:$0xff] %v8746_v10  ;;  %v2783_v26 = vpop.f32.mrb[30].mxu0  ;;  %v10631_v23 = vld [vmem:[#allocation50_spill] sm:$0xff] }
 0x40f   : > { %v8752_v60 = vadd.f32 %v2783_v26, %v1133_v22  ;;  %v2785_v49 = vpop.f32.mrb[31].mxu0  ;;  %v10632_v21 = vunpack.c.h.bf16 %v10631_v23 }
 0x410   : > { %v8754_v29 = vadd.f32 %v2785_v49, %v1484_v9  ;;  %2937 = vmatmul.mubr.f32.vlgmr.msra.gmra.mrb[164].mxu1 %v10622_v8  ;;  %v10629_v8 = vunpack.c.l.bf16 %v10624_v14  ;;  %v10636_v14 = vunpack.c.l.bf16 %v10631_v23 }
 0x411   : > { %10619 = vst [vmem:[#allocation18_spill] sm:$0xff] %v8752_v60  ;;  %2942 = vmatprep.mubr.f32.mxu1 %v10625_v25  ;;  %v5372_v49 = vpack.c.bf16 %v8752_v60, %v8744_v6  ;;  %v1145_v25 = vadd.f32 %v10630_v53, %v8416_v56 }
 0x412   : > { %10620 = vst [vmem:[#allocation174_spill] sm:$0xff] %v8754_v29  ;;  %v5370_v37 = vpack.c.bf16 %v8754_v29, %v8746_v10  ;;  %v2789_v26 = vpop.f32.mrb[32].mxu0  ;;  %v10633_v29 = vld [vmem:[#allocation133_spill] sm:$0xff] }
 0x413   : > { %v8768_v22 = vadd.f32 %v2789_v26, %v1139_v28  ;;  %v2791_v16 = vpop.f32.mrb[33].mxu0  ;;  %v1496_v10 = vadd.f32 %v10633_v29, %v8418_v46 }
 0x414   : > { %v8770_v9 = vadd.f32 %v2791_v16, %v1490_v62  ;;  %2943 = vmatmul.mubr.f32.gmra.mrb[166].mxu1 %v10629_v8  ;;  %5371 = vmatprep.subr.bf16.mxu1 %v5370_v37  ;;  %v10637_v37 = vld [vmem:[#allocation62_spill] sm:$0xff]  ;;  %v10638_v16 = vld [vmem:[#allocation52_spill] sm:$0xff] }
 0x415   : > { %10627 = vst [vmem:[#allocation20_spill] sm:$0xff] %v8768_v22  ;;  %5373 = vmatpush1.bf16.msra.mxu1 %v5372_v49  ;;  %2948 = vmatprep.mubr.f32.mxu1 %v10632_v21  ;;  %v1151_v49 = vadd.f32 %v10637_v37, %v8416_v56  ;;  %v10639_v8 = vunpack.c.h.bf16 %v10638_v16  ;;  %v10640_v21 = vld [vmem:[#allocation139_spill] sm:$0xff]  ;;  %v10644_v37 = vld [vmem:[#allocation68_spill] sm:$0xff] }
 0x416   : > { %10628 = vst [vmem:[#allocation182_spill] sm:$0xff] %v8770_v9  ;;  %v2795_v60 = vpop.f32.mrb[34].mxu0  ;;  %v1502_v53 = vadd.f32 %v10640_v21, %v8418_v46  ;;  %v10645_v21 = vld [vmem:[#allocation54_spill] sm:$0xff] }
 0x417   : > { %v8780_v28 = vadd.f32 %v2795_v60, %v1145_v25  ;;  %v2797_v26 = vpop.f32.mrb[35].mxu0  ;;  %v10646_v6 = vunpack.c.h.bf16 %v10645_v21 }
 0x418   : > { %v8782_v62 = vadd.f32 %v2797_v26, %v1496_v10  ;;  %2949 = vmatmul.mubr.f32.gmra.mrb[168].mxu1 %v10636_v14  ;;  %v10643_v14 = vunpack.c.l.bf16 %v10638_v16  ;;  %v10650_v16 = vunpack.c.l.bf16 %v10645_v21 }
 0x419   : > { %10634 = vst [vmem:[#allocation21_spill] sm:$0xff] %v8780_v28  ;;  %2954 = vmatprep.mubr.f32.mxu1 %v10639_v8  ;;  %v5376_v10 = vpack.c.bf16 %v8780_v28, %v8768_v22  ;;  %v1157_v8 = vadd.f32 %v10644_v37, %v8416_v56 }
 0x41a   : > { %10635 = vst [vmem:[#allocation188_spill] sm:$0xff] %v8782_v62  ;;  %v5374_v29 = vpack.c.bf16 %v8782_v62, %v8770_v9  ;;  %v2801_v60 = vpop.f32.mrb[36].mxu0  ;;  %v10647_v62 = vld [vmem:[#allocation143_spill] sm:$0xff] }
 0x41b   : > { %v8796_v25 = vadd.f32 %v2801_v60, %v1151_v49  ;;  %v2803_v23 = vpop.f32.mrb[37].mxu0  ;;  %v1508_v9 = vadd.f32 %v10647_v62, %v8418_v46 }
 0x41c   : > { %v8798_v26 = vadd.f32 %v2803_v23, %v1502_v53  ;;  %2955 = vmatmul.mubr.f32.gmra.mrb[170].mxu1 %v10643_v14  ;;  %5375 = vmatprep.subr.bf16.mxu1 %v5374_v29  ;;  %v10651_v29 = vld [vmem:[#allocation72_spill] sm:$0xff] }
 0x41d   : > { %10641 = vst [vmem:[#allocation22_spill] sm:$0xff] %v8796_v25  ;;  %5377 = vmatpush1.bf16.msra.mxu1 %v5376_v10  ;;  %2960 = vmatprep.mubr.f32.mxu1 %v10646_v6  ;;  %v1163_v10 = vadd.f32 %v10651_v29, %v8416_v56  ;;  %v10652_v23 = vld [vmem:[#allocation60_spill] sm:$0xff]  ;;  %v10654_v6 = vld [vmem:[#allocation147_spill] sm:$0xff] }
 0x41e   : > { %10642 = vst [vmem:[#allocation192_spill] sm:$0xff] %v8798_v26  ;;  %v2807_v28 = vpop.f32.mrb[38].mxu0  ;;  %v10653_v14 = vunpack.c.h.bf16 %v10652_v23  ;;  %v1514_v37 = vadd.f32 %v10654_v6, %v8418_v46  ;;  %v10658_v29 = vld [vmem:[#allocation80_spill] sm:$0xff] }
 0x41f   : > { %v8808_v49 = vadd.f32 %v2807_v28, %v1157_v8  ;;  %v2809_v60 = vpop.f32.mrb[39].mxu0  ;;  %v10659_v6 = vld [vmem:[#allocation64_spill] sm:$0xff] }
 0x420   : > { %v8810_v53 = vadd.f32 %v2809_v60, %v1508_v9  ;;  %2961 = vmatmul.mubr.f32.gmra.mrb[172].mxu1 %v10650_v16  ;;  %v10657_v16 = vunpack.c.l.bf16 %v10652_v23  ;;  %v10660_v22 = vunpack.c.h.bf16 %v10659_v6  ;;  %v10664_v23 = vunpack.c.l.bf16 %v10659_v6 }
 0x421   : > { %10648 = vst [vmem:[#allocation23_spill] sm:$0xff] %v8808_v49  ;;  %2966 = vmatprep.mubr.f32.mxu1 %v10653_v14  ;;  %v5380_v9 = vpack.c.bf16 %v8808_v49, %v8796_v25  ;;  %v1169_v14 = vadd.f32 %v10658_v29, %v8416_v56 }
 0x422   : > { %10649 = vst [vmem:[#allocation196_spill] sm:$0xff] %v8810_v53  ;;  %v5378_v62 = vpack.c.bf16 %v8810_v53, %v8798_v26  ;;  %v2813_v28 = vpop.f32.mrb[40].mxu0  ;;  %v10661_v53 = vld [vmem:[#allocation151_spill] sm:$0xff] }
 0x423   : > { %v8824_v8 = vadd.f32 %v2813_v28, %v1163_v10  ;;  %v2815_v21 = vpop.f32.mrb[41].mxu0  ;;  %v1520_v26 = vadd.f32 %v10661_v53, %v8418_v46 }
 0x424   : > { %v8826_v60 = vadd.f32 %v2815_v21, %v1514_v37  ;;  %2967 = vmatmul.mubr.f32.gmra.mrb[174].mxu1 %v10657_v16  ;;  %5379 = vmatprep.subr.bf16.mxu1 %v5378_v62  ;;  %v10665_v62 = vld [vmem:[#allocation86_spill] sm:$0xff] }
 0x425   : > { %10655 = vst [vmem:[#allocation24_spill] sm:$0xff] %v8824_v8  ;;  %5381 = vmatpush1.bf16.msra.mxu1 %v5380_v9  ;;  %2972 = vmatprep.mubr.f32.mxu1 %v10660_v22  ;;  %v1175_v9 = vadd.f32 %v10665_v62, %v8416_v56  ;;  %v10666_v21 = vld [vmem:[#allocation70_spill] sm:$0xff]  ;;  %v10668_v22 = vld [vmem:[#allocation155_spill] sm:$0xff] }
 0x426   : > { %10656 = vst [vmem:[#allocation200_spill] sm:$0xff] %v8826_v60  ;;  %v2819_v49 = vpop.f32.mrb[42].mxu0  ;;  %v10667_v16 = vunpack.c.h.bf16 %v10666_v21  ;;  %v1526_v29 = vadd.f32 %v10668_v22, %v8418_v46  ;;  %v10672_v62 = vld [vmem:[#allocation94_spill] sm:$0xff] }
 0x427   : > { %v8836_v10 = vadd.f32 %v2819_v49, %v1169_v14  ;;  %v2821_v28 = vpop.f32.mrb[43].mxu0  ;;  %v10673_v22 = vld [vmem:[#allocation74_spill] sm:$0xff] }
 0x428   : > { %v8838_v37 = vadd.f32 %v2821_v28, %v1520_v26  ;;  %2973 = vmatmul.mubr.f32.gmra.mrb[176].mxu1 %v10664_v23  ;;  %v10671_v23 = vunpack.c.l.bf16 %v10666_v21  ;;  %v10674_v25 = vunpack.c.h.bf16 %v10673_v22  ;;  %v10678_v21 = vunpack.c.l.bf16 %v10673_v22 }
 0x429   : > { %10662 = vst [vmem:[#allocation25_spill] sm:$0xff] %v8836_v10  ;;  %2978 = vmatprep.mubr.f32.mxu1 %v10667_v16  ;;  %v5384_v26 = vpack.c.bf16 %v8836_v10, %v8824_v8  ;;  %v1181_v16 = vadd.f32 %v10672_v62, %v8416_v56 }
 0x42a   : > { %10663 = vst [vmem:[#allocation204_spill] sm:$0xff] %v8838_v37  ;;  %v5382_v53 = vpack.c.bf16 %v8838_v37, %v8826_v60  ;;  %v2825_v49 = vpop.f32.mrb[44].mxu0  ;;  %v10675_v37 = vld [vmem:[#allocation159_spill] sm:$0xff] }
 0x42b   : > { %v8852_v14 = vadd.f32 %v2825_v49, %v1175_v9  ;;  %v2827_v6 = vpop.f32.mrb[45].mxu0  ;;  %v1532_v60 = vadd.f32 %v10675_v37, %v8418_v46 }
 0x42c   : > { %v8854_v28 = vadd.f32 %v2827_v6, %v1526_v29  ;;  %2979 = vmatmul.mubr.f32.gmra.mrb[178].mxu1 %v10671_v23  ;;  %5383 = vmatprep.subr.bf16.mxu1 %v5382_v53  ;;  %v10679_v53 = vld [vmem:[#allocation100_spill] sm:$0xff]  ;;  %v10680_v23 = vld [vmem:[#allocation82_spill] sm:$0xff] }
 0x42d   : > { %10669 = vst [vmem:[#allocation26_spill] sm:$0xff] %v8852_v14  ;;  %5385 = vmatpush1.bf16.msra.mxu1 %v5384_v26  ;;  %2984 = vmatprep.mubr.f32.mxu1 %v10674_v25  ;;  %v1187_v6 = vadd.f32 %v10679_v53, %v8416_v56  ;;  %v10681_v26 = vunpack.c.h.bf16 %v10680_v23  ;;  %v10682_v25 = vld [vmem:[#allocation163_spill] sm:$0xff]  ;;  %v10686_v53 = vld [vmem:[#allocation108_spill] sm:$0xff] }
 0x42e   : > { %10670 = vst [vmem:[#allocation208_spill] sm:$0xff] %v8854_v28  ;;  %v2831_v10 = vpop.f32.mrb[46].mxu0  ;;  %v1538_v62 = vadd.f32 %v10682_v25, %v8418_v46  ;;  %v10687_v25 = vld [vmem:[#allocation88_spill] sm:$0xff] }
 0x42f   : > { %v8864_v9 = vadd.f32 %v2831_v10, %v1181_v16  ;;  %v2833_v49 = vpop.f32.mrb[47].mxu0  ;;  %v10688_v8 = vunpack.c.h.bf16 %v10687_v25 }
 0x430   : > { %v8866_v29 = vadd.f32 %v2833_v49, %v1532_v60  ;;  %2985 = vmatmul.mubr.f32.gmra.mrb[180].mxu1 %v10678_v21  ;;  %v10685_v21 = vunpack.c.l.bf16 %v10680_v23  ;;  %v10692_v23 = vunpack.c.l.bf16 %v10687_v25 }
 0x431   : > { %10676 = vst [vmem:[#allocation27_spill] sm:$0xff] %v8864_v9  ;;  %2990 = vmatprep.mubr.f32.mxu1 %v10681_v26  ;;  %v5388_v60 = vpack.c.bf16 %v8864_v9, %v8852_v14  ;;  %v1193_v26 = vadd.f32 %v10686_v53, %v8416_v56 }
 0x432   : > { %10677 = vst [vmem:[#allocation212_spill] sm:$0xff] %v8866_v29  ;;  %v5386_v37 = vpack.c.bf16 %v8866_v29, %v8854_v28  ;;  %v2837_v10 = vpop.f32.mrb[48].mxu0  ;;  %v10689_v29 = vld [vmem:[#allocation167_spill] sm:$0xff] }
 0x433   : > { %v8880_v16 = vadd.f32 %v2837_v10, %v1187_v6  ;;  %v2839_v22 = vpop.f32.mrb[49].mxu0  ;;  %v1544_v28 = vadd.f32 %v10689_v29, %v8418_v46 }
 0x434   : > { %v8882_v49 = vadd.f32 %v2839_v22, %v1538_v62  ;;  %2991 = vmatmul.mubr.f32.gmra.mrb[182].mxu1 %v10685_v21  ;;  %5387 = vmatprep.subr.bf16.mxu1 %v5386_v37  ;;  %v10693_v37 = vld [vmem:[#allocation114_spill] sm:$0xff]  ;;  %v10694_v21 = vld [vmem:[#allocation96_spill] sm:$0xff] }
 0x435   : > { %10683 = vst [vmem:[#allocation28_spill] sm:$0xff] %v8880_v16  ;;  %5389 = vmatpush1.bf16.msra.mxu1 %v5388_v60  ;;  %2996 = vmatprep.mubr.f32.mxu1 %v10688_v8  ;;  %v1199_v22 = vadd.f32 %v10693_v37, %v8416_v56  ;;  %v10695_v60 = vunpack.c.h.bf16 %v10694_v21  ;;  %v10696_v8 = vld [vmem:[#allocation171_spill] sm:$0xff]  ;;  %v10699_v37 = vld [vmem:[#allocation122_spill] sm:$0xff] }
 0x436   : > { %10684 = vst [vmem:[#allocation216_spill] sm:$0xff] %v8882_v49  ;;  %v2843_v9 = vpop.f32.mrb[50].mxu0  ;;  %v1550_v53 = vadd.f32 %v10696_v8, %v8418_v46  ;;  %v10700_v8 = vld [vmem:[#allocation102_spill] sm:$0xff] }
 0x437   : > { %v8892_v6 = vadd.f32 %v2843_v9, %v1193_v26  ;;  %v2845_v10 = vpop.f32.mrb[51].mxu0  ;;  %v10701_v14 = vunpack.c.h.bf16 %v10700_v8 }
 0x438   : > { %v8894_v62 = vadd.f32 %v2845_v10, %v1544_v28  ;;  %2997 = vmatmul.mubr.f32.gmra.mrb[184].mxu1 %v10692_v23  ;;  %v10698_v23 = vunpack.c.l.bf16 %v10694_v21  ;;  %v10705_v21 = vunpack.c.l.bf16 %v10700_v8 }
 0x439   : > { %10690 = vst [vmem:[#allocation29_spill] sm:$0xff] %v8892_v6  ;;  %3002 = vmatprep.mubr.f32.mxu1 %v10695_v60  ;;  %v5392_v28 = vpack.c.bf16 %v8892_v6, %v8880_v16  ;;  %v1205_v60 = vadd.f32 %v10699_v37, %v8416_v56 }
 0x43a   : > { %10691 = vst [vmem:[#allocation55_spill] sm:$0xff] %v8894_v62  ;;  %v5390_v29 = vpack.c.bf16 %v8894_v62, %v8882_v49  ;;  %v2849_v9 = vpop.f32.mrb[52].mxu0  ;;  %v10702_v62 = vld [vmem:[#allocation175_spill] sm:$0xff] }
 0x43b   : > { %v8908_v26 = vadd.f32 %v2849_v9, %v1199_v22  ;;  %v2851_v25 = vpop.f32.mrb[53].mxu0  ;;  %v1556_v49 = vadd.f32 %v10702_v62, %v8418_v46 }
 0x43c   : > { %v8910_v10 = vadd.f32 %v2851_v25, %v1550_v53  ;;  %3003 = vmatmul.mubr.f32.gmra.mrb[186].mxu1 %v10698_v23  ;;  %5391 = vmatprep.subr.bf16.mxu1 %v5390_v29  ;;  %v10706_v29 = vld [vmem:[#allocation128_spill] sm:$0xff]  ;;  %v10707_v23 = vld [vmem:[#allocation110_spill] sm:$0xff] }
 0x43d   : > { %5393 = vmatpush1.bf16.msra.mxu1 %v5392_v28  ;;  %3008 = vmatprep.mubr.f32.mxu1 %v10701_v14  ;;  %v1211_v25 = vadd.f32 %v10706_v29, %v8416_v56  ;;  %v10708_v28 = vunpack.c.h.bf16 %v10707_v23  ;;  %v10709_v14 = vld [vmem:[#allocation179_spill] sm:$0xff]  ;;  %v10713_v29 = vld [vmem:[#allocation136_spill] sm:$0xff] }
 0x43e   : > { %10697 = vst [vmem:[#allocation30_spill] sm:$0xff] %v8910_v10  ;;  %v2855_v6 = vpop.f32.mrb[54].mxu0  ;;  %v1562_v37 = vadd.f32 %v10709_v14, %v8418_v46  ;;  %v10714_v14 = vld [vmem:[#allocation116_spill] sm:$0xff] }
 0x43f   : > { %v8920_v22 = vadd.f32 %v2855_v6, %v1205_v60  ;;  %v2857_v9 = vpop.f32.mrb[55].mxu0  ;;  %v10715_v16 = vunpack.c.h.bf16 %v10714_v14 }
 0x440   : > { %v8922_v53 = vadd.f32 %v2857_v9, %v1556_v49  ;;  %3009 = vmatmul.mubr.f32.gmra.mrb[188].mxu1 %v10705_v21  ;;  %v10712_v21 = vunpack.c.l.bf16 %v10707_v23  ;;  %v10719_v23 = vunpack.c.l.bf16 %v10714_v14 }
 0x441   : > { %10703 = vst [vmem:[#allocation61_spill] sm:$0xff] %v8920_v22  ;;  %3014 = vmatprep.mubr.f32.mxu1 %v10708_v28  ;;  %v5396_v49 = vpack.c.bf16 %v8920_v22, %v8908_v26  ;;  %v1217_v28 = vadd.f32 %v10713_v29, %v8416_v56 }
 0x442   : > { %10704 = vst [vmem:[#allocation31_spill] sm:$0xff] %v8922_v53  ;;  %v5394_v62 = vpack.c.bf16 %v8922_v53, %v8910_v10  ;;  %v2861_v6 = vpop.f32.mrb[56].mxu0  ;;  %v10716_v53 = vld [vmem:[#allocation183_spill] sm:$0xff] }
 0x443   : > { %v8936_v60 = vadd.f32 %v2861_v6, %v1211_v25  ;;  %v2863_v8 = vpop.f32.mrb[57].mxu0  ;;  %v1568_v10 = vadd.f32 %v10716_v53, %v8418_v46 }
 0x444   : > { %v8938_v9 = vadd.f32 %v2863_v8, %v1562_v37  ;;  %3015 = vmatmul.mubr.f32.gmra.mrb[190].mxu1 %v10712_v21  ;;  %5395 = vmatprep.subr.bf16.mxu1 %v5394_v62  ;;  %v10720_v62 = vld [vmem:[#allocation124_spill] sm:$0xff] }
 0x445   : > { %10710 = vst [vmem:[#allocation65_spill] sm:$0xff] %v8936_v60  ;;  %5397 = vmatpush1.bf16.msra.mxu1 %v5396_v49  ;;  %3020 = vmatprep.mubr.f32.mxu1 %v10715_v16  ;;  %v10721_v8 = vunpack.c.h.bf16 %v10720_v62  ;;  %v10722_v46 = vunpack.c.l.bf16 %v10720_v62  ;;  %v10726_v49 = vld [vmem:[#allocation138_spill] sm:$0xff] }
 0x446   : > { %10711 = vst [vmem:[#allocation32_spill] sm:$0xff] %v8938_v9  ;;  %v2867_v22 = vpop.f32.mrb[58].mxu0  ;;  %v10727_v21 = vunpack.c.h.bf16 %v10726_v49  ;;  %v10728_v29 = vunpack.c.l.bf16 %v10726_v49  ;;  %v10741_v49 = vld [vmem:[#allocation178_spill] sm:$0xff] }
 0x447   : > { %v8948_v25 = vadd.f32 %v2867_v22, %v1217_v28  ;;  %v2869_v6 = vpop.f32.mrb[59].mxu0  ;;  %v10723_v22 = vld [vmem:[#allocation130_spill] sm:$0xff] }
 0x448   : > { %v8950_v37 = vadd.f32 %v2869_v6, %v1568_v10  ;;  %3021 = vmatmul.mubr.f32.gmra.mrb[192].mxu1 %v10719_v23  ;;  %v10724_v10 = vunpack.c.h.bf16 %v10723_v22  ;;  %v10725_v53 = vunpack.c.l.bf16 %v10723_v22  ;;  %v10729_v28 = vld [vmem:[#allocation146_spill] sm:$0xff] }
 0x449   : > { %10717 = vst [vmem:[#allocation71_spill] sm:$0xff] %v8948_v25  ;;  %3026 = vmatprep.mubr.f32.mxu1 %v10721_v8  ;;  %v5400_v16 = vpack.c.bf16 %v8948_v25, %v8936_v60  ;;  %v10730_v14 = vunpack.c.h.bf16 %v10729_v28  ;;  %v10731_v6 = vunpack.c.l.bf16 %v10729_v28  ;;  %v10732_v23 = vld [vmem:[#allocation154_spill] sm:$0xff] }
 0x44a   : > { %10718 = vst [vmem:[#allocation33_spill] sm:$0xff] %v8950_v37  ;;  %v5398_v56 = vpack.c.bf16 %v8950_v37, %v8938_v9  ;;  %v10733_v62 = vunpack.c.h.bf16 %v10732_v23  ;;  %v10734_v8 = vunpack.c.l.bf16 %v10732_v23  ;;  %v10738_v22 = vld [vmem:[#allocation170_spill] sm:$0xff] }
 0x44b   : > { %v10744_v28 = vld [vmem:[#allocation186_spill] sm:$0xff] }
 0x44c   : > { %3027 = vmatmul.mubr.f32.gmra.mrb[194].mxu1 %v10722_v46  ;;  %5399 = vmatprep.subr.bf16.mxu1 %v5398_v56  ;;  %v10735_v56 = vld [vmem:[#allocation162_spill] sm:$0xff] }
 0x44d   : > { %5401 = vmatpush1.bf16.msra.mxu1 %v5400_v16  ;;  %3032 = vmatprep.mubr.f32.mxu1 %v10724_v10  ;;  %v10736_v16 = vunpack.c.h.bf16 %v10735_v56  ;;  %v10737_v46 = vunpack.c.l.bf16 %v10735_v56  ;;  %v10739_v10 = vunpack.c.h.bf16 %v10738_v22  ;;  %v10747_v23 = vld [vmem:[#allocation190_spill] sm:$0xff] }
 0x44e   : > { %v10750_v56 = vld [vmem:[#allocation194_spill] sm:$0xff] }
 0x450   : > { %3033 = vmatmul.mubr.f32.gmra.mrb[196].mxu1 %v10725_v53  ;;  %v10740_v53 = vunpack.c.l.bf16 %v10738_v22  ;;  %v10753_v22 = vld [vmem:[#allocation198_spill] sm:$0xff] }
 0x451   : > { %3038 = vmatprep.mubr.f32.mxu1 %v10727_v21  ;;  %v10742_v21 = vunpack.c.h.bf16 %v10741_v49 }
 0x454   : > { %3039 = vmatmul.mubr.f32.gmra.mrb[198].mxu1 %v10728_v29  ;;  %v10743_v29 = vunpack.c.l.bf16 %v10741_v49  ;;  %v10756_v49 = vld [vmem:[#allocation202_spill] sm:$0xff] }
 0x455   : > { %3044 = vmatprep.mubr.f32.mxu1 %v10730_v14  ;;  %v10745_v14 = vunpack.c.h.bf16 %v10744_v28 }
 0x458   : > { %3045 = vmatmul.mubr.f32.gmra.mrb[200].mxu1 %v10731_v6  ;;  %v10746_v6 = vunpack.c.l.bf16 %v10744_v28  ;;  %v10759_v28 = vld [vmem:[#allocation206_spill] sm:$0xff] }
 0x459   : > { %3050 = vmatprep.mubr.f32.mxu1 %v10733_v62  ;;  %v10748_v62 = vunpack.c.h.bf16 %v10747_v23 }
 0x45c   : > { %3051 = vmatmul.mubr.f32.gmra.mrb[202].mxu1 %v10734_v8  ;;  %v10749_v8 = vunpack.c.l.bf16 %v10747_v23  ;;  %v10762_v23 = vld [vmem:[#allocation210_spill] sm:$0xff] }
 0x45d   : > { %3056 = vmatprep.mubr.f32.mxu1 %v10736_v16  ;;  %v10751_v16 = vunpack.c.h.bf16 %v10750_v56 }
 0x460   : > { %3057 = vmatmul.mubr.f32.gmra.mrb[204].mxu1 %v10737_v46  ;;  %v10752_v46 = vunpack.c.l.bf16 %v10750_v56  ;;  %v10765_v56 = vld [vmem:[#allocation214_spill] sm:$0xff] }
 0x461   : > { %3062 = vmatprep.mubr.f32.mxu1 %v10739_v10  ;;  %v10754_v10 = vunpack.c.h.bf16 %v10753_v22 }
 0x464   : > { %3063 = vmatmul.mubr.f32.gmra.mrb[206].mxu1 %v10740_v53  ;;  %v10755_v53 = vunpack.c.l.bf16 %v10753_v22  ;;  %v10768_v22 = vld [vmem:[#allocation218_spill] sm:$0xff] }
 0x465   : > { %3068 = vmatprep.mubr.f32.mxu1 %v10742_v21  ;;  %v10757_v21 = vunpack.c.h.bf16 %v10756_v49 }
 0x468   : > { %3069 = vmatmul.mubr.f32.gmra.mrb[208].mxu1 %v10743_v29  ;;  %v10758_v29 = vunpack.c.l.bf16 %v10756_v49  ;;  %v10771_v49 = vld [vmem:[#allocation222_spill] sm:$0xff] }
 0x469   : > { %3074 = vmatprep.mubr.f32.mxu1 %v10745_v14  ;;  %v10760_v14 = vunpack.c.h.bf16 %v10759_v28 }
 0x46c   : > { %3075 = vmatmul.mubr.f32.gmra.mrb[210].mxu1 %v10746_v6  ;;  %v10761_v6 = vunpack.c.l.bf16 %v10759_v28  ;;  %v10774_v28 = vld [vmem:[#allocation226_spill] sm:$0xff] }
 0x46d   : > { %3080 = vmatprep.mubr.f32.mxu1 %v10748_v62  ;;  %v10763_v62 = vunpack.c.h.bf16 %v10762_v23 }
 0x470   : > { %3081 = vmatmul.mubr.f32.gmra.mrb[212].mxu1 %v10749_v8  ;;  %v10764_v8 = vunpack.c.l.bf16 %v10762_v23  ;;  %v10777_v23 = vld [vmem:[#allocation230_spill] sm:$0xff] }
 0x471   : > { %3086 = vmatprep.mubr.f32.mxu1 %v10751_v16  ;;  %v10766_v16 = vunpack.c.h.bf16 %v10765_v56 }
 0x474   : > { %3087 = vmatmul.mubr.f32.gmra.mrb[214].mxu1 %v10752_v46  ;;  %v10767_v46 = vunpack.c.l.bf16 %v10765_v56  ;;  %v10780_v56 = vld [vmem:[#allocation234_spill] sm:$0xff] }
 0x475   : > { %3092 = vmatprep.mubr.f32.mxu1 %v10754_v10  ;;  %v10769_v10 = vunpack.c.h.bf16 %v10768_v22 }
 0x478   : > { %3093 = vmatmul.mubr.f32.gmra.mrb[216].mxu1 %v10755_v53  ;;  %v10770_v53 = vunpack.c.l.bf16 %v10768_v22  ;;  %v10783_v22 = vld [vmem:[#allocation238_spill] sm:$0xff] }
 0x479   : > { %3098 = vmatprep.mubr.f32.mxu1 %v10757_v21  ;;  %v10772_v21 = vunpack.c.h.bf16 %v10771_v49 }
 0x47c   : > { %3099 = vmatmul.mubr.f32.gmra.mrb[218].mxu1 %v10758_v29  ;;  %v10773_v29 = vunpack.c.l.bf16 %v10771_v49  ;;  %v10786_v49 = vld [vmem:[#allocation242_spill] sm:$0xff] }
 0x47d   : > { %3104 = vmatprep.mubr.f32.mxu1 %v10760_v14  ;;  %v10775_v14 = vunpack.c.h.bf16 %v10774_v28 }
 0x480   : > { %3105 = vmatmul.mubr.f32.gmra.mrb[220].mxu1 %v10761_v6  ;;  %v10776_v6 = vunpack.c.l.bf16 %v10774_v28  ;;  %v10789_v28 = vld [vmem:[#allocation246_spill] sm:$0xff] }
 0x481   : > { %3110 = vmatprep.mubr.f32.mxu1 %v10763_v62  ;;  %v10778_v62 = vunpack.c.h.bf16 %v10777_v23 }
 0x484   : > { %3111 = vmatmul.mubr.f32.gmra.mrb[222].mxu1 %v10764_v8  ;;  %v10779_v8 = vunpack.c.l.bf16 %v10777_v23  ;;  %v10792_v23 = vld [vmem:[#allocation250_spill] sm:$0xff] }
 0x485   : > { %3116 = vmatprep.mubr.f32.mxu1 %v10766_v16  ;;  %v10781_v16 = vunpack.c.h.bf16 %v10780_v56 }
 0x488   : > { %3117 = vmatmul.mubr.f32.gmra.mrb[224].mxu1 %v10767_v46  ;;  %v10782_v46 = vunpack.c.l.bf16 %v10780_v56  ;;  %v10795_v56 = vld [vmem:[#allocation254_spill] sm:$0xff] }
 0x489   : > { %3122 = vmatprep.mubr.f32.mxu1 %v10769_v10  ;;  %v10784_v10 = vunpack.c.h.bf16 %v10783_v22 }
 0x48c   : > { %3123 = vmatmul.mubr.f32.gmra.mrb[226].mxu1 %v10770_v53  ;;  %v10785_v53 = vunpack.c.l.bf16 %v10783_v22  ;;  %v10798_v22 = vld [vmem:[#allocation257_spill] sm:$0xff] }
 0x48d   : > { %3128 = vmatprep.mubr.f32.mxu1 %v10772_v21  ;;  %v10787_v21 = vunpack.c.h.bf16 %v10786_v49 }
 0x490   : > { %3129 = vmatmul.mubr.f32.gmra.mrb[228].mxu1 %v10773_v29  ;;  %v10788_v29 = vunpack.c.l.bf16 %v10786_v49  ;;  %v10801_v49 = vld [vmem:[#allocation260_spill] sm:$0xff] }
 0x491   : > { %3134 = vmatprep.mubr.f32.mxu1 %v10775_v14  ;;  %v10790_v14 = vunpack.c.h.bf16 %v10789_v28 }
 0x494   : > { %3135 = vmatmul.mubr.f32.gmra.mrb[230].mxu1 %v10776_v6  ;;  %v10791_v6 = vunpack.c.l.bf16 %v10789_v28  ;;  %v10804_v28 = vld [vmem:[#allocation263_spill] sm:$0xff] }
 0x495   : > { %3140 = vmatprep.mubr.f32.mxu1 %v10778_v62  ;;  %v10793_v62 = vunpack.c.h.bf16 %v10792_v23 }
 0x498   : > { %3141 = vmatmul.mubr.f32.gmra.mrb[232].mxu1 %v10779_v8  ;;  %v10794_v8 = vunpack.c.l.bf16 %v10792_v23  ;;  %v10807_v23 = vld [vmem:[#allocation266_spill] sm:$0xff] }
 0x499   : > { %3146 = vmatprep.mubr.f32.mxu1 %v10781_v16  ;;  %v10796_v16 = vunpack.c.h.bf16 %v10795_v56 }
 0x49c   : > { %3147 = vmatmul.mubr.f32.gmra.mrb[234].mxu1 %v10782_v46  ;;  %v10797_v46 = vunpack.c.l.bf16 %v10795_v56  ;;  %v10810_v56 = vld [vmem:[#allocation269_spill] sm:$0xff] }
 0x49d   : > { %3152 = vmatprep.mubr.f32.mxu1 %v10784_v10  ;;  %v10799_v10 = vunpack.c.h.bf16 %v10798_v22 }
 0x4a0   : > { %3153 = vmatmul.mubr.f32.gmra.mrb[236].mxu1 %v10785_v53  ;;  %v10800_v53 = vunpack.c.l.bf16 %v10798_v22  ;;  %v10813_v22 = vld [vmem:[#allocation272_spill] sm:$0xff] }
 0x4a1   : > { %3158 = vmatprep.mubr.f32.mxu1 %v10787_v21  ;;  %v10802_v21 = vunpack.c.h.bf16 %v10801_v49 }
 0x4a4   : > { %3159 = vmatmul.mubr.f32.gmra.mrb[238].mxu1 %v10788_v29  ;;  %v10803_v29 = vunpack.c.l.bf16 %v10801_v49  ;;  %v10816_v49 = vld [vmem:[#allocation275_spill] sm:$0xff] }
 0x4a5   : > { %3164 = vmatprep.mubr.f32.mxu1 %v10790_v14  ;;  %v10805_v14 = vunpack.c.h.bf16 %v10804_v28 }
 0x4a8   : > { %3165 = vmatmul.mubr.f32.gmra.mrb[240].mxu1 %v10791_v6  ;;  %v10806_v6 = vunpack.c.l.bf16 %v10804_v28  ;;  %v10819_v28 = vld [vmem:[#allocation46_spill] sm:$0xff] }
 0x4a9   : > { %3170 = vmatprep.mubr.f32.mxu1 %v10793_v62  ;;  %v10808_v62 = vunpack.c.h.bf16 %v10807_v23 }
 0x4ac   : > { %3171 = vmatmul.mubr.f32.gmra.mrb[242].mxu1 %v10794_v8  ;;  %v10809_v8 = vunpack.c.l.bf16 %v10807_v23  ;;  %v10822_v23 = vld [vmem:[#allocation140_spill] sm:$0xff] }
 0x4ad   : > { %3176 = vmatprep.mubr.f32.mxu1 %v10796_v16  ;;  %v10811_v16 = vunpack.c.h.bf16 %v10810_v56 }
 0x4b0   : > { %3177 = vmatmul.mubr.f32.gmra.mrb[244].mxu1 %v10797_v46  ;;  %v10812_v46 = vunpack.c.l.bf16 %v10810_v56  ;;  %v10825_v56 = vld [vmem:[#allocation148_spill] sm:$0xff] }
 0x4b1   : > { %3182 = vmatprep.mubr.f32.mxu1 %v10799_v10  ;;  %v10814_v10 = vunpack.c.h.bf16 %v10813_v22 }
 0x4b4   : > { %3183 = vmatmul.mubr.f32.gmra.mrb[246].mxu1 %v10800_v53  ;;  %v10815_v53 = vunpack.c.l.bf16 %v10813_v22  ;;  %v10828_v22 = vld [vmem:[#allocation156_spill] sm:$0xff] }
 0x4b5   : > { %3188 = vmatprep.mubr.f32.mxu1 %v10802_v21  ;;  %v10817_v21 = vunpack.c.h.bf16 %v10816_v49 }
 0x4b8   : > { %3189 = vmatmul.mubr.f32.gmra.mrb[248].mxu1 %v10803_v29  ;;  %v10818_v29 = vunpack.c.l.bf16 %v10816_v49  ;;  %v10831_v49 = vld [vmem:[#allocation164_spill] sm:$0xff] }
 0x4b9   : > { %3194 = vmatprep.mubr.f32.mxu1 %v10805_v14  ;;  %v10820_v14 = vunpack.c.l.bf16 %v10819_v28 }
 0x4bc   : > { %3195 = vmatmul.mubr.f32.gmra.mrb[250].mxu1 %v10806_v6  ;;  %v10821_v6 = vunpack.c.h.bf16 %v10819_v28  ;;  %v10834_v28 = vld [vmem:[#allocation172_spill] sm:$0xff] }
 0x4bd   : > { %3200 = vmatprep.mubr.f32.mxu1 %v10808_v62  ;;  %v10823_v62 = vunpack.c.l.bf16 %v10822_v23 }
 0x4c0   : > { %3201 = vmatmul.mubr.f32.gmra.mrb[252].mxu1 %v10809_v8  ;;  %v10824_v8 = vunpack.c.h.bf16 %v10822_v23  ;;  %v10837_v23 = vld [vmem:[#allocation180_spill] sm:$0xff] }
 0x4c1   : > { %3206 = vmatprep.mubr.f32.mxu1 %v10811_v16  ;;  %v10826_v16 = vunpack.c.l.bf16 %v10825_v56 }
 0x4c4   : > { %3207 = vmatmul.mubr.f32.gmra.mrb[254].mxu1 %v10812_v46  ;;  %v10827_v46 = vunpack.c.h.bf16 %v10825_v56  ;;  %v10840_v56 = vld [vmem:[#allocation187_spill] sm:$0xff] }
 0x4c5   : > { %3212 = vmatprep.mubr.f32.mxu1 %v10814_v10  ;;  %v10829_v10 = vunpack.c.l.bf16 %v10828_v22 }
 0x4c8   : > { %3213 = vmatmul.mubr.f32.gmra.mrb[0].mxu1 %v10815_v53  ;;  %v10830_v53 = vunpack.c.h.bf16 %v10828_v22  ;;  %v10843_v22 = vld [vmem:[#allocation191_spill] sm:$0xff] }
 0x4c9   : > { %3218 = vmatprep.mubr.f32.mxu1 %v10817_v21  ;;  %v10832_v21 = vunpack.c.l.bf16 %v10831_v49 }
 0x4cc   : > { %3219 = vmatmul.mubr.f32.gmra.mrb[2].mxu1 %v10818_v29  ;;  %v10833_v29 = vunpack.c.h.bf16 %v10831_v49  ;;  %v10846_v49 = vld [vmem:[#allocation195_spill] sm:$0xff] }
 0x4cd   : > { %3289 = vmatprep.mubr.f32.mxu1 %v10477_v57 }
 0x4d0   : > { %3290 = vmatmul.mubr.f32.vlgmr.msra.gmra.mrb[164].mxu1 %v10820_v14  ;;  %v10835_v14 = vunpack.c.l.bf16 %v10834_v28 }
 0x4d1   : > { %3295 = vmatprep.mubr.f32.mxu1 %v10477_v57 }
 0x4d4   : > { %3296 = vmatmul.mubr.f32.gmra.mrb[166].mxu1 %v10821_v6  ;;  %v10836_v6 = vunpack.c.h.bf16 %v10834_v28  ;;  %v10849_v28 = vld [vmem:[#allocation199_spill] sm:$0xff] }
 0x4d5   : > { %3301 = vmatprep.mubr.f32.mxu1 %v10477_v57 }
 0x4d8   : > { %3302 = vmatmul.mubr.f32.gmra.mrb[168].mxu1 %v10823_v62  ;;  %v10838_v62 = vunpack.c.l.bf16 %v10837_v23 }
 0x4d9   : > { %3307 = vmatprep.mubr.f32.mxu1 %v10477_v57 }
 0x4dc   : > { %3308 = vmatmul.mubr.f32.gmra.mrb[170].mxu1 %v10824_v8  ;;  %v10839_v8 = vunpack.c.h.bf16 %v10837_v23  ;;  %v10852_v23 = vld [vmem:[#allocation203_spill] sm:$0xff] }
 0x4dd   : > { %3313 = vmatprep.mubr.f32.mxu1 %v10477_v57 }
 0x4e0   : > { %3314 = vmatmul.mubr.f32.gmra.mrb[172].mxu1 %v10826_v16  ;;  %v10841_v16 = vunpack.c.l.bf16 %v10840_v56 }
 0x4e1   : > { %3319 = vmatprep.mubr.f32.mxu1 %v10477_v57 }
 0x4e4   : > { %3320 = vmatmul.mubr.f32.gmra.mrb[174].mxu1 %v10827_v46  ;;  %v10842_v46 = vunpack.c.h.bf16 %v10840_v56  ;;  %v10855_v56 = vld [vmem:[#allocation207_spill] sm:$0xff] }
 0x4e5   : > { %3325 = vmatprep.mubr.f32.mxu1 %v10477_v57 }
 0x4e8   : > { %3326 = vmatmul.mubr.f32.gmra.mrb[176].mxu1 %v10829_v10  ;;  %v10844_v10 = vunpack.c.l.bf16 %v10843_v22 }
 0x4e9   : > { %3331 = vmatprep.mubr.f32.mxu1 %v10477_v57 }
 0x4ec   : > { %3332 = vmatmul.mubr.f32.gmra.mrb[178].mxu1 %v10830_v53  ;;  %v10845_v53 = vunpack.c.h.bf16 %v10843_v22  ;;  %v10858_v22 = vld [vmem:[#allocation211_spill] sm:$0xff] }
 0x4ed   : > { %3337 = vmatprep.mubr.f32.mxu1 %v10477_v57 }
 0x4f0   : > { %3338 = vmatmul.mubr.f32.gmra.mrb[180].mxu1 %v10832_v21  ;;  %v10847_v21 = vunpack.c.l.bf16 %v10846_v49 }
 0x4f1   : > { %3343 = vmatprep.mubr.f32.mxu1 %v10477_v57 }
 0x4f4   : > { %3344 = vmatmul.mubr.f32.gmra.mrb[182].mxu1 %v10833_v29  ;;  %v10848_v29 = vunpack.c.h.bf16 %v10846_v49  ;;  %v10861_v49 = vld [vmem:[#allocation215_spill] sm:$0xff] }
 0x4f5   : > { %3349 = vmatprep.mubr.f32.mxu1 %v10477_v57 }
 0x4f8   : > { %3350 = vmatmul.mubr.f32.gmra.mrb[184].mxu1 %v10835_v14  ;;  %v10850_v14 = vunpack.c.l.bf16 %v10849_v28 }
 0x4f9   : > { %3355 = vmatprep.mubr.f32.mxu1 %v10477_v57 }
 0x4fc   : > { %3356 = vmatmul.mubr.f32.gmra.mrb[186].mxu1 %v10836_v6  ;;  %v10851_v6 = vunpack.c.h.bf16 %v10849_v28  ;;  %v10864_v28 = vld [vmem:[#allocation219_spill] sm:$0xff] }
 0x4fd   : > { %3361 = vmatprep.mubr.f32.mxu1 %v10477_v57 }
 0x500   : > { %3362 = vmatmul.mubr.f32.gmra.mrb[188].mxu1 %v10838_v62  ;;  %v10853_v62 = vunpack.c.l.bf16 %v10852_v23 }
 0x501   : > { %3367 = vmatprep.mubr.f32.mxu1 %v10477_v57 }
 0x504   : > { %3368 = vmatmul.mubr.f32.gmra.mrb[190].mxu1 %v10839_v8  ;;  %v10854_v8 = vunpack.c.h.bf16 %v10852_v23  ;;  %v10867_v23 = vld [vmem:[#allocation223_spill] sm:$0xff] }
 0x505   : > { %3373 = vmatprep.mubr.f32.mxu1 %v10477_v57 }
 0x508   : > { %3374 = vmatmul.mubr.f32.gmra.mrb[192].mxu1 %v10841_v16  ;;  %v10856_v16 = vunpack.c.l.bf16 %v10855_v56 }
 0x509   : > { %3379 = vmatprep.mubr.f32.mxu1 %v10477_v57 }
 0x50c   : > { %3380 = vmatmul.mubr.f32.gmra.mrb[194].mxu1 %v10842_v46  ;;  %v10857_v46 = vunpack.c.h.bf16 %v10855_v56  ;;  %v10870_v56 = vld [vmem:[#allocation227_spill] sm:$0xff] }
 0x50d   : > { %3385 = vmatprep.mubr.f32.mxu1 %v10477_v57 }
 0x510   : > { %3386 = vmatmul.mubr.f32.gmra.mrb[196].mxu1 %v10844_v10  ;;  %v10859_v10 = vunpack.c.l.bf16 %v10858_v22 }
 0x511   : > { %3391 = vmatprep.mubr.f32.mxu1 %v10477_v57 }
 0x514   : > { %3392 = vmatmul.mubr.f32.gmra.mrb[198].mxu1 %v10845_v53  ;;  %v10860_v53 = vunpack.c.h.bf16 %v10858_v22  ;;  %v10873_v22 = vld [vmem:[#allocation231_spill] sm:$0xff] }
 0x515   : > { %3397 = vmatprep.mubr.f32.mxu1 %v10477_v57 }
 0x518   : > { %3398 = vmatmul.mubr.f32.gmra.mrb[200].mxu1 %v10847_v21  ;;  %v10862_v21 = vunpack.c.l.bf16 %v10861_v49 }
 0x519   : > { %3403 = vmatprep.mubr.f32.mxu1 %v10477_v57 }
 0x51c   : > { %3404 = vmatmul.mubr.f32.gmra.mrb[202].mxu1 %v10848_v29  ;;  %v10863_v29 = vunpack.c.h.bf16 %v10861_v49  ;;  %v10876_v49 = vld [vmem:[#allocation235_spill] sm:$0xff] }
 0x51d   : > { %3409 = vmatprep.mubr.f32.mxu1 %v10477_v57 }
 0x520   : > { %3410 = vmatmul.mubr.f32.gmra.mrb[204].mxu1 %v10850_v14  ;;  %v10865_v14 = vunpack.c.l.bf16 %v10864_v28 }
 0x521   : > { %3415 = vmatprep.mubr.f32.mxu1 %v10477_v57 }
 0x524   : > { %3416 = vmatmul.mubr.f32.gmra.mrb[206].mxu1 %v10851_v6  ;;  %v10866_v6 = vunpack.c.h.bf16 %v10864_v28  ;;  %v10879_v28 = vld [vmem:[#allocation239_spill] sm:$0xff] }
 0x525   : > { %3421 = vmatprep.mubr.f32.mxu1 %v10477_v57 }
 0x528   : > { %3422 = vmatmul.mubr.f32.gmra.mrb[208].mxu1 %v10853_v62  ;;  %v10868_v62 = vunpack.c.l.bf16 %v10867_v23 }
 0x529   : > { %3427 = vmatprep.mubr.f32.mxu1 %v10477_v57 }
 0x52c   : > { %3428 = vmatmul.mubr.f32.gmra.mrb[210].mxu1 %v10854_v8  ;;  %v10869_v8 = vunpack.c.h.bf16 %v10867_v23  ;;  %v10882_v23 = vld [vmem:[#allocation243_spill] sm:$0xff] }
 0x52d   : > { %3433 = vmatprep.mubr.f32.mxu1 %v10477_v57 }
 0x530   : > { %3434 = vmatmul.mubr.f32.gmra.mrb[212].mxu1 %v10856_v16  ;;  %v10871_v16 = vunpack.c.l.bf16 %v10870_v56 }
 0x531   : > { %3439 = vmatprep.mubr.f32.mxu1 %v10477_v57 }
 0x534   : > { %3440 = vmatmul.mubr.f32.gmra.mrb[214].mxu1 %v10857_v46  ;;  %v10872_v46 = vunpack.c.h.bf16 %v10870_v56  ;;  %v10885_v56 = vld [vmem:[#allocation247_spill] sm:$0xff] }
 0x535   : > { %3445 = vmatprep.mubr.f32.mxu1 %v10477_v57 }
 0x538   : > { %3446 = vmatmul.mubr.f32.gmra.mrb[216].mxu1 %v10859_v10  ;;  %v10874_v10 = vunpack.c.l.bf16 %v10873_v22 }
 0x539   : > { %3451 = vmatprep.mubr.f32.mxu1 %v10477_v57 }
 0x53c   : > { %3452 = vmatmul.mubr.f32.gmra.mrb[218].mxu1 %v10860_v53  ;;  %v10875_v53 = vunpack.c.h.bf16 %v10873_v22  ;;  %v10888_v22 = vld [vmem:[#allocation251_spill] sm:$0xff] }
 0x53d   : > { %3457 = vmatprep.mubr.f32.mxu1 %v10477_v57 }
 0x540   : > { %3458 = vmatmul.mubr.f32.gmra.mrb[220].mxu1 %v10862_v21  ;;  %v10877_v21 = vunpack.c.l.bf16 %v10876_v49 }
 0x541   : > { %3463 = vmatprep.mubr.f32.mxu1 %v10477_v57 }
 0x544   : > { %3464 = vmatmul.mubr.f32.gmra.mrb[222].mxu1 %v10863_v29  ;;  %v10878_v29 = vunpack.c.h.bf16 %v10876_v49  ;;  %v710_v49 = vsub.s32 3, %v10526_v20 }
 0x545   : > { %3469 = vmatprep.mubr.f32.mxu1 %v10477_v57 }
 0x548   : > { %3470 = vmatmul.mubr.f32.gmra.mrb[224].mxu1 %v10865_v14  ;;  %v10880_v14 = vunpack.c.l.bf16 %v10879_v28 }
 0x549   : > { %3475 = vmatprep.mubr.f32.mxu1 %v10477_v57 }
 0x54c   : > { %3476 = vmatmul.mubr.f32.gmra.mrb[226].mxu1 %v10866_v6  ;;  %v10881_v6 = vunpack.c.h.bf16 %v10879_v28 }
 0x54d   : > { %3481 = vmatprep.mubr.f32.mxu1 %v10477_v57 }
 0x550   : > { %3482 = vmatmul.mubr.f32.gmra.mrb[228].mxu1 %v10868_v62  ;;  %v10883_v62 = vunpack.c.l.bf16 %v10882_v23 }
 0x551   : > { %3487 = vmatprep.mubr.f32.mxu1 %v10477_v57 }
 0x554   : > { %3488 = vmatmul.mubr.f32.gmra.mrb[230].mxu1 %v10869_v8  ;;  %v10884_v8 = vunpack.c.h.bf16 %v10882_v23  ;;  %v10891_v23 = vld [vmem:[#allocation144_spill] sm:$0xff] }
 0x555   : > { %3493 = vmatprep.mubr.f32.mxu1 %v10477_v57 }
 0x558   : > { %3494 = vmatmul.mubr.f32.gmra.mrb[232].mxu1 %v10871_v16  ;;  %v10886_v16 = vunpack.c.l.bf16 %v10885_v56 }
 0x559   : > { %3499 = vmatprep.mubr.f32.mxu1 %v10477_v57 }
 0x55c   : > { %3500 = vmatmul.mubr.f32.gmra.mrb[234].mxu1 %v10872_v46  ;;  %v10887_v46 = vunpack.c.h.bf16 %v10885_v56 }
 0x55d   : > { %3505 = vmatprep.mubr.f32.mxu1 %v10477_v57 }
 0x560   : > { %3506 = vmatmul.mubr.f32.gmra.mrb[236].mxu1 %v10874_v10  ;;  %v10889_v10 = vunpack.c.l.bf16 %v10888_v22 }
 0x561   : > { %3511 = vmatprep.mubr.f32.mxu1 %v10477_v57 }
 0x564   : > { %3512 = vmatmul.mubr.f32.gmra.mrb[238].mxu1 %v10875_v53  ;;  %v10890_v53 = vunpack.c.h.bf16 %v10888_v22 }
 0x565   : > { %3517 = vmatprep.mubr.f32.mxu1 %v10477_v57 }
 0x568   : > { %3518 = vmatmul.mubr.f32.gmra.mrb[240].mxu1 %v10877_v21  ;;  %v714_v21 = vsub.s32 4, %v10526_v20 }
 0x569   : > { %3523 = vmatprep.mubr.f32.mxu1 %v10477_v57 }
 0x56c   : > { %3524 = vmatmul.mubr.f32.gmra.mrb[242].mxu1 %v10878_v29  ;;  %v6037_v29 = vld [vmem:[%s9846_s4] sm:$0x1f] }
 0x56d   : > { %3529 = vmatprep.mubr.f32.mxu1 %v10477_v57  ;;  %v9239_v28 = vrot.slane %v6037_v29, %v710_v49  ;;  %v10893_v49 = vld [vmem:[#allocation152_spill] sm:$0xff] }
 0x56f   : > { %v1294_v37 = vadd.f32 %v10893_v49, %v9239_v28 }
 0x570   : > { %3530 = vmatmul.mubr.f32.gmra.mrb[244].mxu1 %v10880_v14  ;;  %v9241_v14 = vrot.slane %v6037_v29, %v714_v21 }
 0x571   : > { %3535 = vmatprep.mubr.f32.mxu1 %v10477_v57 }
 0x574   : > { %3536 = vmatmul.mubr.f32.gmra.mrb[246].mxu1 %v10881_v6 }
 0x575   : > { %3541 = vmatprep.mubr.f32.mxu1 %v10477_v57 }
 0x578   : > { %3542 = vmatmul.mubr.f32.gmra.mrb[248].mxu1 %v10883_v62  ;;  %v1288_v62 = vadd.f32 %v10891_v23, %v9239_v28  ;;  %v10894_v23 = vld [vmem:[#allocation220_spill] sm:$0xff] }
 0x579   : > { %3547 = vmatprep.mubr.f32.mxu1 %v10477_v57  ;;  %v1644_v9 = vadd.f32 %v10894_v23, %v9241_v14  ;;  %v10898_v23 = vld [vmem:[#allocation224_spill] sm:$0xff] }
 0x57c   : > { %3548 = vmatmul.mubr.f32.gmra.mrb[250].mxu1 %v10884_v8 }
 0x57d   : > { %3553 = vmatprep.mubr.f32.mxu1 %v10477_v57 }
 0x580   : > { %3554 = vmatmul.mubr.f32.gmra.mrb[252].mxu1 %v10886_v16  ;;  %v10892_v16 = vld [vmem:[#allocation221_spill] sm:$0xff] }
 0x581   : > { %3559 = vmatprep.mubr.f32.mxu1 %v10477_v57 }
 0x584   : > { %3560 = vmatmul.mubr.f32.gmra.mrb[254].mxu1 %v10887_v46  ;;  %v1639_v46 = vadd.f32 %v10892_v16, %v9241_v14 }
 0x585   : > { %3565 = vmatprep.mubr.f32.mxu1 %v10477_v57 }
 0x588   : > { %3566 = vmatmul.mubr.f32.gmra.mrb[0].mxu1 %v10889_v10 }
 0x589   : > { %3571 = vmatprep.mubr.f32.mxu1 %v10477_v57 }
 0x58c   : > { %3572 = vmatmul.mubr.f32.gmra.mrb[2].mxu1 %v10890_v53 }
 0x5a3   : > { %v3291_v6 = vpop.f32.mrb[164].mxu1 }
 0x5a4   : > { %v5488_v8 = vadd.f32 %v3291_v6, %v8424_v41  ;;  %v3293_v56 = vpop.f32.mrb[165].mxu1 }
 0x5a5   : > { %v5489_v22 = vadd.f32 %v3293_v56, %v8426_v43  ;;  %v10895_v43 = vld [vmem:[#allocation160_spill] sm:$0xff] }
 0x5a6   : > { %v3578_v10 = vadd.f32 %v5488_v8, %v1288_v62  ;;  %v1300_v62 = vadd.f32 %v10895_v43, %v9239_v28 }
 0x5a7   : > { %v3579_v53 = vadd.f32 %v5489_v22, %v1639_v46  ;;  %v3297_v20 = vpop.f32.mrb[166].mxu1  ;;  %v10896_v22 = vld [vmem:[#allocation225_spill] sm:$0xff] }
 0x5a8   : > { %v4673_v21 = vmul.f32 -1.442695, %v3578_v10  ;;  %v5490_v29 = vadd.f32 %v3297_v20, %v8432_v33  ;;  %v3299_v25 = vpop.f32.mrb[167].mxu1  ;;  %v1649_v20 = vadd.f32 %v10896_v22, %v9241_v14 }
 0x5a9   : > { %v5491_v41 = vadd.f32 %v3299_v25, %v8434_v39  ;;  %v10897_v25 = vld [vmem:[#allocation168_spill] sm:$0xff] }
 0x5aa   : > { %5736 = vpow2.f32 %v4673_v21  ;;  %v3580_v6 = vadd.f32 %v5490_v29, %v1294_v37 }
 0x5ab   : > { %v3581_v16 = vadd.f32 %v5491_v41, %v1644_v9  ;;  %v3303_v60 = vpop.f32.mrb[168].mxu1  ;;  %v1306_v9 = vadd.f32 %v10897_v25, %v9239_v28 }
 0x5ac   : > { %v4674_v8 = vmul.f32 -1.442695, %v3580_v6  ;;  %v5492_v56 = vadd.f32 %v3303_v60, %v8444_v3  ;;  %v3305_v46 = vpop.f32.mrb[169].mxu1  ;;  %v1654_v3 = vadd.f32 %v10898_v23, %v9241_v14 }
 0x5ad   : > { %v5493_v33 = vadd.f32 %v3305_v46, %v8446_v54 }
 0x5ae   : > { %5738 = vpow2.f32 %v4674_v8  ;;  %v3582_v10 = vadd.f32 %v5492_v56, %v1300_v62  ;;  %v10899_v62 = vld [vmem:[#allocation176_spill] sm:$0xff] }
 0x5af   : > { %v3583_v49 = vadd.f32 %v5493_v33, %v1649_v20  ;;  %v3309_v39 = vpop.f32.mrb[170].mxu1  ;;  %v1312_v8 = vadd.f32 %v10899_v62, %v9239_v28 }
 0x5b0   : > { %v4675_v37 = vmul.f32 -1.442695, %v3582_v10  ;;  %v5494_v21 = vadd.f32 %v3309_v39, %v8452_v4  ;;  %v3311_v29 = vpop.f32.mrb[171].mxu1  ;;  %v10900_v4 = vld [vmem:[#allocation229_spill] sm:$0xff] }
 0x5b1   : > { %v5495_v60 = vadd.f32 %v3311_v29, %v8454_v52  ;;  %v1659_v20 = vadd.f32 %v10900_v4, %v9241_v14  ;;  %v10904_v4 = vld [vmem:[#allocation233_spill] sm:$0xff] }
 0x5b2   : > { %5740 = vpow2.f32 %v4675_v37  ;;  %v3584_v41 = vadd.f32 %v5494_v21, %v1306_v9  ;;  %v10901_v37 = vld [vmem:[#allocation184_spill] sm:$0xff] }
 0x5b3   : > { %v3585_v6 = vadd.f32 %v5495_v60, %v1654_v3  ;;  %v3315_v54 = vpop.f32.mrb[172].mxu1  ;;  %5742 = vtanh.f32 %v3579_v53  ;;  %v1318_v21 = vadd.f32 %v10901_v37, %v9239_v28  ;;  %v10902_v3 = vld [vmem:[#allocation228_spill] sm:$0xff]  ;;  %v10905_v37 = vld [vmem:[#allocation193_spill] sm:$0xff] }
 0x5b4   : > { %v5737_v43 = vpop.eup %5736  ;;  %v4676_v56 = vmul.f32 -1.442695, %v3584_v41  ;;  %v5496_v46 = vadd.f32 %v3315_v54, %v8464_v31  ;;  %v3317_v22 = vpop.f32.mrb[173].mxu1  ;;  %v1664_v60 = vadd.f32 %v10902_v3, %v9241_v14 }
 0x5b5   : > { %v3818_v33 = vadd.f32 1.0, %v5737_v43  ;;  %v5497_v10 = vadd.f32 %v3317_v22, %v8466_v58 }
 0x5b6   : > { %5744 = vpow2.f32 %v4676_v56  ;;  %v3586_v52 = vadd.f32 %v5496_v46, %v1312_v8  ;;  %v10903_v8 = vld [vmem:[#allocation189_spill] sm:$0xff] }
 0x5b7   : > { %5746 = vrcp.f32 %v3818_v33  ;;  %v3587_v39 = vadd.f32 %v5497_v10, %v1659_v20  ;;  %v3321_v25 = vpop.f32.mrb[174].mxu1  ;;  %v1324_v56 = vadd.f32 %v10903_v8, %v9239_v28  ;;  %v1669_v20 = vadd.f32 %v10904_v4, %v9241_v14 }
 0x5b8   : > { %v5739_v9 = vpop.eup %5738  ;;  %v4677_v29 = vmul.f32 -1.442695, %v3586_v52  ;;  %v5498_v31 = vadd.f32 %v3321_v25, %v8472_v12  ;;  %v3323_v23 = vpop.f32.mrb[175].mxu1  ;;  %5748 = vtanh.f32 %v3581_v16 }
 0x5b9   : > { %v3819_v41 = vadd.f32 1.0, %v5739_v9  ;;  %v5499_v58 = vadd.f32 %v3323_v23, %v8474_v19 }
 0x5ba   : > { %5750 = vpow2.f32 %v4677_v29  ;;  %v3588_v53 = vadd.f32 %v5498_v31, %v1318_v21  ;;  %v1330_v21 = vadd.f32 %v10905_v37, %v9239_v28 }
 0x5bb   : > { %5752 = vrcp.f32 %v3819_v41  ;;  %v3589_v54 = vadd.f32 %v5499_v58, %v1664_v60  ;;  %v3327_v43 = vpop.f32.mrb[176].mxu1 }
 0x5bc   : > { %v5741_v62 = vpop.eup %5740  ;;  %v4678_v46 = vmul.f32 -1.442695, %v3588_v53  ;;  %v5500_v12 = vadd.f32 %v3327_v43, %v8484_v44  ;;  %v3329_v22 = vpop.f32.mrb[177].mxu1  ;;  %5754 = vtanh.f32 %v3583_v49  ;;  %v10906_v49 = vld [vmem:[#allocation232_spill] sm:$0xff] }
 0x5bd   : > { %v3820_v33 = vadd.f32 1.0, %v5741_v62  ;;  %v5501_v19 = vadd.f32 %v3329_v22, %v8486_v55  ;;  %v5743_v10 = vpop.eup %5742  ;;  %v1674_v3 = vadd.f32 %v10906_v49, %v9241_v14  ;;  %v10910_v49 = vld [vmem:[#allocation236_spill] sm:$0xff] }
 0x5be   : > { %5756 = vpow2.f32 %v4678_v46  ;;  %v3590_v16 = vadd.f32 %v5500_v12, %v1324_v56 }
 0x5bf   : > { %5758 = vrcp.f32 %v3820_v33  ;;  %v9285_v52 = vadd.f32 %v5501_v19, %v1669_v20  ;;  %v3333_v25 = vpop.f32.mrb[178].mxu1 }
 0x5c0   : > { %v5745_v9 = vpop.eup %5744  ;;  %v4679_v44 = vmul.f32 -1.442695, %v3590_v16  ;;  %v5502_v29 = vadd.f32 %v3333_v25, %v8492_v47  ;;  %v3335_v31 = vpop.f32.mrb[179].mxu1  ;;  %5760 = vtanh.f32 %v3585_v6  ;;  %v10907_v47 = vld [vmem:[#allocation197_spill] sm:$0xff] }
 0x5c1   : > { %v5747_v23 = vpop.eup %5746  ;;  %v3821_v55 = vadd.f32 1.0, %v5745_v9  ;;  %v5503_v60 = vadd.f32 %v3335_v31, %v8494_v13  ;;  %v1336_v56 = vadd.f32 %v10907_v47, %v9239_v28  ;;  %v10908_v13 = vld [vmem:[#allocation237_spill] sm:$0xff] }
 0x5c2   : > { %5762 = vpow2.f32 %v4679_v44  ;;  %v3592_v41 = vadd.f32 %v5502_v29, %v1330_v21  ;;  %v9293_v58 = vmul.f32 %v5747_v23, %v5743_v10  ;;  %v5749_v53 = vpop.eup %5748  ;;  %v1679_v4 = vadd.f32 %v10908_v13, %v9241_v14 }
 0x5c3   : > { %5764 = vrcp.f32 %v3821_v55  ;;  %v9295_v43 = vadd.f32 %v5503_v60, %v1674_v3  ;;  %v3339_v62 = vpop.f32.mrb[180].mxu1  ;;  %v1684_v3 = vadd.f32 %v10910_v49, %v9241_v14 }
 0x5c4   : > { %v5751_v8 = vpop.eup %5750  ;;  %v4680_v46 = vmul.f32 -1.442695, %v3592_v41  ;;  %v5504_v12 = vadd.f32 %v3339_v62, %v8504_v51  ;;  %v3341_v22 = vpop.f32.mrb[181].mxu1  ;;  %5766 = vtanh.f32 %v3587_v39  ;;  %v10909_v51 = vld [vmem:[#allocation201_spill] sm:$0xff]  ;;  %v4059_v39 = vld [vmem:[%s9844_s2 + $0x8] sm:$0xff] }
 0x5c5   : > { %v5753_v6 = vpop.eup %5752  ;;  %v3822_v20 = vadd.f32 1.0, %v5751_v8  ;;  %v5505_v33 = vadd.f32 %v3341_v22, %v8506_v11  ;;  %v1342_v21 = vadd.f32 %v10909_v51, %v9239_v28  ;;  %4131 = vmatprep.mubr.f32.mxu0 %v4059_v39  ;;  %v10914_v39 = vld [vmem:[#allocation240_spill] sm:$0xff] }
 0x5c6   : > { %5768 = vpow2.f32 %v4680_v46  ;;  %v3594_v19 = vadd.f32 %v5504_v12, %v1336_v56  ;;  %v9303_v16 = vmul.f32 %v5753_v6, %v5749_v53  ;;  %v5755_v10 = vpop.eup %5754  ;;  %v10911_v56 = vld [vmem:[#allocation205_spill] sm:$0xff] }
 0x5c7   : > { %5770 = vrcp.f32 %v3822_v20  ;;  %v9305_v25 = vadd.f32 %v5505_v33, %v1679_v4  ;;  %v3345_v9 = vpop.f32.mrb[182].mxu1  ;;  %v1348_v46 = vadd.f32 %v10911_v56, %v9239_v28 }
 0x5c8   : > { %v5757_v37 = vpop.eup %5756  ;;  %v4681_v44 = vmul.f32 -1.442695, %v3594_v19  ;;  %v5506_v29 = vadd.f32 %v3345_v9, %v8512_v61  ;;  %v3347_v31 = vpop.f32.mrb[183].mxu1  ;;  %v5404_v11 = vpack.c.bf16 %v9303_v16, %v9293_v58  ;;  %5772 = vtanh.f32 %v3589_v54 }
 0x5c9   : > { %v5759_v23 = vpop.eup %5758  ;;  %v3823_v55 = vadd.f32 1.0, %v5757_v37  ;;  %v5507_v60 = vadd.f32 %v3347_v31, %v8514_v2  ;;  %v10912_v2 = vld [vmem:[#allocation241_spill] sm:$0xff] }
 0x5ca   : > { %5774 = vpow2.f32 %v4681_v44  ;;  %v3596_v41 = vadd.f32 %v5506_v29, %v1342_v21  ;;  %v9318_v61 = vmul.f32 %v5759_v23, %v5755_v10  ;;  %v5761_v53 = vpop.eup %5760  ;;  %v1689_v13 = vadd.f32 %v10912_v2, %v9241_v14 }
 0x5cb   : > { %5776 = vrcp.f32 %v3823_v55  ;;  %v3597_v62 = vadd.f32 %v5507_v60, %v1684_v3  ;;  %v3351_v8 = vpop.f32.mrb[184].mxu1  ;;  %v1694_v23 = vadd.f32 %v10914_v39, %v9241_v14 }
 0x5cc   : > { %v5763_v47 = vpop.eup %5762  ;;  %v4682_v12 = vmul.f32 -1.442695, %v3596_v41  ;;  %v5508_v22 = vadd.f32 %v3351_v8, %v8524_v32  ;;  %v3353_v6 = vpop.f32.mrb[185].mxu1  ;;  %5778 = vtanh.f32 %v9285_v52  ;;  %v10913_v32 = vld [vmem:[#allocation209_spill] sm:$0xff] }
 0x5cd   : > { %v5765_v54 = vpop.eup %5764  ;;  %v3824_v4 = vadd.f32 1.0, %v5763_v47  ;;  %v5509_v20 = vadd.f32 %v3353_v6, %v8526_v34  ;;  %v1354_v21 = vadd.f32 %v10913_v32, %v9239_v28  ;;  %v10915_v47 = vld [vmem:[#allocation213_spill] sm:$0xff] }
 0x5ce   : > { %5780 = vpow2.f32 %v4682_v12  ;;  %v3598_v33 = vadd.f32 %v5508_v22, %v1348_v46  ;;  %v9327_v19 = vmul.f32 %v5765_v54, %v5761_v53  ;;  %v5767_v10 = vpop.eup %5766  ;;  %v1360_v56 = vadd.f32 %v10915_v47, %v9239_v28 }
 0x5cf   : > { %5782 = vrcp.f32 %v3824_v4  ;;  %v3599_v9 = vadd.f32 %v5509_v20, %v1689_v13  ;;  %v3357_v37 = vpop.f32.mrb[186].mxu1 }
 0x5d0   : > { %v5769_v51 = vpop.eup %5768  ;;  %v4683_v44 = vmul.f32 -1.442695, %v3598_v33  ;;  %v5510_v29 = vadd.f32 %v3357_v37, %v8532_v42  ;;  %v3359_v31 = vpop.f32.mrb[187].mxu1  ;;  %v5408_v52 = vpack.c.bf16 %v9327_v19, %v9318_v61  ;;  %5784 = vtanh.f32 %v9295_v43  ;;  %v10916_v43 = vld [vmem:[#allocation245_spill] sm:$0xff] }
 0x5d1   : > { %v5771_v34 = vpop.eup %5770  ;;  %v3825_v49 = vadd.f32 1.0, %v5769_v51  ;;  %v5511_v3 = vadd.f32 %v3359_v31, %v8534_v5  ;;  %v1699_v5 = vadd.f32 %v10916_v43, %v9241_v14 }
 0x5d2   : > { %5786 = vpow2.f32 %v4683_v44  ;;  %v3600_v55 = vadd.f32 %v5510_v29, %v1354_v21  ;;  %v9338_v60 = vmul.f32 %v5771_v34, %v5767_v10  ;;  %v5773_v41 = vpop.eup %5772  ;;  %v10918_v29 = vld [vmem:[#allocation244_spill] sm:$0xff] }
 0x5d3   : > { %5788 = vrcp.f32 %v3825_v49  ;;  %v3601_v42 = vadd.f32 %v5511_v3, %v1694_v23  ;;  %v3363_v53 = vpop.f32.mrb[188].mxu1  ;;  %v1704_v31 = vadd.f32 %v10918_v29, %v9241_v14 }
 0x5d4   : > { %v5775_v8 = vpop.eup %5774  ;;  %v4684_v46 = vmul.f32 -1.442695, %v3600_v55  ;;  %v5512_v12 = vadd.f32 %v3363_v53, %v8544_v50  ;;  %v3365_v22 = vpop.f32.mrb[189].mxu1  ;;  %5790 = vtanh.f32 %v9305_v25  ;;  %v10917_v50 = vld [vmem:[#allocation217_spill] sm:$0xff] }
 0x5d5   : > { %v5777_v6 = vpop.eup %5776  ;;  %v3826_v54 = vadd.f32 1.0, %v5775_v8  ;;  %v5513_v2 = vadd.f32 %v3365_v22, %v8546_v38  ;;  %v1366_v51 = vadd.f32 %v10917_v50, %v9239_v28  ;;  %v10919_v8 = vld [vmem:[#allocation59_spill] sm:$0xff] }
 0x5d6   : > { %5792 = vpow2.f32 %v4684_v46  ;;  %v3602_v13 = vadd.f32 %v5512_v12, %v1360_v56  ;;  %v9347_v4 = vmul.f32 %v5777_v6, %v5773_v41  ;;  %v5779_v20 = vpop.eup %5778  ;;  %v1372_v47 = vadd.f32 %v10919_v8, %v9239_v28 }
 0x5d7   : > { %5794 = vrcp.f32 %v3826_v54  ;;  %v3603_v33 = vadd.f32 %v5513_v2, %v1699_v5  ;;  %v3369_v10 = vpop.f32.mrb[190].mxu1 }
 0x5d8   : > { %v5781_v37 = vpop.eup %5780  ;;  %v4685_v32 = vmul.f32 -1.442695, %v3602_v13  ;;  %v5514_v21 = vadd.f32 %v3369_v10, %v8552_v30  ;;  %v3371_v44 = vpop.f32.mrb[191].mxu1  ;;  %v5412_v25 = vpack.c.bf16 %v9347_v4, %v9338_v60  ;;  %5796 = vtanh.f32 %v3597_v62  ;;  %v10920_v62 = vld [vmem:[#allocation249_spill] sm:$0xff] }
 0x5d9   : > { %v5783_v38 = vpop.eup %5782  ;;  %v3827_v34 = vadd.f32 1.0, %v5781_v37  ;;  %v5515_v39 = vadd.f32 %v3371_v44, %v8554_v24  ;;  %v1709_v24 = vadd.f32 %v10920_v62, %v9241_v14 }
 0x5da   : > { %5798 = vpow2.f32 %v4685_v32  ;;  %v3604_v23 = vadd.f32 %v5514_v21, %v1366_v51  ;;  %v9357_v49 = vmul.f32 %v5783_v38, %v5779_v20  ;;  %v5785_v3 = vpop.eup %5784  ;;  %v10922_v32 = vld [vmem:[#allocation248_spill] sm:$0xff] }
 0x5db   : > { %5800 = vrcp.f32 %v3827_v34  ;;  %v3605_v55 = vadd.f32 %v5515_v39, %v1704_v31  ;;  %v3375_v30 = vpop.f32.mrb[192].mxu1  ;;  %v1714_v21 = vadd.f32 %v10922_v32, %v9241_v14 }
 0x5dc   : > { %v5787_v41 = vpop.eup %5786  ;;  %v4686_v53 = vmul.f32 -1.442695, %v3604_v23  ;;  %v5516_v56 = vadd.f32 %v3375_v30, %v8564_v27  ;;  %v3377_v46 = vpop.f32.mrb[193].mxu1  ;;  %5802 = vtanh.f32 %v3599_v9  ;;  %v10921_v27 = vld [vmem:[#allocation63_spill] sm:$0xff] }
 0x5dd   : > { %v5789_v12 = vpop.eup %5788  ;;  %v3828_v22 = vadd.f32 1.0, %v5787_v41  ;;  %v5517_v6 = vadd.f32 %v3377_v46, %v8566_v7  ;;  %v1378_v37 = vadd.f32 %v10921_v27, %v9239_v28  ;;  %v10926_v27 = vld [vmem:[#allocation252_spill] sm:$0xff] }
 0x5de   : > { %5804 = vpow2.f32 %v4686_v53  ;;  %v3606_v43 = vadd.f32 %v5516_v56, %v1372_v47  ;;  %v9365_v5 = vmul.f32 %v5789_v12, %v5785_v3  ;;  %v5791_v54 = vpop.eup %5790  ;;  %v10923_v3 = vld [vmem:[#allocation69_spill] sm:$0xff] }
 0x5df   : > { %5806 = vrcp.f32 %v3828_v22  ;;  %v3607_v2 = vadd.f32 %v5517_v6, %v1709_v24  ;;  %v3381_v13 = vpop.f32.mrb[194].mxu1  ;;  %v1384_v30 = vadd.f32 %v10923_v3, %v9239_v28 }
 0x5e0   : > { %v5793_v20 = vpop.eup %5792  ;;  %v4687_v10 = vmul.f32 -1.442695, %v3606_v43  ;;  %v5518_v50 = vadd.f32 %v3381_v13, %v8572_v36  ;;  %v3383_v51 = vpop.f32.mrb[195].mxu1  ;;  %v5416_v9 = vpack.c.bf16 %v9365_v5, %v9357_v49  ;;  %5808 = vtanh.f32 %v3601_v42  ;;  %v10924_v42 = vld [vmem:[#allocation253_spill] sm:$0xff] }
 0x5e1   : > { %v5795_v7 = vpop.eup %5794  ;;  %v3829_v44 = vadd.f32 1.0, %v5793_v20  ;;  %v5519_v38 = vadd.f32 %v3383_v51, %v8574_v15  ;;  %v1719_v15 = vadd.f32 %v10924_v42, %v9241_v14 }
 0x5e2   : > { %5810 = vpow2.f32 %v4687_v10  ;;  %v3608_v29 = vadd.f32 %v5518_v50, %v1378_v37  ;;  %v9375_v31 = vmul.f32 %v5795_v7, %v5791_v54  ;;  %v5797_v34 = vpop.eup %5796  ;;  %v1724_v37 = vadd.f32 %v10926_v27, %v9241_v14 }
 0x5e3   : > { %5812 = vrcp.f32 %v3829_v44  ;;  %v3609_v39 = vadd.f32 %v5519_v38, %v1714_v21  ;;  %v3387_v36 = vpop.f32.mrb[196].mxu1 }
 0x5e4   : > { %v5799_v23 = vpop.eup %5798  ;;  %v4688_v41 = vmul.f32 -1.442695, %v3608_v29  ;;  %v5520_v53 = vadd.f32 %v3387_v36, %v8584_v45  ;;  %v3389_v8 = vpop.f32.mrb[197].mxu1  ;;  %5814 = vtanh.f32 %v3603_v33  ;;  %v10925_v45 = vld [vmem:[#allocation73_spill] sm:$0xff]  ;;  %v10927_v29 = vld [vmem:[#allocation76_spill] sm:$0xff] }
 0x5e5   : > { %v5801_v47 = vpop.eup %5800  ;;  %v3830_v56 = vadd.f32 1.0, %v5799_v23  ;;  %v5521_v46 = vadd.f32 %v3389_v8, %v8586_v0  ;;  %v1390_v54 = vadd.f32 %v10925_v45, %v9239_v28  ;;  %v10930_v45 = vld [vmem:[#allocation255_spill] sm:$0xff] }
 0x5e6   : > { %5816 = vpow2.f32 %v4688_v41  ;;  %v3610_v12 = vadd.f32 %v5520_v53, %v1384_v30  ;;  %v9383_v62 = vmul.f32 %v5801_v47, %v5797_v34  ;;  %v5803_v24 = vpop.eup %5802  ;;  %v1396_v34 = vadd.f32 %v10927_v29, %v9239_v28 }
 0x5e7   : > { %5818 = vrcp.f32 %v3830_v56  ;;  %v3611_v22 = vadd.f32 %v5521_v46, %v1719_v15  ;;  %v3393_v6 = vpop.f32.mrb[198].mxu1 }
 0x5e8   : > { %v5805_v43 = vpop.eup %5804  ;;  %v4689_v13 = vmul.f32 -1.442695, %v3610_v12  ;;  %v5522_v20 = vadd.f32 %v3393_v6, %v8592_v48  ;;  %v3395_v10 = vpop.f32.mrb[199].mxu1  ;;  %v5420_v33 = vpack.c.bf16 %v9383_v62, %v9375_v31  ;;  %5820 = vtanh.f32 %v3605_v55  ;;  %v10928_v55 = vld [vmem:[#allocation256_spill] sm:$0xff] }
 0x5e9   : > { %v5807_v0 = vpop.eup %5806  ;;  %v3831_v50 = vadd.f32 1.0, %v5805_v43  ;;  %v5523_v51 = vadd.f32 %v3395_v10, %v8594_v59  ;;  %v1729_v59 = vadd.f32 %v10928_v55, %v9241_v14 }
 0x5ea   : > { %5822 = vpow2.f32 %v4689_v13  ;;  %v3612_v7 = vadd.f32 %v5522_v20, %v1390_v54  ;;  %v9393_v32 = vmul.f32 %v5807_v0, %v5803_v24  ;;  %v5809_v21 = vpop.eup %5808  ;;  %v1734_v54 = vadd.f32 %v10930_v45, %v9241_v14 }
 0x5eb   : > { %5824 = vrcp.f32 %v3831_v50  ;;  %v3613_v44 = vadd.f32 %v5523_v51, %v1724_v37  ;;  %v3399_v48 = vpop.f32.mrb[200].mxu1  ;;  %v10931_v51 = vld [vmem:[#allocation84_spill] sm:$0xff] }
 0x5ec   : > { %v5811_v38 = vpop.eup %5810  ;;  %v4690_v36 = vmul.f32 -1.442695, %v3612_v7  ;;  %v5524_v23 = vadd.f32 %v3399_v48, %v8604_v18  ;;  %v3401_v3 = vpop.f32.mrb[201].mxu1  ;;  %5826 = vtanh.f32 %v3607_v2  ;;  %v10929_v18 = vld [vmem:[#allocation81_spill] sm:$0xff]  ;;  %v1408_v7 = vadd.f32 %v10931_v51, %v9239_v28  ;;  %v10938_v51 = vld [vmem:[#allocation56_spill] sm:$0xff] }
 0x5ed   : > { %v5813_v30 = vpop.eup %5812  ;;  %v3832_v41 = vadd.f32 1.0, %v5811_v38  ;;  %v5525_v53 = vadd.f32 %v3401_v3, %v8606_v1  ;;  %v1402_v12 = vadd.f32 %v10929_v18, %v9239_v28  ;;  %v10935_v18 = vld [vmem:[#allocation258_spill] sm:$0xff] }
 0x5ee   : > { %5828 = vpow2.f32 %v4690_v36  ;;  %v3614_v8 = vadd.f32 %v5524_v23, %v1396_v34  ;;  %v9401_v47 = vmul.f32 %v5813_v30, %v5809_v21  ;;  %v5815_v42 = vpop.eup %5814 }
 0x5ef   : > { %5830 = vrcp.f32 %v3832_v41  ;;  %v3615_v15 = vadd.f32 %v5525_v53, %v1729_v59  ;;  %v3405_v56 = vpop.f32.mrb[202].mxu1 }
 0x5f0   : > { %v5817_v46 = vpop.eup %5816  ;;  %v4691_v24 = vmul.f32 -1.442695, %v3614_v8  ;;  %v5526_v6 = vadd.f32 %v3405_v56, %v8612_v40  ;;  %v3407_v43 = vpop.f32.mrb[203].mxu1  ;;  %v5424_v2 = vpack.c.bf16 %v9401_v47, %v9393_v32  ;;  %5832 = vtanh.f32 %v3609_v39  ;;  %v10932_v39 = vld [vmem:[#allocation259_spill] sm:$0xff] }
 0x5f1   : > { %v5819_v1 = vpop.eup %5818  ;;  %v3833_v13 = vadd.f32 1.0, %v5817_v46  ;;  %v5527_v20 = vadd.f32 %v3407_v43, %v8614_v17  ;;  %v1739_v17 = vadd.f32 %v10932_v39, %v9241_v14  ;;  %v10940_v39 = vld [vmem:[#allocation57_spill] sm:$0xff] }
 0x5f2   : > { %5834 = vpow2.f32 %v4691_v24  ;;  %v3616_v10 = vadd.f32 %v5526_v6, %v1402_v12  ;;  %v9411_v0 = vmul.f32 %v5819_v1, %v5815_v42  ;;  %v5821_v27 = vpop.eup %5820  ;;  %v10934_v42 = vld [vmem:[#allocation16_spill] sm:$0xff]  ;;  %v1744_v12 = vadd.f32 %v10935_v18, %v9241_v14  ;;  %v10936_v6 = vld [vmem:[#allocation19_spill] sm:$0xff]  ;;  %v10943_v18 = vld [vmem:[#allocation261_spill] sm:$0xff] }
 0x5f3   : > { %5836 = vrcp.f32 %v3833_v13  ;;  %v3617_v37 = vadd.f32 %v5527_v20, %v1734_v54  ;;  %v3411_v40 = vpop.f32.mrb[204].mxu1 }
 0x5f4   : > { %v5823_v50 = vpop.eup %5822  ;;  %v4692_v21 = vmul.f32 -1.442695, %v3616_v10  ;;  %v5528_v48 = vadd.f32 %v3411_v40, %v8624_v35  ;;  %v3413_v38 = vpop.f32.mrb[205].mxu1  ;;  %5838 = vtanh.f32 %v3611_v22  ;;  %v10933_v35 = vld [vmem:[#allocation87_spill] sm:$0xff] }
 0x5f5   : > { %v5825_v29 = vpop.eup %5824  ;;  %v3834_v34 = vadd.f32 1.0, %v5823_v50  ;;  %v5529_v36 = vadd.f32 %v3413_v38, %v8626_v63  ;;  %v1414_v53 = vadd.f32 %v10933_v35, %v9239_v28  ;;  %v10941_v35 = vld [vmem:[#allocation95_spill] sm:$0xff] }
 0x5f6   : > { %5840 = vpow2.f32 %v4692_v21  ;;  %v3618_v23 = vadd.f32 %v5528_v48, %v1408_v7  ;;  %v9419_v3 = vmul.f32 %v5825_v29, %v5821_v27  ;;  %v5827_v30 = vpop.eup %5826  ;;  %v10937_v27 = vld [vmem:[#allocation90_spill] sm:$0xff] }
 0x5f7   : > { %5842 = vrcp.f32 %v3834_v34  ;;  %v3619_v55 = vadd.f32 %v5529_v36, %v1739_v17  ;;  %v3417_v59 = vpop.f32.mrb[206].mxu1  ;;  %v1420_v40 = vadd.f32 %v10937_v27, %v9239_v28 }
 0x5f8   : > { %v5829_v41 = vpop.eup %5828  ;;  %v4693_v8 = vmul.f32 -1.442695, %v3618_v23  ;;  %v5530_v56 = vadd.f32 %v3417_v59, %v10934_v42  ;;  %v3419_v46 = vpop.f32.mrb[207].mxu1  ;;  %v5428_v22 = vpack.c.bf16 %v9419_v3, %v9411_v0  ;;  %5844 = vtanh.f32 %v3613_v44  ;;  %v10939_v44 = vld [vmem:[#allocation262_spill] sm:$0xff] }
 0x5f9   : > { %v5831_v63 = vpop.eup %5830  ;;  %v3835_v24 = vadd.f32 1.0, %v5829_v41  ;;  %v5531_v43 = vadd.f32 %v3419_v46, %v10936_v6  ;;  %v1749_v38 = vadd.f32 %v10939_v44, %v9241_v14  ;;  %v10942_v42 = vld [vmem:[#allocation66_spill] sm:$0xff]  ;;  %v10944_v6 = vld [vmem:[#allocation67_spill] sm:$0xff] }
 0x5fa   : > { %5846 = vpow2.f32 %v4693_v8  ;;  %v3620_v1 = vadd.f32 %v5530_v56, %v1414_v53  ;;  %v9429_v45 = vmul.f32 %v5831_v63, %v5827_v30  ;;  %v5833_v54 = vpop.eup %5832  ;;  %v1426_v53 = vadd.f32 %v10941_v35, %v9239_v28 }
 0x5fb   : > { %5848 = vrcp.f32 %v3835_v24  ;;  %v3621_v13 = vadd.f32 %v5531_v43, %v1744_v12  ;;  %v3423_v20 = vpop.f32.mrb[208].mxu1  ;;  %v1754_v12 = vadd.f32 %v10943_v18, %v9241_v14 }
 0x5fc   : > { %v5835_v10 = vpop.eup %5834  ;;  %v4694_v50 = vmul.f32 -1.442695, %v3620_v1  ;;  %v5532_v7 = vadd.f32 %v3423_v20, %v10938_v51  ;;  %v3425_v21 = vpop.f32.mrb[209].mxu1  ;;  %5850 = vtanh.f32 %v3615_v15 }
 0x5fd   : > { %v5837_v48 = vpop.eup %5836  ;;  %v3836_v29 = vadd.f32 1.0, %v5835_v10  ;;  %v5533_v17 = vadd.f32 %v3425_v21, %v10940_v39  ;;  %v10946_v21 = vld [vmem:[#allocation78_spill] sm:$0xff] }
 0x5fe   : > { %5852 = vpow2.f32 %v4694_v50  ;;  %v3622_v34 = vadd.f32 %v5532_v7, %v1420_v40  ;;  %v9437_v36 = vmul.f32 %v5837_v48, %v5833_v54  ;;  %v5839_v23 = vpop.eup %5838  ;;  %v10945_v50 = vld [vmem:[#allocation98_spill] sm:$0xff] }
 0x5ff   : > { %5854 = vrcp.f32 %v3836_v29  ;;  %v9439_v30 = vadd.f32 %v5533_v17, %v1749_v38  ;;  %v3429_v59 = vpop.f32.mrb[210].mxu1  ;;  %v1432_v51 = vadd.f32 %v10945_v50, %v9239_v28  ;;  %v10948_v17 = vld [vmem:[#allocation79_spill] sm:$0xff] }
 0x600   : > { %v5841_v41 = vpop.eup %5840  ;;  %v4695_v8 = vmul.f32 -1.442695, %v3622_v34  ;;  %v5534_v56 = vadd.f32 %v3429_v59, %v10942_v42  ;;  %v3431_v46 = vpop.f32.mrb[211].mxu1  ;;  %v5432_v15 = vpack.c.bf16 %v9437_v36, %v9429_v45  ;;  %5856 = vtanh.f32 %v3617_v37  ;;  %v10947_v37 = vld [vmem:[#allocation265_spill] sm:$0xff] }
 0x601   : > { %v5843_v63 = vpop.eup %5842  ;;  %v3837_v24 = vadd.f32 1.0, %v5841_v41  ;;  %v5535_v43 = vadd.f32 %v3431_v46, %v10944_v6  ;;  %v1759_v29 = vadd.f32 %v10947_v37, %v9241_v14  ;;  %v10949_v42 = vld [vmem:[#allocation101_spill] sm:$0xff]  ;;  %v10951_v6 = vld [vmem:[#allocation264_spill] sm:$0xff] }
 0x602   : > { %5858 = vpow2.f32 %v4695_v8  ;;  %v3624_v1 = vadd.f32 %v5534_v56, %v1426_v53  ;;  %v4026_v54 = vmul.f32 %v5843_v63, %v5839_v23  ;;  %v5845_v20 = vpop.eup %5844  ;;  %v1438_v56 = vadd.f32 %v10949_v42, %v9239_v28  ;;  %v10950_v63 = vld [vmem:[#allocation92_spill] sm:$0xff]  ;;  %v11012_v36 = vld [vmem:[#allocation285_spill] sm:$0xff] }
 0x603   : > { %5860 = vrcp.f32 %v3837_v24  ;;  %v9449_v10 = vadd.f32 %v5535_v43, %v1754_v12  ;;  %v3435_v27 = vpop.f32.mrb[212].mxu1  ;;  %v1764_v43 = vadd.f32 %v10951_v6, %v9241_v14  ;;  %v10959_v6 = vld [vmem:[#allocation267_spill] sm:$0xff] }
 0x604   : > { %v5847_v40 = vpop.eup %5846  ;;  %v4696_v7 = vmul.f32 -1.442695, %v3624_v1  ;;  %v5536_v48 = vadd.f32 %v3435_v27, %v10946_v21  ;;  %v3437_v44 = vpop.f32.mrb[213].mxu1  ;;  %5862 = vtanh.f32 %v3619_v55 }
 0x605   : > { %v5849_v38 = vpop.eup %5848  ;;  %v3838_v39 = vadd.f32 1.0, %v5847_v40  ;;  %v5537_v34 = vadd.f32 %v3437_v44, %v10948_v17  ;;  %v10955_v17 = vld [vmem:[#allocation268_spill] sm:$0xff] }
 0x606   : > { %5864 = vpow2.f32 %v4696_v7  ;;  %v3626_v23 = vadd.f32 %v5536_v48, %v1432_v51  ;;  %v4027_v59 = vmul.f32 %v5849_v38, %v5845_v20  ;;  %v5851_v41 = vpop.eup %5850  ;;  %v10952_v20 = vld [vmem:[#allocation93_spill] sm:$0xff]  ;;  %v10953_v48 = vld [vmem:[#allocation104_spill] sm:$0xff]  ;;  %v10954_v38 = vld [vmem:[#allocation106_spill] sm:$0xff] }
 0x607   : > { %5866 = vrcp.f32 %v3838_v39  ;;  %v9457_v35 = vadd.f32 %v5537_v34, %v1759_v29  ;;  %v3441_v53 = vpop.f32.mrb[214].mxu1  ;;  %v1444_v44 = vadd.f32 %v10953_v48, %v9239_v28  ;;  %v1769_v34 = vadd.f32 %v10955_v17, %v9241_v14  ;;  %v10963_v17 = vld [vmem:[#allocation271_spill] sm:$0xff] }
 0x608   : > { %v5853_v8 = vpop.eup %5852  ;;  %v4697_v46 = vmul.f32 -1.442695, %v3626_v23  ;;  %v5538_v18 = vadd.f32 %v3441_v53, %v10950_v63  ;;  %v3443_v12 = vpop.f32.mrb[215].mxu1  ;;  %v5402_v24 = vpack.c.bf16 %v4027_v59, %v4026_v54  ;;  %5868 = vtanh.f32 %v3621_v13  ;;  %v10956_v59 = vld [vmem:[#allocation107_spill] sm:$0xff] }
 0x609   : > { %v5855_v55 = vpop.eup %5854  ;;  %v3839_v1 = vadd.f32 1.0, %v5853_v8  ;;  %v5539_v27 = vadd.f32 %v3443_v12, %v10952_v20  ;;  %v10960_v20 = vld [vmem:[#allocation121_spill] sm:$0xff] }
 0x60a   : > { %5870 = vpow2.f32 %v4697_v46  ;;  %v3628_v40 = vadd.f32 %v5538_v18, %v1438_v56  ;;  %5403 = vmatprep.subr.bf16.mxu0 %v5402_v24  ;;  %v4028_v50 = vmul.f32 %v5855_v55, %v5851_v41  ;;  %v5857_v51 = vpop.eup %5856  ;;  %v10957_v56 = vld [vmem:[#allocation109_spill] sm:$0xff]  ;;  %v10958_v18 = vld [vmem:[#allocation120_spill] sm:$0xff] }
 0x60b   : > { %5872 = vrcp.f32 %v3839_v1  ;;  %v9465_v7 = vadd.f32 %v5539_v27, %v1764_v43  ;;  %v3447_v21 = vpop.f32.mrb[216].mxu1  ;;  %5405 = vmatpush3.bf16.msra.mxu0 %v5404_v11  ;;  %v1450_v46 = vadd.f32 %v10957_v56, %v9239_v28  ;;  %v1774_v43 = vadd.f32 %v10959_v6, %v9241_v14  ;;  %v10968_v6 = vld [vmem:[#allocation142_spill] sm:$0xff] }
 0x60c   : > { %v5859_v54 = vpop.eup %5858  ;;  %v4698_v13 = vmul.f32 -1.442695, %v3628_v40  ;;  %v5540_v37 = vadd.f32 %v3447_v21, %v10954_v38  ;;  %v3449_v29 = vpop.f32.mrb[217].mxu1  ;;  %5874 = vtanh.f32 %v9439_v30  ;;  %v10962_v38 = vld [vmem:[#allocation134_spill] sm:$0xff] }
 0x60d   : > { %v5861_v39 = vpop.eup %5860  ;;  %v3840_v23 = vadd.f32 1.0, %v5859_v54  ;;  %v5541_v41 = vadd.f32 %v3449_v29, %v10956_v59  ;;  %v10964_v59 = vld [vmem:[#allocation135_spill] sm:$0xff] }
 0x60e   : > { %5876 = vpow2.f32 %v4698_v13  ;;  %v3630_v58 = vadd.f32 %v5540_v37, %v1444_v44  ;;  %v4029_v16 = vmul.f32 %v5861_v39, %v5857_v51  ;;  %v5863_v11 = vpop.eup %5862  ;;  %v10961_v44 = vld [vmem:[#allocation112_spill] sm:$0xff] }
 0x60f   : > { %5878 = vrcp.f32 %v3840_v23  ;;  %v9477_v53 = vadd.f32 %v5541_v41, %v1769_v34  ;;  %v3453_v8 = vpop.f32.mrb[218].mxu1  ;;  %v1456_v13 = vadd.f32 %v10961_v44, %v9239_v28  ;;  %v1779_v34 = vadd.f32 %v10963_v17, %v9241_v14  ;;  %v10970_v44 = vld [vmem:[#allocation14_spill] sm:$0xff] }
 0x610   : > { %v5865_v42 = vpop.eup %5864  ;;  %v4699_v63 = vmul.f32 -1.442695, %v3630_v58  ;;  %v5542_v12 = vadd.f32 %v3453_v8, %v10958_v18  ;;  %v3455_v24 = vpop.f32.mrb[219].mxu1  ;;  %v5406_v55 = vpack.c.bf16 %v4029_v16, %v4028_v50  ;;  %5880 = vtanh.f32 %v9449_v10  ;;  %v10965_v8 = vld [vmem:[#allocation115_spill] sm:$0xff]  ;;  %v10972_v17 = vld [vmem:[#allocation150_spill] sm:$0xff] }
 0x611   : > { %v5867_v30 = vpop.eup %5866  ;;  %v3841_v1 = vadd.f32 1.0, %v5865_v42  ;;  %v5543_v27 = vadd.f32 %v3455_v24, %v10960_v20  ;;  %v1462_v42 = vadd.f32 %v10965_v8, %v9239_v28  ;;  %v10967_v24 = vld [vmem:[#allocation270_spill] sm:$0xff] }
 0x612   : > { %5882 = vpow2.f32 %v4699_v63  ;;  %v3632_v40 = vadd.f32 %v5542_v12, %v1450_v46  ;;  %5407 = vmatprep.subr.bf16.mxu0 %v5406_v55  ;;  %v4030_v51 = vmul.f32 %v5867_v30, %v5863_v11  ;;  %v5869_v21 = vpop.eup %5868  ;;  %v10966_v46 = vld [vmem:[#allocation13_spill] sm:$0xff]  ;;  %v1784_v55 = vadd.f32 %v10967_v24, %v9241_v14 }
 0x613   : > { %5884 = vrcp.f32 %v3841_v1  ;;  %v9486_v54 = vadd.f32 %v5543_v27, %v1774_v43  ;;  %v3459_v48 = vpop.f32.mrb[220].mxu1  ;;  %5409 = vmatpush3.bf16.msra.mxu0 %v5408_v52 }
 0x614   : > { %v5871_v50 = vpop.eup %5870  ;;  %v4700_v10 = vmul.f32 -1.442695, %v3632_v40  ;;  %v5544_v37 = vadd.f32 %v3459_v48, %v10962_v38  ;;  %v3461_v29 = vpop.f32.mrb[221].mxu1  ;;  %5886 = vtanh.f32 %v9457_v35  ;;  %v10969_v48 = vld [vmem:[#allocation118_spill] sm:$0xff] }
 0x615   : > { %v5873_v39 = vpop.eup %5872  ;;  %v3842_v23 = vadd.f32 1.0, %v5871_v50  ;;  %v5545_v41 = vadd.f32 %v3461_v29, %v10964_v59  ;;  %v1468_v50 = vadd.f32 %v10969_v48, %v9239_v28 }
 0x616   : > { %5888 = vpow2.f32 %v4700_v10  ;;  %v3634_v61 = vadd.f32 %v5544_v37, %v1456_v13  ;;  %v4031_v19 = vmul.f32 %v5873_v39, %v5869_v21  ;;  %v5875_v52 = vpop.eup %5874  ;;  %v10971_v37 = vld [vmem:[#allocation274_spill] sm:$0xff] }
 0x617   : > { %5890 = vrcp.f32 %v3842_v23  ;;  %v9498_v58 = vadd.f32 %v5545_v41, %v1779_v34  ;;  %v3465_v16 = vpop.f32.mrb[222].mxu1  ;;  %v1789_v29 = vadd.f32 %v10971_v37, %v9241_v14 }
 0x618   : > { %v5877_v11 = vpop.eup %5876  ;;  %v4701_v56 = vmul.f32 -1.442695, %v3634_v61  ;;  %v5546_v63 = vadd.f32 %v3465_v16, %v10966_v46  ;;  %v3467_v18 = vpop.f32.mrb[223].mxu1  ;;  %v5410_v12 = vpack.c.bf16 %v4031_v19, %v4030_v51  ;;  %5892 = vtanh.f32 %v9465_v7  ;;  %v10973_v61 = vld [vmem:[#allocation123_spill] sm:$0xff] }
 0x619   : > { %v5879_v35 = vpop.eup %5878  ;;  %v3843_v30 = vadd.f32 1.0, %v5877_v11  ;;  %v5547_v43 = vadd.f32 %v3467_v18, %v10968_v6  ;;  %v1474_v19 = vadd.f32 %v10973_v61, %v9239_v28  ;;  %v10974_v16 = vld [vmem:[#allocation15_spill] sm:$0xff]  ;;  %v10976_v18 = vld [vmem:[#allocation158_spill] sm:$0xff] }
 0x61a   : > { %5894 = vpow2.f32 %v4701_v56  ;;  %v3636_v1 = vadd.f32 %v5546_v63, %v1462_v42  ;;  %5411 = vmatprep.subr.bf16.mxu0 %v5410_v12  ;;  %v4032_v20 = vmul.f32 %v5879_v35, %v5875_v52  ;;  %v5881_v27 = vpop.eup %5880  ;;  %v10975_v56 = vld [vmem:[#allocation273_spill] sm:$0xff] }
 0x61b   : > { %5896 = vrcp.f32 %v3843_v30  ;;  %v9507_v40 = vadd.f32 %v5547_v43, %v1784_v55  ;;  %v3471_v21 = vpop.f32.mrb[224].mxu1  ;;  %5413 = vmatpush3.bf16.msra.mxu0 %v5412_v25  ;;  %v1794_v46 = vadd.f32 %v10975_v56, %v9241_v14 }
 0x61c   : > { %v5883_v51 = vpop.eup %5882  ;;  %v4702_v7 = vmul.f32 -1.442695, %v3636_v1  ;;  %v5548_v13 = vadd.f32 %v3471_v21, %v10970_v44  ;;  %v3473_v10 = vpop.f32.mrb[225].mxu1  ;;  %5898 = vtanh.f32 %v9477_v53  ;;  %v10977_v1 = vld [vmem:[#allocation126_spill] sm:$0xff] }
 0x61d   : > { %v5885_v38 = vpop.eup %5884  ;;  %v3844_v39 = vadd.f32 1.0, %v5883_v51  ;;  %v5549_v34 = vadd.f32 %v3473_v10, %v10972_v17 }
 0x61e   : > { %5900 = vpow2.f32 %v4702_v7  ;;  %v3638_v60 = vadd.f32 %v5548_v13, %v1468_v50  ;;  %v4033_v4 = vmul.f32 %v5885_v38, %v5881_v27  ;;  %v5887_v25 = vpop.eup %5886  ;;  %v10978_v27 = vld [vmem:[#allocation17_spill] sm:$0xff]  ;;  %v10980_v13 = vld [vmem:[#allocation166_spill] sm:$0xff] }
 0x61f   : > { %5902 = vrcp.f32 %v3844_v39  ;;  %v9519_v23 = vadd.f32 %v5549_v34, %v1789_v29  ;;  %v3477_v59 = vpop.f32.mrb[226].mxu1  ;;  %v10979_v50 = vld [vmem:[#allocation277_spill] sm:$0xff] }
 0x620   : > { %v5889_v41 = vpop.eup %5888  ;;  %v4703_v52 = vmul.f32 -1.442695, %v3638_v60  ;;  %v5550_v11 = vadd.f32 %v3477_v59, %v10974_v16  ;;  %v3479_v8 = vpop.f32.mrb[227].mxu1  ;;  %v5414_v42 = vpack.c.bf16 %v4033_v4, %v4032_v20  ;;  %5904 = vtanh.f32 %v9486_v54  ;;  %v10981_v39 = vld [vmem:[#allocation129_spill] sm:$0xff]  ;;  %v10982_v60 = vld [vmem:[#allocation18_spill] sm:$0xff] }
 0x621   : > { %v5891_v53 = vpop.eup %5890  ;;  %v3845_v63 = vadd.f32 1.0, %v5889_v41  ;;  %v5551_v12 = vadd.f32 %v3479_v8, %v10976_v18  ;;  %v1480_v20 = vadd.f32 %v10977_v1, %v9239_v28  ;;  %v1799_v7 = vadd.f32 %v10979_v50, %v9241_v14  ;;  %v10983_v41 = vld [vmem:[#allocation276_spill] sm:$0xff] }
 0x622   : > { %5906 = vpow2.f32 %v4703_v52  ;;  %v3640_v35 = vadd.f32 %v5550_v11, %v1474_v19  ;;  %5415 = vmatprep.subr.bf16.mxu0 %v5414_v42  ;;  %v4034_v24 = vmul.f32 %v5891_v53, %v5887_v25  ;;  %v5893_v55 = vpop.eup %5892  ;;  %v1486_v17 = vadd.f32 %v10981_v39, %v9239_v28  ;;  %v10984_v52 = vld [vmem:[#allocation174_spill] sm:$0xff] }
 0x623   : > { %5908 = vrcp.f32 %v3845_v63  ;;  %v9528_v30 = vadd.f32 %v5551_v12, %v1794_v46  ;;  %v3483_v6 = vpop.f32.mrb[228].mxu1  ;;  %5417 = vmatpush3.bf16.msra.mxu0 %v5416_v9  ;;  %v1804_v61 = vadd.f32 %v10983_v41, %v9241_v14  ;;  %v10985_v63 = vld [vmem:[#allocation132_spill] sm:$0xff] }
 0x624   : > { %v5895_v43 = vpop.eup %5894  ;;  %v4704_v54 = vmul.f32 -1.442695, %v3640_v35  ;;  %v5552_v21 = vadd.f32 %v3483_v6, %v10978_v27  ;;  %v3485_v51 = vpop.f32.mrb[229].mxu1  ;;  %5910 = vtanh.f32 %v9498_v58  ;;  %v1492_v18 = vadd.f32 %v10985_v63, %v9239_v28  ;;  %v10986_v12 = vld [vmem:[#allocation20_spill] sm:$0xff]  ;;  %v10987_v6 = vld [vmem:[#allocation279_spill] sm:$0xff] }
 0x625   : > { %v5897_v48 = vpop.eup %5896  ;;  %v3846_v44 = vadd.f32 1.0, %v5895_v43  ;;  %v5553_v10 = vadd.f32 %v3485_v51, %v10980_v13  ;;  %v1809_v43 = vadd.f32 %v10987_v6, %v9241_v14 }
 0x626   : > { %5912 = vpow2.f32 %v4704_v54  ;;  %v3642_v49 = vadd.f32 %v5552_v21, %v1480_v20  ;;  %v4035_v5 = vmul.f32 %v5897_v48, %v5893_v55  ;;  %v5899_v9 = vpop.eup %5898  ;;  %v10988_v20 = vld [vmem:[#allocation182_spill] sm:$0xff]  ;;  %v10989_v48 = vld [vmem:[#allocation137_spill] sm:$0xff] }
 0x627   : > { %5914 = vrcp.f32 %v3846_v44  ;;  %v9540_v38 = vadd.f32 %v5553_v10, %v1799_v7  ;;  %v3489_v37 = vpop.f32.mrb[230].mxu1  ;;  %v1498_v50 = vadd.f32 %v10989_v48, %v9239_v28  ;;  %v10990_v44 = vld [vmem:[#allocation21_spill] sm:$0xff] }
 0x628   : > { %v5901_v29 = vpop.eup %5900  ;;  %v4705_v34 = vmul.f32 -1.442695, %v3642_v49  ;;  %v5554_v4 = vadd.f32 %v3489_v37, %v10982_v60  ;;  %v3491_v25 = vpop.f32.mrb[231].mxu1  ;;  %v5418_v59 = vpack.c.bf16 %v4035_v5, %v4034_v24  ;;  %5916 = vtanh.f32 %v9507_v40  ;;  %v10991_v5 = vld [vmem:[#allocation278_spill] sm:$0xff] }
 0x629   : > { %v5903_v58 = vpop.eup %5902  ;;  %v3847_v19 = vadd.f32 1.0, %v5901_v29  ;;  %v5555_v16 = vadd.f32 %v3491_v25, %v10984_v52  ;;  %v10992_v29 = vld [vmem:[#allocation188_spill] sm:$0xff] }
 0x62a   : > { %5918 = vpow2.f32 %v4705_v34  ;;  %v3644_v11 = vadd.f32 %v5554_v4, %v1486_v17  ;;  %5419 = vmatprep.subr.bf16.mxu0 %v5418_v59  ;;  %v4036_v8 = vmul.f32 %v5903_v58, %v5899_v9  ;;  %v5905_v42 = vpop.eup %5904  ;;  %v1814_v9 = vadd.f32 %v10991_v5, %v9241_v14  ;;  %v10993_v58 = vld [vmem:[#allocation141_spill] sm:$0xff] }
 0x62b   : > { %5920 = vrcp.f32 %v3847_v19  ;;  %v9549_v53 = vadd.f32 %v5555_v16, %v1804_v61  ;;  %v3495_v56 = vpop.f32.mrb[232].mxu1  ;;  %5421 = vmatpush3.bf16.msra.mxu0 %v5420_v33  ;;  %v1504_v41 = vadd.f32 %v10993_v58, %v9239_v28  ;;  %v10994_v61 = vld [vmem:[#allocation22_spill] sm:$0xff]  ;;  %v11005_v58 = vld [vmem:[#allocation153_spill] sm:$0xff] }
 0x62c   : > { %v5907_v46 = vpop.eup %5906  ;;  %v4706_v40 = vmul.f32 -1.442695, %v3644_v11  ;;  %v5556_v35 = vadd.f32 %v3495_v56, %v10986_v12  ;;  %v3497_v24 = vpop.f32.mrb[233].mxu1  ;;  %5922 = vtanh.f32 %v9519_v23  ;;  %v10995_v11 = vld [vmem:[#allocation281_spill] sm:$0xff]  ;;  %v10996_v56 = vld [vmem:[#allocation192_spill] sm:$0xff] }
 0x62d   : > { %v5909_v55 = vpop.eup %5908  ;;  %v3848_v1 = vadd.f32 1.0, %v5907_v46  ;;  %v5557_v54 = vadd.f32 %v3497_v24, %v10988_v20  ;;  %v10997_v12 = vld [vmem:[#allocation145_spill] sm:$0xff]  ;;  %v10999_v20 = vld [vmem:[#allocation280_spill] sm:$0xff] }
 0x62e   : > { %5924 = vpow2.f32 %v4706_v40  ;;  %v3646_v31 = vadd.f32 %v5556_v35, %v1492_v18  ;;  %v4037_v62 = vmul.f32 %v5909_v55, %v5905_v42  ;;  %v5911_v33 = vpop.eup %5910  ;;  %v1510_v35 = vadd.f32 %v10997_v12, %v9239_v28  ;;  %v10998_v55 = vld [vmem:[#allocation23_spill] sm:$0xff] }
 0x62f   : > { %5926 = vrcp.f32 %v3848_v1  ;;  %v9561_v27 = vadd.f32 %v5557_v54, %v1809_v43  ;;  %v3501_v21 = vpop.f32.mrb[234].mxu1  ;;  %v1824_v54 = vadd.f32 %v10999_v20, %v9241_v14  ;;  %v4058_v12 = vld [vmem:[%s9844_s2] sm:$0xff] }
 0x630   : > { %v5913_v51 = vpop.eup %5912  ;;  %v4707_v7 = vmul.f32 -1.442695, %v3646_v31  ;;  %v5558_v13 = vadd.f32 %v3501_v21, %v10990_v44  ;;  %v3503_v10 = vpop.f32.mrb[235].mxu1  ;;  %v5422_v49 = vpack.c.bf16 %v4037_v62, %v4036_v8  ;;  %5928 = vtanh.f32 %v9528_v30  ;;  %v11000_v62 = vld [vmem:[#allocation196_spill] sm:$0xff]  ;;  %v4062_v20 = vld [vmem:[%s9844_s2 + $0x20] sm:$0xff] }
 0x631   : > { %v5915_v23 = vpop.eup %5914  ;;  %v3849_v37 = vadd.f32 1.0, %v5913_v51  ;;  %v5559_v39 = vadd.f32 %v3503_v10, %v10992_v29  ;;  %v1819_v8 = vadd.f32 %v10995_v11, %v9241_v14  ;;  %v11007_v11 = vld [vmem:[#allocation282_spill] sm:$0xff] }
 0x632   : > { %5930 = vpow2.f32 %v4707_v7  ;;  %v3648_v17 = vadd.f32 %v5558_v13, %v1498_v50  ;;  %5423 = vmatprep.subr.bf16.mxu0 %v5422_v49  ;;  %v4038_v34 = vmul.f32 %v5915_v23, %v5911_v33  ;;  %v5917_v60 = vpop.eup %5916  ;;  %v11001_v13 = vld [vmem:[#allocation149_spill] sm:$0xff]  ;;  %v11002_v49 = vld [vmem:[#allocation24_spill] sm:$0xff] }
 0x633   : > { %5932 = vrcp.f32 %v3849_v37  ;;  %v9570_v4 = vadd.f32 %v5559_v39, %v1814_v9  ;;  %v3507_v25 = vpop.f32.mrb[236].mxu1  ;;  %5425 = vmatpush3.bf16.msra.mxu0 %v5424_v2  ;;  %v1516_v10 = vadd.f32 %v11001_v13, %v9239_v28  ;;  %v11003_v37 = vld [vmem:[#allocation283_spill] sm:$0xff]  ;;  %v11014_v13 = vld [vmem:[#allocation161_spill] sm:$0xff] }
 0x634   : > { %v5919_v59 = vpop.eup %5918  ;;  %v4708_v30 = vmul.f32 -1.442695, %v3648_v17  ;;  %v5560_v19 = vadd.f32 %v3507_v25, %v10994_v61  ;;  %v3509_v52 = vpop.f32.mrb[237].mxu1  ;;  %5934 = vtanh.f32 %v9540_v38  ;;  %v1829_v29 = vadd.f32 %v11003_v37, %v9241_v14  ;;  %v11004_v17 = vld [vmem:[#allocation200_spill] sm:$0xff]  ;;  %v11006_v61 = vld [vmem:[#allocation25_spill] sm:$0xff] }
 0x635   : > { %v5921_v16 = vpop.eup %5920  ;;  %v3850_v42 = vadd.f32 1.0, %v5919_v59  ;;  %v5561_v46 = vadd.f32 %v3509_v52, %v10996_v56  ;;  %v11008_v56 = vld [vmem:[#allocation204_spill] sm:$0xff] }
 0x636   : > { %5936 = vpow2.f32 %v4708_v30  ;;  %v3650_v32 = vadd.f32 %v5560_v19, %v1504_v41  ;;  %v4039_v47 = vmul.f32 %v5921_v16, %v5917_v60  ;;  %v5923_v2 = vpop.eup %5922  ;;  %v1522_v41 = vadd.f32 %v11005_v58, %v9239_v28 }
 0x637   : > { %5938 = vrcp.f32 %v3850_v42  ;;  %v9582_v63 = vadd.f32 %v5561_v46, %v1819_v8  ;;  %v3513_v18 = vpop.f32.mrb[238].mxu1  ;;  %v1834_v8 = vadd.f32 %v11007_v11, %v9241_v14 }
 0x638   : > { %v5925_v40 = vpop.eup %5924  ;;  %v4709_v24 = vmul.f32 -1.442695, %v3650_v32  ;;  %v5562_v6 = vadd.f32 %v3513_v18, %v10998_v55  ;;  %v3515_v43 = vpop.f32.mrb[239].mxu1  ;;  %v5426_v1 = vpack.c.bf16 %v4039_v47, %v4038_v34  ;;  %5940 = vtanh.f32 %v9549_v53 }
 0x639   : > { %v5927_v38 = vpop.eup %5926  ;;  %v3851_v31 = vadd.f32 1.0, %v5925_v40  ;;  %v5563_v33 = vadd.f32 %v3515_v43, %v11000_v62 }
 0x63a   : > { %5942 = vpow2.f32 %v4709_v24  ;;  %v3652_v21 = vadd.f32 %v5562_v6, %v1510_v35  ;;  %5427 = vmatprep.subr.bf16.mxu0 %v5426_v1  ;;  %v4040_v51 = vmul.f32 %v5927_v38, %v5923_v2  ;;  %v5929_v48 = vpop.eup %5928  ;;  %v11009_v35 = vld [vmem:[#allocation157_spill] sm:$0xff]  ;;  %v11010_v6 = vld [vmem:[#allocation26_spill] sm:$0xff]  ;;  %v11011_v38 = vmov 0.0|0.0  }
 0x63b   : > { %5944 = vrcp.f32 %v3851_v31  ;;  %v9591_v50 = vadd.f32 %v5563_v33, %v1824_v54  ;;  %v3519_v7 = vpop.f32.mrb[240].mxu1  ;;  %5429 = vmatpush3.bf16.msra.mxu0 %v5428_v22  ;;  %v1528_v24 = vadd.f32 %v11009_v35, %v9239_v28  ;;  %v11013_v31 = vld [vmem:[#allocation208_spill] sm:$0xff] }
 0x63c   : > { %v5931_v44 = vpop.eup %5930  ;;  %v4710_v53 = vmul.f32 -1.442695, %v3652_v21  ;;  %v5564_v23 = vadd.f32 %v3519_v7, %v11002_v49  ;;  %v3521_v5 = vpop.f32.mrb[241].mxu1  ;;  %5946 = vtanh.f32 %v9561_v27  ;;  %v11015_v49 = vld [vmem:[#allocation27_spill] sm:$0xff] }
 0x63d   : > { %v5933_v9 = vpop.eup %5932  ;;  %v3852_v39 = vadd.f32 1.0, %v5931_v44  ;;  %v5565_v34 = vadd.f32 %v3521_v5, %v11004_v17 }
 0x63e   : > { %5948 = vpow2.f32 %v4710_v53  ;;  %v3654_v0 = vadd.f32 %v5564_v23, %v1516_v10  ;;  %v4041_v3 = vmul.f32 %v5933_v9, %v5929_v48  ;;  %v5935_v22 = vpop.eup %5934  ;;  %v1534_v10 = vadd.f32 %v11014_v13, %v9239_v28  ;;  %v4061_v9 = vld [vmem:[%s9844_s2 + $0x18] sm:$0xff] }
 0x63f   : > { %5950 = vrcp.f32 %v3852_v39  ;;  %v9603_v60 = vadd.f32 %v5565_v34, %v1829_v29  ;;  %v3525_v25 = vpop.f32.mrb[242].mxu1  ;;  %v11016_v29 = vld [vmem:[#allocation284_spill] sm:$0xff] }
 0x640   : > { %v5937_v59 = vpop.eup %5936  ;;  %v4711_v30 = vmul.f32 -1.442695, %v3654_v0  ;;  %v5566_v19 = vadd.f32 %v3525_v25, %v11006_v61  ;;  %v3527_v52 = vpop.f32.mrb[243].mxu1  ;;  %v5430_v16 = vpack.c.bf16 %v4041_v3, %v4040_v51  ;;  %5952 = vtanh.f32 %v9570_v4  ;;  %v11017_v34 = vld [vmem:[#allocation212_spill] sm:$0xff]  ;;  %v4065_v3 = vld [vmem:[%s9844_s2 + $0x38] sm:$0xff] }
 0x641   : > { %v5939_v27 = vpop.eup %5938  ;;  %v3853_v42 = vadd.f32 1.0, %v5937_v59  ;;  %v5567_v46 = vadd.f32 %v3527_v52, %v11008_v56  ;;  %v1844_v39 = vadd.f32 %v11016_v29, %v9241_v14 }
 0x642   : > { %5954 = vpow2.f32 %v4711_v30  ;;  %v3656_v32 = vadd.f32 %v5566_v19, %v1522_v41  ;;  %5431 = vmatprep.subr.bf16.mxu0 %v5430_v16  ;;  %v4042_v47 = vmul.f32 %v5939_v27, %v5935_v22  ;;  %v5941_v2 = vpop.eup %5940  ;;  %v11019_v19 = vld [vmem:[#allocation287_spill] sm:$0xff]  ;;  %v11020_v27 = vld [vmem:[#allocation28_spill] sm:$0xff] }
 0x643   : > { %5956 = vrcp.f32 %v3853_v42  ;;  %v9612_v18 = vadd.f32 %v5567_v46, %v1834_v8  ;;  %v3531_v40 = vpop.f32.mrb[244].mxu1  ;;  %5433 = vmatpush3.bf16.msra.mxu0 %v5432_v15  ;;  %v1839_v15 = vadd.f32 %v11012_v36, %v9241_v14  ;;  %v1849_v52 = vadd.f32 %v11019_v19, %v9241_v14  ;;  %v4064_v42 = vld [vmem:[%s9844_s2 + $0x30] sm:$0xff] }
 0x644   : > { %v5943_v4 = vpop.eup %5942  ;;  %v4712_v55 = vmul.f32 -1.442695, %v3656_v32  ;;  %v5568_v43 = vadd.f32 %v3531_v40, %v11010_v6  ;;  %v3533_v1 = vpop.f32.mrb[245].mxu1  ;;  %5434 = vmatprep.subr.bf16.mxu0 %v11011_v38  ;;  %5958 = vtanh.f32 %v9582_v63  ;;  %v11021_v32 = vld [vmem:[#allocation216_spill] sm:$0xff] }
 0x645   : > { %v5945_v45 = vpop.eup %5944  ;;  %v3854_v54 = vadd.f32 1.0, %v5943_v4  ;;  %v5569_v62 = vadd.f32 %v3533_v1, %v11013_v31  ;;  %v11023_v1 = vld [vmem:[#allocation29_spill] sm:$0xff] }
 0x646   : > { %5960 = vpow2.f32 %v4712_v55  ;;  %v3658_v33 = vadd.f32 %v5568_v43, %v1528_v24  ;;  %4132 = vmatmul.mubr.f32.vlgmr.msra.gmra.mrb[60].mxu0 %v4058_v12  ;;  %v4043_v21 = vmul.f32 %v5945_v45, %v5941_v2  ;;  %v5947_v51 = vpop.eup %5946  ;;  %v11022_v55 = vld [vmem:[#allocation169_spill] sm:$0xff] }
 0x647   : > { %5962 = vrcp.f32 %v3854_v54  ;;  %v9631_v48 = vadd.f32 %v5569_v62, %v1839_v15  ;;  %v3537_v7 = vpop.f32.mrb[246].mxu1  ;;  %4136 = vmatprep.mubr.f32.mxu0 %v4062_v20  ;;  %v1546_v6 = vadd.f32 %v11022_v55, %v9239_v28  ;;  %v11024_v15 = vld [vmem:[#allocation286_spill] sm:$0xff]  ;;  %v11025_v62 = vld [vmem:[#allocation55_spill] sm:$0xff]  ;;  %v11034_v55 = vld [vmem:[#allocation65_spill] sm:$0xff] }
 0x648   : > { %v5949_v44 = vpop.eup %5948  ;;  %v4713_v53 = vmul.f32 -1.442695, %v3658_v33  ;;  %v5570_v23 = vadd.f32 %v3537_v7, %v11015_v49  ;;  %v3539_v63 = vpop.f32.mrb[247].mxu1  ;;  %v5435_v5 = vpack.c.bf16 %v4043_v21, %v4042_v47  ;;  %5964 = vtanh.f32 %v9591_v50  ;;  %v11018_v50 = vld [vmem:[#allocation165_spill] sm:$0xff] }
 0x649   : > { %v5951_v37 = vpop.eup %5950  ;;  %v3855_v17 = vadd.f32 1.0, %v5949_v44  ;;  %v5571_v0 = vadd.f32 %v3539_v63, %v11017_v34  ;;  %v1540_v61 = vadd.f32 %v11018_v50, %v9239_v28  ;;  %v1854_v54 = vadd.f32 %v11024_v15, %v9241_v14  ;;  %v11030_v50 = vld [vmem:[#allocation61_spill] sm:$0xff] }
 0x64a   : > { %5966 = vpow2.f32 %v4713_v53  ;;  %v3660_v22 = vadd.f32 %v5570_v23, %v1534_v10  ;;  %5436 = vmatpush3.bf16.msra.mxu0 %v5435_v5  ;;  %v4044_v25 = vmul.f32 %v5951_v37, %v5947_v51  ;;  %v5953_v59 = vpop.eup %5952  ;;  %v11026_v53 = vld [vmem:[#allocation173_spill] sm:$0xff] }
 0x64b   : > { %5968 = vrcp.f32 %v3855_v17  ;;  %v9646_v58 = vadd.f32 %v5571_v0, %v1844_v39  ;;  %v3543_v41 = vpop.f32.mrb[248].mxu1  ;;  %5437 = vmatprep.subr.bf16.mxu0 %v11011_v38  ;;  %4137 = vmatmul.mubr.f32.gmra.mrb[62].mxu0 %v4061_v9  ;;  %v1552_v49 = vadd.f32 %v11026_v53, %v9239_v28  ;;  %v11027_v9 = vld [vmem:[#allocation289_spill] sm:$0xff]  ;;  %v11028_v39 = vld [vmem:[#allocation30_spill] sm:$0xff] }
 0x64c   : > { %v5955_v30 = vpop.eup %5954  ;;  %v4714_v16 = vmul.f32 -1.442695, %v3660_v22  ;;  %v5572_v11 = vadd.f32 %v3543_v41, %v11020_v27  ;;  %v3545_v8 = vpop.f32.mrb[249].mxu1  ;;  %4141 = vmatprep.mubr.f32.mxu0 %v4065_v3  ;;  %5970 = vtanh.f32 %v9603_v60  ;;  %v1859_v37 = vadd.f32 %v11027_v9, %v9241_v14  ;;  %v11040_v9 = vld [vmem:[#allocation33_spill] sm:$0xff] }
 0x64d   : > { %v5957_v56 = vpop.eup %5956  ;;  %v3856_v46 = vadd.f32 1.0, %v5955_v30  ;;  %v5573_v47 = vadd.f32 %v3545_v8, %v11021_v32  ;;  %v11032_v8 = vld [vmem:[#allocation31_spill] sm:$0xff] }
 0x64e   : > { %5972 = vpow2.f32 %v4714_v16  ;;  %v3662_v2 = vadd.f32 %v5572_v11, %v1540_v61  ;;  %v4045_v40 = vmul.f32 %v5957_v56, %v5953_v59  ;;  %v5959_v12 = vpop.eup %5958 }
 0x64f   : > { %5974 = vrcp.f32 %v3856_v46  ;;  %v9659_v4 = vadd.f32 %v5573_v47, %v1849_v52  ;;  %v3549_v35 = vpop.f32.mrb[250].mxu1  ;;  %4142 = vmatmul.mubr.f32.gmra.mrb[64].mxu0 %v4064_v42 }
 0x650   : > { %v5961_v24 = vpop.eup %5960  ;;  %v4715_v43 = vmul.f32 -1.442695, %v3662_v2  ;;  %v5574_v20 = vadd.f32 %v3549_v35, %v11023_v1  ;;  %v3551_v45 = vpop.f32.mrb[251].mxu1  ;;  %v5438_v60 = vpack.c.bf16 %v4045_v40, %v4044_v25  ;;  %5135 = vmatprep.mubr.msk.f32.mxu0 %vm6141_vm1, %v10477_v57  ;;  %5976 = vtanh.f32 %v9612_v18  ;;  %v11035_v1 = vld [vmem:[#allocation291_spill] sm:$0xff] }
 0x651   : > { %v5963_v36 = vpop.eup %5962  ;;  %v3857_v31 = vadd.f32 1.0, %v5961_v24  ;;  %v5575_v33 = vadd.f32 %v3551_v45, %v11025_v62 }
 0x652   : > { %5978 = vpow2.f32 %v4715_v43  ;;  %v3664_v21 = vadd.f32 %v5574_v20, %v1546_v6  ;;  %5439 = vmatpush3.bf16.msra.mxu0 %v5438_v60  ;;  %v4046_v51 = vmul.f32 %v5963_v36, %v5959_v12  ;;  %v5965_v7 = vpop.eup %5964  ;;  %v11033_v12 = vld [vmem:[#allocation181_spill] sm:$0xff]  ;;  %v1869_v20 = vadd.f32 %v11035_v1, %v9241_v14  ;;  %v11036_v60 = vld [vmem:[#allocation32_spill] sm:$0xff] }
 0x653   : > { %5980 = vrcp.f32 %v3857_v31  ;;  %v9670_v44 = vadd.f32 %v5575_v33, %v1854_v54  ;;  %v3555_v13 = vpop.f32.mrb[252].mxu1  ;;  %5440 = vmatprep.subr.bf16.mxu0 %v11011_v38  ;;  %v1564_v35 = vadd.f32 %v11033_v12, %v9239_v28 }
 0x654   : > { %v5967_v10 = vpop.eup %5966  ;;  %v4716_v23 = vmul.f32 -1.442695, %v3664_v21  ;;  %v5576_v18 = vadd.f32 %v3555_v13, %v8908_v26  ;;  %v3557_v63 = vpop.f32.mrb[253].mxu1  ;;  %5982 = vtanh.f32 %v9631_v48  ;;  %v11029_v26 = vld [vmem:[#allocation177_spill] sm:$0xff]  ;;  %v11031_v48 = vld [vmem:[#allocation288_spill] sm:$0xff] }
 0x655   : > { %v5969_v5 = vpop.eup %5968  ;;  %v3858_v29 = vadd.f32 1.0, %v5967_v10  ;;  %v5577_v17 = vadd.f32 %v3557_v63, %v11028_v39  ;;  %v1558_v41 = vadd.f32 %v11029_v26, %v9239_v28  ;;  %v1864_v27 = vadd.f32 %v11031_v48, %v9241_v14  ;;  %v11038_v10 = vld [vmem:[#allocation71_spill] sm:$0xff] }
 0x656   : > { %5984 = vpow2.f32 %v4716_v23  ;;  %v3666_v34 = vadd.f32 %v5576_v18, %v1552_v49  ;;  %v4047_v0 = vmul.f32 %v5969_v5, %v5965_v7  ;;  %v5971_v3 = vpop.eup %5970 }
 0x657   : > { %5986 = vrcp.f32 %v3858_v29  ;;  %v3667_v22 = vadd.f32 %v5577_v17, %v1859_v37  ;;  %v3561_v25 = vpop.f32.mrb[254].mxu1 }
 0x658   : > { %v5973_v59 = vpop.eup %5972  ;;  %v4717_v30 = vmul.f32 -1.442695, %v3666_v34  ;;  %v5578_v61 = vadd.f32 %v3561_v25, %v11030_v50  ;;  %v3563_v19 = vpop.f32.mrb[255].mxu1  ;;  %v5441_v52 = vpack.c.bf16 %v4047_v0, %v4046_v51  ;;  %5988 = vtanh.f32 %v9646_v58  ;;  %v11037_v51 = vld [vmem:[#allocation185_spill] sm:$0xff] }
 0x659   : > { %v5975_v16 = vpop.eup %5974  ;;  %v3859_v11 = vadd.f32 1.0, %v5973_v59  ;;  %v5579_v42 = vadd.f32 %v3563_v19, %v11032_v8  ;;  %v1570_v7 = vadd.f32 %v11037_v51, %v9239_v28  ;;  %v4236_v51 = vld [vmem:[%s9848_s6 + $0x30] sm:$0xff] }
 0x65a   : > { %5990 = vpow2.f32 %v4717_v30  ;;  %v3668_v56 = vadd.f32 %v5578_v61, %v1558_v41  ;;  %5442 = vmatpush3.bf16.msra.mxu0 %v5441_v52  ;;  %v4048_v46 = vmul.f32 %v5975_v16, %v5971_v3  ;;  %v5977_v32 = vpop.eup %5976 }
 0x65b   : > { %5992 = vrcp.f32 %v3859_v11  ;;  %v3669_v47 = vadd.f32 %v5579_v42, %v1864_v27  ;;  %v3567_v2 = vpop.f32.mrb[0].mxu1  ;;  %5443 = vmatprep.subr.bf16.mxu0 %v11011_v38 }
 0x65c   : > { %v5979_v40 = vpop.eup %5978  ;;  %v4718_v24 = vmul.f32 -1.442695, %v3668_v56  ;;  %v5580_v6 = vadd.f32 %v3567_v2, %v11034_v55  ;;  %v3569_v58 = vpop.f32.mrb[1].mxu1  ;;  %5994 = vtanh.f32 %v9659_v4  ;;  %v11039_v4 = vld [vmem:[#allocation290_spill] sm:$0xff] }
 0x65d   : > { %v5981_v43 = vpop.eup %5980  ;;  %v3860_v45 = vadd.f32 1.0, %v5979_v40  ;;  %v5581_v36 = vadd.f32 %v3569_v58, %v11036_v60  ;;  %v1874_v63 = vadd.f32 %v11039_v4, %v9241_v14  ;;  %v4230_v58 = vld [vmem:[%s9848_s6] sm:$0xff]  ;;  %v4232_v60 = vld [vmem:[%s9848_s6 + $0x10] sm:$0xff] }
 0x65e   : > { %5996 = vpow2.f32 %v4718_v24  ;;  %v3670_v15 = vadd.f32 %v5580_v6, %v1564_v35  ;;  %v4049_v54 = vmul.f32 %v5981_v43, %v5977_v32  ;;  %v5983_v31 = vpop.eup %5982  ;;  %v4231_v43 = vld [vmem:[%s9848_s6 + $0x8] sm:$0xff] }
 0x65f   : > { %5998 = vrcp.f32 %v3860_v45  ;;  %v3671_v62 = vadd.f32 %v5581_v36, %v1869_v20  ;;  %v3573_v33 = vpop.f32.mrb[2].mxu1  ;;  %v4060_v20 = vld [vmem:[%s9844_s2 + $0x10] sm:$0xff]  ;;  %v5459_v45 = vpack.c.bf16 %v4231_v43, %v4230_v58  ;;  %v4233_v36 = vld [vmem:[%s9848_s6 + $0x18] sm:$0xff] }
 0x660   : > { %v5985_v21 = vpop.eup %5984  ;;  %v4719_v13 = vmul.f32 -1.442695, %v3670_v15  ;;  %v5582_v53 = vadd.f32 %v3573_v33, %v11038_v10  ;;  %v3575_v49 = vpop.f32.mrb[3].mxu1  ;;  %v5444_v23 = vpack.c.bf16 %v4049_v54, %v4048_v46  ;;  %6000 = vtanh.f32 %v9670_v44  ;;  %v4063_v15 = vld [vmem:[%s9844_s2 + $0x28] sm:$0xff]  ;;  %v4066_v33 = vld [vmem:[%s9844_s2 + $0x40] sm:$0xff] }
 0x661   : > { %v5987_v18 = vpop.eup %5986  ;;  %v3861_v5 = vadd.f32 1.0, %v5985_v21  ;;  %v5583_v37 = vadd.f32 %v3575_v49, %v11040_v9  ;;  %v5462_v54 = vpack.c.bf16 %v4233_v36, %v4232_v60  ;;  %v4238_v10 = vld [vmem:[%s9848_s6 + $0x40] sm:$0xff] }
 0x662   : > { %6002 = vpow2.f32 %v4719_v13  ;;  %v3672_v29 = vadd.f32 %v5582_v53, %v1570_v7  ;;  %5445 = vmatpush3.bf16.msra.mxu0 %v5444_v23  ;;  %v4050_v39 = vmul.f32 %v5987_v18, %v5983_v31  ;;  %v5989_v17 = vpop.eup %5988  ;;  %v4234_v31 = vld [vmem:[%s9848_s6 + $0x20] sm:$0xff]  ;;  %v4237_v7 = vld [vmem:[%s9848_s6 + $0x38] sm:$0xff]  ;;  %v4239_v53 = vld [vmem:[%s9848_s6 + $0x48] sm:$0xff] }
 0x663   : > { %6004 = vrcp.f32 %v3861_v5  ;;  %v3673_v28 = vadd.f32 %v5583_v37, %v1874_v63  ;;  %5446 = vmatprep.subr.bf16.mxu0 %v11011_v38  ;;  %v5468_v13 = vpack.c.bf16 %v4237_v7, %v4236_v51  ;;  %v5471_v49 = vpack.c.bf16 %v4239_v53, %v4238_v10  ;;  %v4240_v23 = vld [vmem:[%s9848_s6 + $0x50] sm:$0xff]  ;;  %v4241_v18 = vld [vmem:[%s9848_s6 + $0x58] sm:$0xff]  ;;  %v4242_v63 = vld [vmem:[%s9848_s6 + $0x60] sm:$0xff] }
 0x664   : > { %v5991_v34 = vpop.eup %5990  ;;  %v4720_v0 = vmul.f32 -1.442695, %v3672_v29  ;;  %6006 = vtanh.f32 %v3667_v22  ;;  %v5474_v4 = vpack.c.bf16 %v4241_v18, %v4240_v23  ;;  %v4243_v5 = vld [vmem:[%s9848_s6 + $0x68] sm:$0xff]  ;;  %v4244_v37 = vld [vmem:[%s9848_s6 + $0x70] sm:$0xff]  ;;  %v4245_v29 = vld [vmem:[%s9848_s6 + $0x78] sm:$0xff] }
 0x665   : > { %v5993_v3 = vpop.eup %5992  ;;  %v3862_v25 = vadd.f32 1.0, %v5991_v34  ;;  %v5477_v9 = vpack.c.bf16 %v4243_v5, %v4242_v63 }
 0x666   : > { %6008 = vpow2.f32 %v4720_v0  ;;  %v4051_v14 = vmul.f32 %v5993_v3, %v5989_v17  ;;  %v5995_v59 = vpop.eup %5994 }
 0x667   : > { %6010 = vrcp.f32 %v3862_v25 }
 0x668   : > { %v5997_v44 = vpop.eup %5996  ;;  %v5447_v26 = vpack.c.bf16 %v4051_v14, %v4050_v39  ;;  %6012 = vtanh.f32 %v3669_v47  ;;  %v5480_v39 = vpack.c.bf16 %v4245_v29, %v4244_v37 }
 0x669   : > { %v5999_v41 = vpop.eup %5998  ;;  %v3863_v30 = vadd.f32 1.0, %v5997_v44 }
 0x66a   : > { %5448 = vmatpush3.bf16.msra.mxu0 %v5447_v26  ;;  %v4052_v50 = vmul.f32 %v5999_v41, %v5995_v59  ;;  %v6001_v61 = vpop.eup %6000 }
 0x66b   : > { %6014 = vrcp.f32 %v3863_v30  ;;  %5449 = vmatprep.subr.bf16.mxu0 %v11011_v38 }
 0x66c   : > { %v6003_v19 = vpop.eup %6002  ;;  %6016 = vtanh.f32 %v3671_v62  ;;  %v4235_v62 = vld [vmem:[%s9848_s6 + $0x28] sm:$0xff] }
 0x66d   : > { %v6005_v52 = vpop.eup %6004  ;;  %v3864_v16 = vadd.f32 1.0, %v6003_v19  ;;  %v5465_v21 = vpack.c.bf16 %v4235_v62, %v4234_v31 }
 0x66e   : > { %v4053_v22 = vmul.f32 %v6005_v52, %v6001_v61  ;;  %v6007_v48 = vpop.eup %6006 }
 0x66f   : > { %6018 = vrcp.f32 %v3864_v16 }
 0x670   : > { %v6009_v27 = vpop.eup %6008  ;;  %v5450_v11 = vpack.c.bf16 %v4053_v22, %v4052_v50  ;;  %6020 = vtanh.f32 %v3673_v28 }
 0x671   : > { %v6011_v8 = vpop.eup %6010  ;;  %v3865_v42 = vadd.f32 1.0, %v6009_v27 }
 0x672   : > { %5451 = vmatpush3.bf16.msra.mxu0 %v5450_v11  ;;  %v4054_v56 = vmul.f32 %v6011_v8, %v6007_v48  ;;  %v6013_v46 = vpop.eup %6012  ;;  %v4337_v11 = vld [vmem:[#allocation2] sm:$0x1]  ;;  %v6142_v8 = vmov 0  }
 0x673   : > { %6022 = vrcp.f32 %v3865_v42  ;;  %5452 = vmatprep.subr.bf16.mxu0 %v11011_v38  ;;  %5735 = vset.pattern.permute.xlu0 %v6142_v8  ;;  %v4721_v42 = vld [vmem:[%s9849_s7] ss:$0 sm:$0xff] }
 0x674   : > { %4340 = vperm.xlu0 %5735, %v4337_v11  }
 0x675   : > { %v6015_v32 = vpop.eup %6014 }
 0x676   : > { %v4055_v47 = vmul.f32 %v6015_v32, %v6013_v46  ;;  %v6017_v2 = vpop.eup %6016 }
 0x678   : > { %v5453_v40 = vpack.c.bf16 %v4055_v47, %v4054_v56 }
 0x679   : > { %v6019_v12 = vpop.eup %6018 }
 0x67a   : > { %5454 = vmatpush3.bf16.msra.mxu0 %v5453_v40  ;;  %v4056_v35 = vmul.f32 %v6019_v12, %v6017_v2  ;;  %v6021_v24 = vpop.eup %6020 }
 0x67b   : > { %5455 = vmatprep.subr.bf16.mxu0 %v11011_v38 }
 0x67d   : > { %v6023_v55 = vpop.eup %6022 }
 0x67e   : > { %v4057_v6 = vmul.f32 %v6023_v55, %v6021_v24 }
 0x680   : > { %v5456_v1 = vpack.c.bf16 %v4057_v6, %v4056_v35 }
 0x682   : > { %5457 = vmatpush3.bf16.msra.mxu0 %v5456_v1  ;;  %v4336_v1 = vld [vmem:[%s9850_s8] sm:$0x1] }
 0x683   : > { %5458 = vmatprep.subr.bf16.mxu0 %v11011_v38 }
 0x685   : > { %5136 = vmatmul.mubr.f32.vlgmr.msra.gmra.mrb[66].mxu0 %v4060_v20 }
 0x686   : > { %5138 = vmatprep.mubr.msk.f32.mxu0 %vm6141_vm1, %v10477_v57  ;;  %5460 = vmatpush3.bf16.msra.mxu0 %v5459_v45  ;;  %v11041_v45 = vld [vmem:[#allocation11_spill] sm:$0xff] }
 0x687   : > { %5461 = vmatprep.subr.bf16.mxu0 %v11011_v38  ;;  %v11042_v60 = vsub.s32 0, %v11041_v45 }
 0x689   : > { %5139 = vmatmul.mubr.f32.gmra.mrb[68].mxu0 %v4063_v15 }
 0x68a   : > { %5141 = vmatprep.mubr.msk.f32.mxu0 %vm6141_vm1, %v10477_v57  ;;  %5463 = vmatpush3.bf16.msra.mxu0 %v5462_v54 }
 0x68b   : > { %5464 = vmatprep.subr.bf16.mxu0 %v11011_v38 }
 0x68d   : > { %5142 = vmatmul.mubr.f32.gmra.mrb[70].mxu0 %v4066_v33 }
 0x68e   : > { %5466 = vmatpush3.bf16.msra.mxu0 %v5465_v21  ;;  %5176 = vmatprep.mubr.msk.f32.mxu0 %vm6141_vm1, %v10477_v57 }
 0x68f   : > { %5467 = vmatprep.subr.bf16.mxu0 %v11011_v38 }
 0x692   : > { %5469 = vmatpush3.bf16.msra.mxu0 %v5468_v13 }
 0x693   : > { %5470 = vmatprep.subr.bf16.mxu0 %v11011_v38 }
 0x696   : > { %5472 = vmatpush3.bf16.msra.mxu0 %v5471_v49 }
 0x697   : > { %5473 = vmatprep.subr.bf16.mxu0 %v11011_v38 }
 0x69a   : > { %5475 = vmatpush3.bf16.msra.mxu0 %v5474_v4 }
 0x69b   : > { %5476 = vmatprep.subr.bf16.mxu0 %v11011_v38 }
 0x69e   : > { %5478 = vmatpush3.bf16.msra.mxu0 %v5477_v9 }
 0x69f   : > { %5479 = vmatprep.subr.bf16.mxu0 %v11011_v38 }
 0x6a2   : > { %5481 = vmatpush3.bf16.msra.mxu0 %v5480_v39 }
 0x6a3   : > { %5482 = vmatprep.subr.bf16.mxu0 %v11011_v38 }
 0x6f3   : > { %v4341_v20 = vpop.permute.xlu0 %4340 }
 0x6f4   : > { %v4346_v36 = vrot.slane %v4341_v20, %v11042_v60 }
 0x719   : > { %v4874_v17 = vpop.f32.mrb[60].mxu0 }
 0x71a   : > { %v4875_v28 = vpop.f32.mrb[61].mxu0 }
 0x71b   : > { %v4876_v34 = vadd.f32 %v4875_v28, %v4874_v17 }
 0x71e   : > { %v4877_v0 = vpop.f32.mrb[62].mxu0 }
 0x71f   : > { %v4878_v3 = vpop.f32.mrb[63].mxu0 }
 0x720   : > { %v4879_v25 = vadd.f32 %v4878_v3, %v4877_v0 }
 0x722   : > { %v4880_v14 = vpop.f32.mrb[64].mxu0 }
 0x723   : > { %v4881_v59 = vpop.f32.mrb[65].mxu0 }
 0x724   : > { %v4882_v44 = vadd.f32 %v4881_v59, %v4880_v14 }
 0x758   : > { %v4213_v26 = vpop.f32.mrb[66].mxu0 }
 0x759   : > { %v4214_v41 = vadd.f32 %v4876_v34, %v4213_v26  ;;  %v5137_v30 = vpop.f32.mrb[67].mxu0 }
 0x75b   : > { %6024 = vtanh.f32 %v4214_v41 }
 0x75c   : > { %v4218_v50 = vpop.f32.mrb[68].mxu0 }
 0x75d   : > { %v4219_v61 = vadd.f32 %v4879_v25, %v4218_v50  ;;  %v5140_v19 = vpop.f32.mrb[69].mxu0 }
 0x75f   : > { %6026 = vtanh.f32 %v4219_v61 }
 0x760   : > { %v4223_v52 = vpop.f32.mrb[70].mxu0 }
 0x761   : > { %v4224_v16 = vadd.f32 %v4882_v44, %v4223_v52  ;;  %v5143_v38 = vpop.f32.mrb[71].mxu0 }
 0x763   : > { %6028 = vtanh.f32 %v4224_v16 }
 0x765   : > { %v6025_v22 = vpop.eup %6024 }
 0x766   : > { %5177 = vmatmul.mubr.f32.vlgmr.msra.gmra.mrb[72].mxu0 %v6025_v22 }
 0x767   : > { %5179 = vmatprep.mubr.msk.f32.mxu0 %vm6141_vm1, %v10477_v57 }
 0x769   : > { %v6027_v48 = vpop.eup %6026 }
 0x76a   : > { %5180 = vmatmul.mubr.f32.gmra.mrb[74].mxu0 %v6027_v48 }
 0x76b   : > { %5182 = vmatprep.mubr.msk.f32.mxu0 %vm6141_vm1, %v10477_v57 }
 0x76d   : > { %v6029_v27 = vpop.eup %6028 }
 0x76e   : > { %5183 = vmatmul.mubr.f32.gmra.mrb[76].mxu0 %v6029_v27 }
 0x76f   : > { %5191 = vmatprep.mubr.msk.f32.mxu0 %vm6141_vm1, %v10477_v57 }
 0x839   : > { %v4319_v56 = vpop.f32.mrb[72].mxu0 }
 0x83a   : > { %v5178_v46 = vpop.f32.mrb[73].mxu0  ;;  %v4320_v32 = vadd.f32 %v4721_v42, %v4319_v56 }
 0x83c   : > { %6030 = vtanh.f32 %v4320_v32 }
 0x83d   : > { %v4324_v47 = vpop.f32.mrb[74].mxu0 }
 0x83e   : > { %v4325_v2 = vadd.f32 %v4721_v42, %v4324_v47  ;;  %v5181_v40 = vpop.f32.mrb[75].mxu0 }
 0x840   : > { %6032 = vtanh.f32 %v4325_v2 }
 0x841   : > { %v4329_v12 = vpop.f32.mrb[76].mxu0 }
 0x842   : > { %v5184_v35 = vpop.f32.mrb[77].mxu0  ;;  %v4330_v24 = vadd.f32 %v4721_v42, %v4329_v12 }
 0x844   : > { %6034 = vtanh.f32 %v4330_v24 }
 0x846   : > { %v6031_v55 = vpop.eup %6030 }
 0x84a   : > { %v6033_v6 = vpop.eup %6032 }
 0x84b   : > { %v5483_v58 = vpack.c.bf16 %v6033_v6, %v6031_v55 }
 0x84d   : > { %5485 = vmatpush3.bf16.xpose.msk.msra.mxu0 %vm5484_vm3, %v5483_v58 }
 0x84e   : > { %5189 = vmatprep.subr.mxu0 %v10477_v57  ;;  %v6035_v43 = vpop.eup %6034 }
 0x855   : > { %5190 = vmatpush3.xpose.msk.msra.mxu0 %vm4347_vm2, %v6035_v43 }
 0x858   : > { %5192 = vmatmul.mubr.msk.f32.vlgmr.msra.gmra.mrb[78].mxu0 %vm4347_vm2, %v4336_v1 }
 0x92b   : > { %v4426_v15 = vpop.f32.mrb[78].mxu0 }
 0x92c   : > { %v4427_v54 = vadd.f32 %v4426_v15, %v4346_v36  ;;  %v5193_v57 = vpop.f32.mrb[79].mxu0 }
 0x92e   : > { %4431 = vst.msk [vmem:[%s394_s21] sm:$0x1] %vm4430_vm4, %v4427_v54 }
 0x92f   : > { %6081 = shalt.err (!%p6078_p4)
}
 0x930   : > { %s6082_s28 = scalar_lea.hbm %s9798_s17, 16  ;;  %s6086_s13 = scalar_lea.hbm %s9852_s10, 32 }
 0x931   : > { %p6083_p5 = scmp.ne.s32.totalorder %s9798_s17, %s6082_s28  ;;  %p6087_p1 = scmp.lt.u32.totalorder %s9798_s17, %s9852_s10 }
 0x932   : > { %p6088_p3 = scmp.lt.u32.totalorder %s6086_s13, %s6082_s28  ;;  %p6090_p6 = scmp.lt.u32.totalorder %s6082_s28, %s9798_s17 }
 0x933   : > { %p6084_p7 = pnand %p6083_p5, %p11043_p12 }
 0x934   : > { %p6089_p11 = por %p6088_p3, %p6087_p1 }
 0x935   : > { %p6085_p9 = pneg %p6084_p7 }
 0x936   : > { %p6091_p13 = por %p6090_p6, %p6089_p11 }
 0x938   : > { %p6092_p8 = pnand %p6091_p13, %p6085_p9 }
 0x93a   : > { %6095 = shalt.err (!%p6092_p8)
}
 0x93b   : > { %5685 = dma.vmem_to_hbm [thread:$0]  (%p11043_p12), %s9800_s29, 16, %s9798_s17, %s4433_s23  }
 0x93c PF: > { %s4457_s14 = sand.u32 1, %s6122_s15   ;;  %p11044_p10 = scmp.ne.s32.totalorder %s10108_s26, 0 }
 0x93d   : > { %p11045_p0 = scmp.ge.s32.totalorder %s6134_s18, 2  ;;  %s4458_s24 = scalar_lea.sflag [#allocation5], %s4457_s14 }
 0x93f   : > { %p5692_p2 = pnand %p11045_p0, %p11044_p10 }
 0x941   : > { %6117 = dma.done.wait (!%p5692_p2), %s4458_s24, 16  }
 0x942   : > { %6119 = vsyncadd (!%p5692_p2), %s4458_s24, 4294967280  ;;  %s11046_s27 = sld [smem:[#allocation9_spill]]  ;;  %s11047_s17 = sld [smem:[#allocation10_spill]] }
 0x943   : > { %p25_p4 = scmp.ge.s32.totalorder %s6227_s20, 4   ;;  %s11048_s15 = smov %s6126_s16 }
 0x944   : > { %s11050_s18 = smov %s6227_s20 }
 0x945   :  { %27 = sbr.rel (!%p25_p4) target bundleno = 8 (0x8), region = 108 }
 0x948   : > { %s11049_s16 = smov %s11046_s27 }
 0x94c   :  { %4462 = vsyncpa [#allocation4], 1 }
 0x94d   :  { %4464 = vsyncpa [#allocation4 + $0x1], 1 }
 0x94e   :  { %4465 = vsyncpa [#allocation5], 1 }
 0x94f   :  { %4467 = vsyncpa [#allocation5 + $0x1], 1 }

</bundles_post_ra>
